<compile_context>
chip_gen: v6e
topology: v6e:2x2x1
jax: 0.10.0
libtpu: 0.0.40
codegen_flags: <defaults>
</compile_context>

<pallas_src>
import numpy as np
import jax
import jax.numpy as jnp
from jax import lax
from jax.experimental import pallas as pl
from jax.experimental.pallas import tpu as pltpu


# ----------------------------- fused DoubleConv kernel -----------------------------

def _double_conv_kernel(x_ref, m_ref, w1_ref, s1_ref, b1_ref,
                        w2_ref, s2_ref, b2_ref, o_ref):
    """Fused (conv3x3 -> BN -> ReLU) x 2 on one halo'd row tile.

    x_ref : (P_in, Cin)   flattened (row-major, row stride Wp = W + 4) zero-padded
                          input tile: 2-row/2-col spatial halo + small flat tail pad.
    m_ref : (M1, 1)       1/0 mask of valid mid positions (implements conv2's zero
                          padding and this tile's top/bottom image boundary).
    w1/w2 : (9, Cin, Cm) / (9, Cm, Cout)   HWIO weights flattened over the 9 taps.
    s*/b* : (1, C)        folded BatchNorm scale / bias (f32).
    o_ref : (TH, W, Cout) output row tile.
    """
    TH, W, Cout = o_ref.shape
    Cm = w1_ref.shape[-1]
    Wp = W + 4                      # padded width == flat row stride
    M1 = m_ref.shape[0]             # (TH + 2) * Wp + tail pad
    M2 = TH * Wp

    # ---- conv1: 9 shifted-slab matmuls, f32 accumulate on the MXU ----
    acc1 = jnp.zeros((M1, Cm), jnp.float32)
    for dh in range(3):
        for dw in range(3):
            sh = dh * Wp + dw
            acc1 = acc1 + jnp.dot(x_ref[sh:sh + M1, :], w1_ref[dh * 3 + dw],
                                  preferred_element_type=jnp.float32)
    # Folded BN + ReLU, then zero out-of-image / junk positions (= conv2's zero pad).
    y1 = jnp.maximum(acc1 * s1_ref[...] + b1_ref[...], 0.0)
    mid = (y1 * m_ref[...]).astype(w2_ref.dtype)      # mid activation stays on-chip

    # ---- conv2: same shifted-slab trick on the mid activation ----
    acc2 = jnp.zeros((M2, Cout), jnp.float32)
    for dh in range(3):
        for dw in range(3):
            sh = dh * Wp + dw
            acc2 = acc2 + jnp.dot(mid[sh:sh + M2, :], w2_ref[dh * 3 + dw],
                                  preferred_element_type=jnp.float32)
    y2 = jnp.maximum(acc2 * s2_ref[...] + b2_ref[...], 0.0).astype(o_ref.dtype)

    # Store the W valid columns of each output row (flat row stride is Wp).
    for r in range(TH):
        o_ref[r] = y2[r * Wp:r * Wp + W, :]


# ----------------------------- wrapper / glue -----------------------------

def _pick_row_tile(h):
    for cand in (32, 64, 16, 8):
        if cand <= h and h % cand == 0:
            return cand
    return h


def _mid_mask(row_tiles, row_tile, h, w, m1):
    """(RT, M1, 1) float32 mask of valid mid positions per row tile."""
    wp = w + 4
    p = np.arange(m1)
    mr = p // wp
    j = p % wp
    base = (mr < row_tile + 2) & (j >= 1) & (j <= w)
    rows = []
    for t in range(row_tiles):
        g = t * row_tile - 1 + mr
        rows.append((base & (g >= 0) & (g < h)).astype(np.float32))
    return jnp.asarray(np.stack(rows)[..., None])


def double_conv_forward(x_nchw, params, *, row_tile=None, compute_dtype=jnp.float32):
    """DoubleConv forward. Takes/returns NCHW like the PyTorch module."""
    N, Cin, H, W = x_nchw.shape
    w1, w2 = params["w1"], params["w2"]
    Cm, Cout = w1.shape[-1], w2.shape[-1]

    if row_tile is None:
        row_tile = _pick_row_tile(H)
    assert H % row_tile == 0, (H, row_tile)
    TH, RT = row_tile, H // row_tile
    Wp = W + 4
    P_in = (TH + 4) * Wp + 16       # flat input-tile rows (+ tail pad so every tap slice is in bounds)
    M1 = (TH + 2) * Wp + 8          # flat mid rows (+ tail pad, same reason)

    # NCHW -> NHWC, zero-pad spatially by 2 (covers both convs' receptive field),
    # cut overlapping halo'd row tiles and flatten them row-major.
    x = jnp.transpose(x_nchw, (0, 2, 3, 1))
    xp = jnp.pad(x, ((0, 0), (2, 2), (2, 2), (0, 0)))
    x_tiles = jnp.stack([xp[:, t * TH:t * TH + TH + 4] for t in range(RT)], axis=1)
    x_flat = x_tiles.reshape(N, RT, (TH + 4) * Wp, Cin)
    x_flat = jnp.pad(x_flat, ((0, 0), (0, 0), (0, P_in - (TH + 4) * Wp), (0, 0)))
    x_flat = x_flat.astype(compute_dtype)

    mask = _mid_mask(RT, TH, H, W, M1)

    w1r = w1.reshape(9, Cin, Cm).astype(compute_dtype)
    w2r = w2.reshape(9, Cm, Cout).astype(compute_dtype)
    s1 = params["s1"].reshape(1, Cm).astype(jnp.float32)
    b1 = params["b1"].reshape(1, Cm).astype(jnp.float32)
    s2 = params["s2"].reshape(1, Cout).astype(jnp.float32)
    b2 = params["b2"].reshape(1, Cout).astype(jnp.float32)

    itemsize = jnp.dtype(compute_dtype).itemsize
    flops = 2 * N * H * W * 9 * (Cin * Cm + Cm * Cout)
    bytes_accessed = int(x_flat.size * itemsize + mask.size * 4
                         + (w1r.size + w2r.size) * itemsize
                         + N * H * W * Cout * jnp.dtype(x_nchw.dtype).itemsize)

    out = pl.pallas_call(
        _double_conv_kernel,
        out_shape=jax.ShapeDtypeStruct((N, H, W, Cout), x_nchw.dtype),
        grid=(N, RT),
        in_specs=[
            pl.BlockSpec((None, None, P_in, Cin), lambda n, t: (n, t, 0, 0)),
            pl.BlockSpec((None, M1, 1), lambda n, t: (t, 0, 0)),
            pl.BlockSpec((9, Cin, Cm), lambda n, t: (0, 0, 0)),
            pl.BlockSpec((1, Cm), lambda n, t: (0, 0)),
            pl.BlockSpec((1, Cm), lambda n, t: (0, 0)),
            pl.BlockSpec((9, Cm, Cout), lambda n, t: (0, 0, 0)),
            pl.BlockSpec((1, Cout), lambda n, t: (0, 0)),
            pl.BlockSpec((1, Cout), lambda n, t: (0, 0)),
        ],
        out_specs=pl.BlockSpec((None, TH, W, Cout), lambda n, t: (n, t, 0, 0)),
        compiler_params=pltpu.CompilerParams(
            dimension_semantics=("parallel", "parallel"),
            vmem_limit_bytes=32 * 1024 * 1024),
        cost_estimate=pl.CostEstimate(flops=flops, transcendentals=0,
                                      bytes_accessed=bytes_accessed),
    )(x_flat, mask, w1r, s1, b1, w2r, s2, b2)

    return jnp.transpose(out, (0, 3, 1, 2))                 # NHWC -> NCHW


# ----------------------------- params & pure-JAX reference -----------------------------

def init_double_conv_params(key, in_channels, out_channels, mid_channels=None):
    if mid_channels is None:
        mid_channels = out_channels       # DoubleConv default
    eps = 1e-5
    k1, k2 = jax.random.split(key)
    # conv weights in HWIO layout (kh, kw, cin, cout)
    w1 = 0.1 * jax.random.normal(k1, (3, 3, in_channels, mid_channels), jnp.float32)
    w2 = 0.1 * jax.random.normal(k2, (3, 3, mid_channels, out_channels), jnp.float32)

    def bn_fold(c):
        gamma = 1.0 + 0.1 * jnp.arange(c, dtype=jnp.float32) / c
        beta = 0.01 * jnp.arange(c, dtype=jnp.float32)
        mean = 0.05 * jnp.arange(c, dtype=jnp.float32) / c
        var = 1.0 + 0.2 * jnp.arange(c, dtype=jnp.float32) / c
        scale = gamma / jnp.sqrt(var + eps)
        bias = beta - mean * scale
        return scale, bias

    s1, b1 = bn_fold(mid_channels)
    s2, b2 = bn_fold(out_channels)
    return {"w1": w1, "s1": s1, "b1": b1, "w2": w2, "s2": s2, "b2": b2}


def double_conv_reference(x_nchw, params):
    def cbr(x, w, s, b):
        y = lax.conv_general_dilated(x, w, (1, 1), "SAME",
                                     dimension_numbers=("NCHW", "HWIO", "NCHW"))
        y = y * s[None, :, None, None] + b[None, :, None, None]
        return jnp.maximum(y, 0.0)

    y = cbr(x_nchw, params["w1"], params["s1"], params["b1"])
    return cbr(y, params["w2"], params["s2"], params["b2"])


if __name__ == "__main__":
    key = jax.random.PRNGKey(0)
    kx, kp = jax.random.split(key)

    N, Cin, H, W = 2, 4, 16, 16
    Cout = 8
    x = jax.random.normal(kx, (N, Cin, H, W), jnp.float32)
    params = init_double_conv_params(kp, Cin, Cout)

    ref = double_conv_reference(x, params)

    # f32 path, explicit row tiling (2 row tiles) -> exercises halo / boundary logic.
    fwd_f32 = jax.jit(lambda a, p: double_conv_forward(a, p, row_tile=8))
    out = jax.block_until_ready(fwd_f32(x, params))
    assert out.shape == (N, Cout, H, W), out.shape
    err = float(jnp.max(jnp.abs(out - ref)))
    assert jnp.allclose(out, ref, atol=1e-3, rtol=1e-3), err

    # bf16 MXU-feed path (f32 accumulate / epilogue), default row tile.
    fwd_bf16 = jax.jit(lambda a, p: double_conv_forward(a, p, compute_dtype=jnp.bfloat16))
    out_bf16 = jax.block_until_ready(fwd_bf16(x, params))
    err_bf16 = float(jnp.max(jnp.abs(out_bf16 - ref)))
    assert jnp.allclose(out_bf16, ref, atol=5e-2, rtol=5e-2), err_bf16

    print("KERNEL_OK")
</pallas_src>

<mosaic_0001>
module attributes {stable_mosaic.version = 11 : i64} {
  func.func @_double_conv_kernel(%arg0: i32, %arg1: i32, %arg2: memref<1x1x256x4xf32, #tpu.memory_space<vmem>>, %arg3: memref<1x208x1xf32, #tpu.memory_space<vmem>>, %arg4: memref<9x4x8xf32, #tpu.memory_space<vmem>>, %arg5: memref<1x8xf32, #tpu.memory_space<vmem>>, %arg6: memref<1x8xf32, #tpu.memory_space<vmem>>, %arg7: memref<9x8x8xf32, #tpu.memory_space<vmem>>, %arg8: memref<1x8xf32, #tpu.memory_space<vmem>>, %arg9: memref<1x8xf32, #tpu.memory_space<vmem>>, %arg10: memref<1x8x16x8xf32, #tpu.memory_space<vmem>>) attributes {dimension_semantics = [#tpu.dimension_semantics<parallel>, #tpu.dimension_semantics<parallel>], iteration_bounds = array<i64: 2, 2>, scalar_prefetch = 0 : i64, scratch_operands = 0 : i64, tpu.core_type = #tpu.core_type<tc>, window_params = [{transform_indices = @transform_0, window_bounds = array<i64: 1, 1, 256, 4>}, {transform_indices = @transform_1, window_bounds = array<i64: 1, 208, 1>}, {pipeline_mode = #tpu.pipeline_mode<synchronous>, transform_indices = @transform_2, window_bounds = array<i64: 9, 4, 8>}, {pipeline_mode = #tpu.pipeline_mode<synchronous>, transform_indices = @transform_3, window_bounds = array<i64: 1, 8>}, {pipeline_mode = #tpu.pipeline_mode<synchronous>, transform_indices = @transform_4, window_bounds = array<i64: 1, 8>}, {pipeline_mode = #tpu.pipeline_mode<synchronous>, transform_indices = @transform_5, window_bounds = array<i64: 9, 8, 8>}, {pipeline_mode = #tpu.pipeline_mode<synchronous>, transform_indices = @transform_6, window_bounds = array<i64: 1, 8>}, {pipeline_mode = #tpu.pipeline_mode<synchronous>, transform_indices = @transform_7, window_bounds = array<i64: 1, 8>}, {transform_indices = @transform_8, window_bounds = array<i64: 1, 8, 16, 8>}]} {
    %cst = arith.constant 0.000000e+00 : f32
    %0 = vector.broadcast %cst : f32 to vector<208x8xf32>
    %c0 = arith.constant 0 : index
    %c0_0 = arith.constant 0 : index
    %c0_1 = arith.constant 0 : index
    %c0_2 = arith.constant 0 : index
    %1 = vector.load %arg2[%c0, %c0_0, %c0_1, %c0_2] : memref<1x1x256x4xf32, #tpu.memory_space<vmem>>, vector<1x1x208x4xf32>
    %2 = vector.shape_cast %1 : vector<1x1x208x4xf32> to vector<208x4xf32>
    %c0_3 = arith.constant 0 : index
    %c0_4 = arith.constant 0 : index
    %c0_5 = arith.constant 0 : index
    %3 = vector.load %arg4[%c0_3, %c0_4, %c0_5] : memref<9x4x8xf32, #tpu.memory_space<vmem>>, vector<1x4x8xf32>
    %4 = vector.shape_cast %3 : vector<1x4x8xf32> to vector<4x8xf32>
    %cst_6 = arith.constant dense<0.000000e+00> : vector<208x8xf32>
    %5 = tpu.matmul %2, %4, %cst_6 {dimension_numbers = #tpu.dot_dimension_numbers<[1], [0], [0], [1], [0, 0, 1, 1], [], []>} : vector<208x4xf32>, vector<4x8xf32>, vector<208x8xf32> -> vector<208x8xf32>
    %6 = arith.addf %0, %5 : vector<208x8xf32>
    %c0_7 = arith.constant 0 : index
    %c0_8 = arith.constant 0 : index
    %c1 = arith.constant 1 : index
    %c0_9 = arith.constant 0 : index
    %7 = vector.load %arg2[%c0_7, %c0_8, %c1, %c0_9] : memref<1x1x256x4xf32, #tpu.memory_space<vmem>>, vector<1x1x208x4xf32>
    %8 = vector.shape_cast %7 : vector<1x1x208x4xf32> to vector<208x4xf32>
    %c1_10 = arith.constant 1 : index
    %c0_11 = arith.constant 0 : index
    %c0_12 = arith.constant 0 : index
    %9 = vector.load %arg4[%c1_10, %c0_11, %c0_12] : memref<9x4x8xf32, #tpu.memory_space<vmem>>, vector<1x4x8xf32>
    %10 = vector.shape_cast %9 : vector<1x4x8xf32> to vector<4x8xf32>
    %cst_13 = arith.constant dense<0.000000e+00> : vector<208x8xf32>
    %11 = tpu.matmul %8, %10, %cst_13 {dimension_numbers = #tpu.dot_dimension_numbers<[1], [0], [0], [1], [0, 0, 1, 1], [], []>} : vector<208x4xf32>, vector<4x8xf32>, vector<208x8xf32> -> vector<208x8xf32>
    %12 = arith.addf %6, %11 : vector<208x8xf32>
    %c0_14 = arith.constant 0 : index
    %c0_15 = arith.constant 0 : index
    %c2 = arith.constant 2 : index
    %c0_16 = arith.constant 0 : index
    %13 = vector.load %arg2[%c0_14, %c0_15, %c2, %c0_16] : memref<1x1x256x4xf32, #tpu.memory_space<vmem>>, vector<1x1x208x4xf32>
    %14 = vector.shape_cast %13 : vector<1x1x208x4xf32> to vector<208x4xf32>
    %c2_17 = arith.constant 2 : index
    %c0_18 = arith.constant 0 : index
    %c0_19 = arith.constant 0 : index
    %15 = vector.load %arg4[%c2_17, %c0_18, %c0_19] : memref<9x4x8xf32, #tpu.memory_space<vmem>>, vector<1x4x8xf32>
    %16 = vector.shape_cast %15 : vector<1x4x8xf32> to vector<4x8xf32>
    %cst_20 = arith.constant dense<0.000000e+00> : vector<208x8xf32>
    %17 = tpu.matmul %14, %16, %cst_20 {dimension_numbers = #tpu.dot_dimension_numbers<[1], [0], [0], [1], [0, 0, 1, 1], [], []>} : vector<208x4xf32>, vector<4x8xf32>, vector<208x8xf32> -> vector<208x8xf32>
    %18 = arith.addf %12, %17 : vector<208x8xf32>
    %c0_21 = arith.constant 0 : index
    %c0_22 = arith.constant 0 : index
    %c20 = arith.constant 20 : index
    %c0_23 = arith.constant 0 : index
    %19 = vector.load %arg2[%c0_21, %c0_22, %c20, %c0_23] : memref<1x1x256x4xf32, #tpu.memory_space<vmem>>, vector<1x1x208x4xf32>
    %20 = vector.shape_cast %19 : vector<1x1x208x4xf32> to vector<208x4xf32>
    %c3 = arith.constant 3 : index
    %c0_24 = arith.constant 0 : index
    %c0_25 = arith.constant 0 : index
    %21 = vector.load %arg4[%c3, %c0_24, %c0_25] : memref<9x4x8xf32, #tpu.memory_space<vmem>>, vector<1x4x8xf32>
    %22 = vector.shape_cast %21 : vector<1x4x8xf32> to vector<4x8xf32>
    %cst_26 = arith.constant dense<0.000000e+00> : vector<208x8xf32>
    %23 = tpu.matmul %20, %22, %cst_26 {dimension_numbers = #tpu.dot_dimension_numbers<[1], [0], [0], [1], [0, 0, 1, 1], [], []>} : vector<208x4xf32>, vector<4x8xf32>, vector<208x8xf32> -> vector<208x8xf32>
    %24 = arith.addf %18, %23 : vector<208x8xf32>
    %c0_27 = arith.constant 0 : index
    %c0_28 = arith.constant 0 : index
    %c21 = arith.constant 21 : index
    %c0_29 = arith.constant 0 : index
    %25 = vector.load %arg2[%c0_27, %c0_28, %c21, %c0_29] : memref<1x1x256x4xf32, #tpu.memory_space<vmem>>, vector<1x1x208x4xf32>
    %26 = vector.shape_cast %25 : vector<1x1x208x4xf32> to vector<208x4xf32>
    %c4 = arith.constant 4 : index
    %c0_30 = arith.constant 0 : index
    %c0_31 = arith.constant 0 : index
    %27 = vector.load %arg4[%c4, %c0_30, %c0_31] : memref<9x4x8xf32, #tpu.memory_space<vmem>>, vector<1x4x8xf32>
    %28 = vector.shape_cast %27 : vector<1x4x8xf32> to vector<4x8xf32>
    %cst_32 = arith.constant dense<0.000000e+00> : vector<208x8xf32>
    %29 = tpu.matmul %26, %28, %cst_32 {dimension_numbers = #tpu.dot_dimension_numbers<[1], [0], [0], [1], [0, 0, 1, 1], [], []>} : vector<208x4xf32>, vector<4x8xf32>, vector<208x8xf32> -> vector<208x8xf32>
    %30 = arith.addf %24, %29 : vector<208x8xf32>
    %c0_33 = arith.constant 0 : index
    %c0_34 = arith.constant 0 : index
    %c22 = arith.constant 22 : index
    %c0_35 = arith.constant 0 : index
    %31 = vector.load %arg2[%c0_33, %c0_34, %c22, %c0_35] : memref<1x1x256x4xf32, #tpu.memory_space<vmem>>, vector<1x1x208x4xf32>
    %32 = vector.shape_cast %31 : vector<1x1x208x4xf32> to vector<208x4xf32>
    %c5 = arith.constant 5 : index
    %c0_36 = arith.constant 0 : index
    %c0_37 = arith.constant 0 : index
    %33 = vector.load %arg4[%c5, %c0_36, %c0_37] : memref<9x4x8xf32, #tpu.memory_space<vmem>>, vector<1x4x8xf32>
    %34 = vector.shape_cast %33 : vector<1x4x8xf32> to vector<4x8xf32>
    %cst_38 = arith.constant dense<0.000000e+00> : vector<208x8xf32>
    %35 = tpu.matmul %32, %34, %cst_38 {dimension_numbers = #tpu.dot_dimension_numbers<[1], [0], [0], [1], [0, 0, 1, 1], [], []>} : vector<208x4xf32>, vector<4x8xf32>, vector<208x8xf32> -> vector<208x8xf32>
    %36 = arith.addf %30, %35 : vector<208x8xf32>
    %c0_39 = arith.constant 0 : index
    %c0_40 = arith.constant 0 : index
    %c40 = arith.constant 40 : index
    %c0_41 = arith.constant 0 : index
    %37 = vector.load %arg2[%c0_39, %c0_40, %c40, %c0_41] : memref<1x1x256x4xf32, #tpu.memory_space<vmem>>, vector<1x1x208x4xf32>
    %38 = vector.shape_cast %37 : vector<1x1x208x4xf32> to vector<208x4xf32>
    %c6 = arith.constant 6 : index
    %c0_42 = arith.constant 0 : index
    %c0_43 = arith.constant 0 : index
    %39 = vector.load %arg4[%c6, %c0_42, %c0_43] : memref<9x4x8xf32, #tpu.memory_space<vmem>>, vector<1x4x8xf32>
    %40 = vector.shape_cast %39 : vector<1x4x8xf32> to vector<4x8xf32>
    %cst_44 = arith.constant dense<0.000000e+00> : vector<208x8xf32>
    %41 = tpu.matmul %38, %40, %cst_44 {dimension_numbers = #tpu.dot_dimension_numbers<[1], [0], [0], [1], [0, 0, 1, 1], [], []>} : vector<208x4xf32>, vector<4x8xf32>, vector<208x8xf32> -> vector<208x8xf32>
    %42 = arith.addf %36, %41 : vector<208x8xf32>
    %c0_45 = arith.constant 0 : index
    %c0_46 = arith.constant 0 : index
    %c41 = arith.constant 41 : index
    %c0_47 = arith.constant 0 : index
    %43 = vector.load %arg2[%c0_45, %c0_46, %c41, %c0_47] : memref<1x1x256x4xf32, #tpu.memory_space<vmem>>, vector<1x1x208x4xf32>
    %44 = vector.shape_cast %43 : vector<1x1x208x4xf32> to vector<208x4xf32>
    %c7 = arith.constant 7 : index
    %c0_48 = arith.constant 0 : index
    %c0_49 = arith.constant 0 : index
    %45 = vector.load %arg4[%c7, %c0_48, %c0_49] : memref<9x4x8xf32, #tpu.memory_space<vmem>>, vector<1x4x8xf32>
    %46 = vector.shape_cast %45 : vector<1x4x8xf32> to vector<4x8xf32>
    %cst_50 = arith.constant dense<0.000000e+00> : vector<208x8xf32>
    %47 = tpu.matmul %44, %46, %cst_50 {dimension_numbers = #tpu.dot_dimension_numbers<[1], [0], [0], [1], [0, 0, 1, 1], [], []>} : vector<208x4xf32>, vector<4x8xf32>, vector<208x8xf32> -> vector<208x8xf32>
    %48 = arith.addf %42, %47 : vector<208x8xf32>
    %c0_51 = arith.constant 0 : index
    %c0_52 = arith.constant 0 : index
    %c42 = arith.constant 42 : index
    %c0_53 = arith.constant 0 : index
    %49 = vector.load %arg2[%c0_51, %c0_52, %c42, %c0_53] : memref<1x1x256x4xf32, #tpu.memory_space<vmem>>, vector<1x1x208x4xf32>
    %50 = vector.shape_cast %49 : vector<1x1x208x4xf32> to vector<208x4xf32>
    %c8 = arith.constant 8 : index
    %c0_54 = arith.constant 0 : index
    %c0_55 = arith.constant 0 : index
    %51 = vector.load %arg4[%c8, %c0_54, %c0_55] : memref<9x4x8xf32, #tpu.memory_space<vmem>>, vector<1x4x8xf32>
    %52 = vector.shape_cast %51 : vector<1x4x8xf32> to vector<4x8xf32>
    %cst_56 = arith.constant dense<0.000000e+00> : vector<208x8xf32>
    %53 = tpu.matmul %50, %52, %cst_56 {dimension_numbers = #tpu.dot_dimension_numbers<[1], [0], [0], [1], [0, 0, 1, 1], [], []>} : vector<208x4xf32>, vector<4x8xf32>, vector<208x8xf32> -> vector<208x8xf32>
    %54 = arith.addf %48, %53 : vector<208x8xf32>
    %c0_57 = arith.constant 0 : index
    %c0_58 = arith.constant 0 : index
    %55 = vector.load %arg5[%c0_57, %c0_58] : memref<1x8xf32, #tpu.memory_space<vmem>>, vector<1x8xf32>
    %56 = vector.broadcast %55 : vector<1x8xf32> to vector<208x8xf32>
    %57 = arith.mulf %54, %56 : vector<208x8xf32>
    %c0_59 = arith.constant 0 : index
    %c0_60 = arith.constant 0 : index
    %58 = vector.load %arg6[%c0_59, %c0_60] : memref<1x8xf32, #tpu.memory_space<vmem>>, vector<1x8xf32>
    %59 = vector.broadcast %58 : vector<1x8xf32> to vector<208x8xf32>
    %60 = arith.addf %57, %59 : vector<208x8xf32>
    %cst_61 = arith.constant 0.000000e+00 : f32
    %61 = vector.broadcast %cst_61 : f32 to vector<208x8xf32>
    %62 = arith.maximumf %60, %61 : vector<208x8xf32>
    %c0_62 = arith.constant 0 : index
    %c0_63 = arith.constant 0 : index
    %c0_64 = arith.constant 0 : index
    %63 = vector.load %arg3[%c0_62, %c0_63, %c0_64] : memref<1x208x1xf32, #tpu.memory_space<vmem>>, vector<1x208x1xf32>
    %64 = vector.shape_cast %63 : vector<1x208x1xf32> to vector<208x1xf32>
    %65 = vector.broadcast %64 : vector<208x1xf32> to vector<208x8xf32>
    %66 = arith.mulf %62, %65 : vector<208x8xf32>
    %cst_65 = arith.constant 0.000000e+00 : f32
    %67 = vector.broadcast %cst_65 : f32 to vector<160x8xf32>
    %68 = vector.extract_strided_slice %66 {offsets = [0, 0], sizes = [160, 8], strides = [1, 1]} : vector<208x8xf32> to vector<160x8xf32>
    %c0_66 = arith.constant 0 : index
    %c0_67 = arith.constant 0 : index
    %c0_68 = arith.constant 0 : index
    %69 = vector.load %arg7[%c0_66, %c0_67, %c0_68] : memref<9x8x8xf32, #tpu.memory_space<vmem>>, vector<1x8x8xf32>
    %70 = vector.shape_cast %69 : vector<1x8x8xf32> to vector<8x8xf32>
    %cst_69 = arith.constant dense<0.000000e+00> : vector<160x8xf32>
    %71 = tpu.matmul %68, %70, %cst_69 {dimension_numbers = #tpu.dot_dimension_numbers<[1], [0], [0], [1], [0, 0, 1, 1], [], []>} : vector<160x8xf32>, vector<8x8xf32>, vector<160x8xf32> -> vector<160x8xf32>
    %72 = arith.addf %67, %71 : vector<160x8xf32>
    %73 = vector.extract_strided_slice %66 {offsets = [1, 0], sizes = [160, 8], strides = [1, 1]} : vector<208x8xf32> to vector<160x8xf32>
    %c1_70 = arith.constant 1 : index
    %c0_71 = arith.constant 0 : index
    %c0_72 = arith.constant 0 : index
    %74 = vector.load %arg7[%c1_70, %c0_71, %c0_72] : memref<9x8x8xf32, #tpu.memory_space<vmem>>, vector<1x8x8xf32>
    %75 = vector.shape_cast %74 : vector<1x8x8xf32> to vector<8x8xf32>
    %cst_73 = arith.constant dense<0.000000e+00> : vector<160x8xf32>
    %76 = tpu.matmul %73, %75, %cst_73 {dimension_numbers = #tpu.dot_dimension_numbers<[1], [0], [0], [1], [0, 0, 1, 1], [], []>} : vector<160x8xf32>, vector<8x8xf32>, vector<160x8xf32> -> vector<160x8xf32>
    %77 = arith.addf %72, %76 : vector<160x8xf32>
    %78 = vector.extract_strided_slice %66 {offsets = [2, 0], sizes = [160, 8], strides = [1, 1]} : vector<208x8xf32> to vector<160x8xf32>
    %c2_74 = arith.constant 2 : index
    %c0_75 = arith.constant 0 : index
    %c0_76 = arith.constant 0 : index
    %79 = vector.load %arg7[%c2_74, %c0_75, %c0_76] : memref<9x8x8xf32, #tpu.memory_space<vmem>>, vector<1x8x8xf32>
    %80 = vector.shape_cast %79 : vector<1x8x8xf32> to vector<8x8xf32>
    %cst_77 = arith.constant dense<0.000000e+00> : vector<160x8xf32>
    %81 = tpu.matmul %78, %80, %cst_77 {dimension_numbers = #tpu.dot_dimension_numbers<[1], [0], [0], [1], [0, 0, 1, 1], [], []>} : vector<160x8xf32>, vector<8x8xf32>, vector<160x8xf32> -> vector<160x8xf32>
    %82 = arith.addf %77, %81 : vector<160x8xf32>
    %83 = vector.extract_strided_slice %66 {offsets = [20, 0], sizes = [160, 8], strides = [1, 1]} : vector<208x8xf32> to vector<160x8xf32>
    %c3_78 = arith.constant 3 : index
    %c0_79 = arith.constant 0 : index
    %c0_80 = arith.constant 0 : index
    %84 = vector.load %arg7[%c3_78, %c0_79, %c0_80] : memref<9x8x8xf32, #tpu.memory_space<vmem>>, vector<1x8x8xf32>
    %85 = vector.shape_cast %84 : vector<1x8x8xf32> to vector<8x8xf32>
    %cst_81 = arith.constant dense<0.000000e+00> : vector<160x8xf32>
    %86 = tpu.matmul %83, %85, %cst_81 {dimension_numbers = #tpu.dot_dimension_numbers<[1], [0], [0], [1], [0, 0, 1, 1], [], []>} : vector<160x8xf32>, vector<8x8xf32>, vector<160x8xf32> -> vector<160x8xf32>
    %87 = arith.addf %82, %86 : vector<160x8xf32>
    %88 = vector.extract_strided_slice %66 {offsets = [21, 0], sizes = [160, 8], strides = [1, 1]} : vector<208x8xf32> to vector<160x8xf32>
    %c4_82 = arith.constant 4 : index
    %c0_83 = arith.constant 0 : index
    %c0_84 = arith.constant 0 : index
    %89 = vector.load %arg7[%c4_82, %c0_83, %c0_84] : memref<9x8x8xf32, #tpu.memory_space<vmem>>, vector<1x8x8xf32>
    %90 = vector.shape_cast %89 : vector<1x8x8xf32> to vector<8x8xf32>
    %cst_85 = arith.constant dense<0.000000e+00> : vector<160x8xf32>
    %91 = tpu.matmul %88, %90, %cst_85 {dimension_numbers = #tpu.dot_dimension_numbers<[1], [0], [0], [1], [0, 0, 1, 1], [], []>} : vector<160x8xf32>, vector<8x8xf32>, vector<160x8xf32> -> vector<160x8xf32>
    %92 = arith.addf %87, %91 : vector<160x8xf32>
    %93 = vector.extract_strided_slice %66 {offsets = [22, 0], sizes = [160, 8], strides = [1, 1]} : vector<208x8xf32> to vector<160x8xf32>
    %c5_86 = arith.constant 5 : index
    %c0_87 = arith.constant 0 : index
    %c0_88 = arith.constant 0 : index
    %94 = vector.load %arg7[%c5_86, %c0_87, %c0_88] : memref<9x8x8xf32, #tpu.memory_space<vmem>>, vector<1x8x8xf32>
    %95 = vector.shape_cast %94 : vector<1x8x8xf32> to vector<8x8xf32>
    %cst_89 = arith.constant dense<0.000000e+00> : vector<160x8xf32>
    %96 = tpu.matmul %93, %95, %cst_89 {dimension_numbers = #tpu.dot_dimension_numbers<[1], [0], [0], [1], [0, 0, 1, 1], [], []>} : vector<160x8xf32>, vector<8x8xf32>, vector<160x8xf32> -> vector<160x8xf32>
    %97 = arith.addf %92, %96 : vector<160x8xf32>
    %98 = vector.extract_strided_slice %66 {offsets = [40, 0], sizes = [160, 8], strides = [1, 1]} : vector<208x8xf32> to vector<160x8xf32>
    %c6_90 = arith.constant 6 : index
    %c0_91 = arith.constant 0 : index
    %c0_92 = arith.constant 0 : index
    %99 = vector.load %arg7[%c6_90, %c0_91, %c0_92] : memref<9x8x8xf32, #tpu.memory_space<vmem>>, vector<1x8x8xf32>
    %100 = vector.shape_cast %99 : vector<1x8x8xf32> to vector<8x8xf32>
    %cst_93 = arith.constant dense<0.000000e+00> : vector<160x8xf32>
    %101 = tpu.matmul %98, %100, %cst_93 {dimension_numbers = #tpu.dot_dimension_numbers<[1], [0], [0], [1], [0, 0, 1, 1], [], []>} : vector<160x8xf32>, vector<8x8xf32>, vector<160x8xf32> -> vector<160x8xf32>
    %102 = arith.addf %97, %101 : vector<160x8xf32>
    %103 = vector.extract_strided_slice %66 {offsets = [41, 0], sizes = [160, 8], strides = [1, 1]} : vector<208x8xf32> to vector<160x8xf32>
    %c7_94 = arith.constant 7 : index
    %c0_95 = arith.constant 0 : index
    %c0_96 = arith.constant 0 : index
    %104 = vector.load %arg7[%c7_94, %c0_95, %c0_96] : memref<9x8x8xf32, #tpu.memory_space<vmem>>, vector<1x8x8xf32>
    %105 = vector.shape_cast %104 : vector<1x8x8xf32> to vector<8x8xf32>
    %cst_97 = arith.constant dense<0.000000e+00> : vector<160x8xf32>
    %106 = tpu.matmul %103, %105, %cst_97 {dimension_numbers = #tpu.dot_dimension_numbers<[1], [0], [0], [1], [0, 0, 1, 1], [], []>} : vector<160x8xf32>, vector<8x8xf32>, vector<160x8xf32> -> vector<160x8xf32>
    %107 = arith.addf %102, %106 : vector<160x8xf32>
    %108 = vector.extract_strided_slice %66 {offsets = [42, 0], sizes = [160, 8], strides = [1, 1]} : vector<208x8xf32> to vector<160x8xf32>
    %c8_98 = arith.constant 8 : index
    %c0_99 = arith.constant 0 : index
    %c0_100 = arith.constant 0 : index
    %109 = vector.load %arg7[%c8_98, %c0_99, %c0_100] : memref<9x8x8xf32, #tpu.memory_space<vmem>>, vector<1x8x8xf32>
    %110 = vector.shape_cast %109 : vector<1x8x8xf32> to vector<8x8xf32>
    %cst_101 = arith.constant dense<0.000000e+00> : vector<160x8xf32>
    %111 = tpu.matmul %108, %110, %cst_101 {dimension_numbers = #tpu.dot_dimension_numbers<[1], [0], [0], [1], [0, 0, 1, 1], [], []>} : vector<160x8xf32>, vector<8x8xf32>, vector<160x8xf32> -> vector<160x8xf32>
    %112 = arith.addf %107, %111 : vector<160x8xf32>
    %c0_102 = arith.constant 0 : index
    %c0_103 = arith.constant 0 : index
    %113 = vector.load %arg8[%c0_102, %c0_103] : memref<1x8xf32, #tpu.memory_space<vmem>>, vector<1x8xf32>
    %114 = vector.broadcast %113 : vector<1x8xf32> to vector<160x8xf32>
    %115 = arith.mulf %112, %114 : vector<160x8xf32>
    %c0_104 = arith.constant 0 : index
    %c0_105 = arith.constant 0 : index
    %116 = vector.load %arg9[%c0_104, %c0_105] : memref<1x8xf32, #tpu.memory_space<vmem>>, vector<1x8xf32>
    %117 = vector.broadcast %116 : vector<1x8xf32> to vector<160x8xf32>
    %118 = arith.addf %115, %117 : vector<160x8xf32>
    %cst_106 = arith.constant 0.000000e+00 : f32
    %119 = vector.broadcast %cst_106 : f32 to vector<160x8xf32>
    %120 = arith.maximumf %118, %119 : vector<160x8xf32>
    %121 = vector.extract_strided_slice %120 {offsets = [0, 0], sizes = [16, 8], strides = [1, 1]} : vector<160x8xf32> to vector<16x8xf32>
    %c0_107 = arith.constant 0 : index
    %c0_108 = arith.constant 0 : index
    %c0_109 = arith.constant 0 : index
    %c0_110 = arith.constant 0 : index
    %122 = vector.load %arg10[%c0_107, %c0_108, %c0_109, %c0_110] : memref<1x8x16x8xf32, #tpu.memory_space<vmem>>, vector<1x1x16x8xf32>
    %123 = vector.shape_cast %122 : vector<1x1x16x8xf32> to vector<16x8xf32>
    %124 = vector.shape_cast %121 : vector<16x8xf32> to vector<1x1x16x8xf32>
    tpu.vector_store %arg10[%c0_107, %c0_108, %c0_109, %c0_110], %124 {strides = array<i32>} : memref<1x8x16x8xf32, #tpu.memory_space<vmem>>, vector<1x1x16x8xf32>,
    %125 = vector.extract_strided_slice %120 {offsets = [20, 0], sizes = [16, 8], strides = [1, 1]} : vector<160x8xf32> to vector<16x8xf32>
    %c0_111 = arith.constant 0 : index
    %c1_112 = arith.constant 1 : index
    %c0_113 = arith.constant 0 : index
    %c0_114 = arith.constant 0 : index
    %126 = vector.load %arg10[%c0_111, %c1_112, %c0_113, %c0_114] : memref<1x8x16x8xf32, #tpu.memory_space<vmem>>, vector<1x1x16x8xf32>
    %127 = vector.shape_cast %126 : vector<1x1x16x8xf32> to vector<16x8xf32>
    %128 = vector.shape_cast %125 : vector<16x8xf32> to vector<1x1x16x8xf32>
    tpu.vector_store %arg10[%c0_111, %c1_112, %c0_113, %c0_114], %128 {strides = array<i32>} : memref<1x8x16x8xf32, #tpu.memory_space<vmem>>, vector<1x1x16x8xf32>,
    %129 = vector.extract_strided_slice %120 {offsets = [40, 0], sizes = [16, 8], strides = [1, 1]} : vector<160x8xf32> to vector<16x8xf32>
    %c0_115 = arith.constant 0 : index
    %c2_116 = arith.constant 2 : index
    %c0_117 = arith.constant 0 : index
    %c0_118 = arith.constant 0 : index
    %130 = vector.load %arg10[%c0_115, %c2_116, %c0_117, %c0_118] : memref<1x8x16x8xf32, #tpu.memory_space<vmem>>, vector<1x1x16x8xf32>
    %131 = vector.shape_cast %130 : vector<1x1x16x8xf32> to vector<16x8xf32>
    %132 = vector.shape_cast %129 : vector<16x8xf32> to vector<1x1x16x8xf32>
    tpu.vector_store %arg10[%c0_115, %c2_116, %c0_117, %c0_118], %132 {strides = array<i32>} : memref<1x8x16x8xf32, #tpu.memory_space<vmem>>, vector<1x1x16x8xf32>,
    %133 = vector.extract_strided_slice %120 {offsets = [60, 0], sizes = [16, 8], strides = [1, 1]} : vector<160x8xf32> to vector<16x8xf32>
    %c0_119 = arith.constant 0 : index
    %c3_120 = arith.constant 3 : index
    %c0_121 = arith.constant 0 : index
    %c0_122 = arith.constant 0 : index
    %134 = vector.load %arg10[%c0_119, %c3_120, %c0_121, %c0_122] : memref<1x8x16x8xf32, #tpu.memory_space<vmem>>, vector<1x1x16x8xf32>
    %135 = vector.shape_cast %134 : vector<1x1x16x8xf32> to vector<16x8xf32>
    %136 = vector.shape_cast %133 : vector<16x8xf32> to vector<1x1x16x8xf32>
    tpu.vector_store %arg10[%c0_119, %c3_120, %c0_121, %c0_122], %136 {strides = array<i32>} : memref<1x8x16x8xf32, #tpu.memory_space<vmem>>, vector<1x1x16x8xf32>,
    %137 = vector.extract_strided_slice %120 {offsets = [80, 0], sizes = [16, 8], strides = [1, 1]} : vector<160x8xf32> to vector<16x8xf32>
    %c0_123 = arith.constant 0 : index
    %c4_124 = arith.constant 4 : index
    %c0_125 = arith.constant 0 : index
    %c0_126 = arith.constant 0 : index
    %138 = vector.load %arg10[%c0_123, %c4_124, %c0_125, %c0_126] : memref<1x8x16x8xf32, #tpu.memory_space<vmem>>, vector<1x1x16x8xf32>
    %139 = vector.shape_cast %138 : vector<1x1x16x8xf32> to vector<16x8xf32>
    %140 = vector.shape_cast %137 : vector<16x8xf32> to vector<1x1x16x8xf32>
    tpu.vector_store %arg10[%c0_123, %c4_124, %c0_125, %c0_126], %140 {strides = array<i32>} : memref<1x8x16x8xf32, #tpu.memory_space<vmem>>, vector<1x1x16x8xf32>,
    %141 = vector.extract_strided_slice %120 {offsets = [100, 0], sizes = [16, 8], strides = [1, 1]} : vector<160x8xf32> to vector<16x8xf32>
    %c0_127 = arith.constant 0 : index
    %c5_128 = arith.constant 5 : index
    %c0_129 = arith.constant 0 : index
    %c0_130 = arith.constant 0 : index
    %142 = vector.load %arg10[%c0_127, %c5_128, %c0_129, %c0_130] : memref<1x8x16x8xf32, #tpu.memory_space<vmem>>, vector<1x1x16x8xf32>
    %143 = vector.shape_cast %142 : vector<1x1x16x8xf32> to vector<16x8xf32>
    %144 = vector.shape_cast %141 : vector<16x8xf32> to vector<1x1x16x8xf32>
    tpu.vector_store %arg10[%c0_127, %c5_128, %c0_129, %c0_130], %144 {strides = array<i32>} : memref<1x8x16x8xf32, #tpu.memory_space<vmem>>, vector<1x1x16x8xf32>,
    %145 = vector.extract_strided_slice %120 {offsets = [120, 0], sizes = [16, 8], strides = [1, 1]} : vector<160x8xf32> to vector<16x8xf32>
    %c0_131 = arith.constant 0 : index
    %c6_132 = arith.constant 6 : index
    %c0_133 = arith.constant 0 : index
    %c0_134 = arith.constant 0 : index
    %146 = vector.load %arg10[%c0_131, %c6_132, %c0_133, %c0_134] : memref<1x8x16x8xf32, #tpu.memory_space<vmem>>, vector<1x1x16x8xf32>
    %147 = vector.shape_cast %146 : vector<1x1x16x8xf32> to vector<16x8xf32>
    %148 = vector.shape_cast %145 : vector<16x8xf32> to vector<1x1x16x8xf32>
    tpu.vector_store %arg10[%c0_131, %c6_132, %c0_133, %c0_134], %148 {strides = array<i32>} : memref<1x8x16x8xf32, #tpu.memory_space<vmem>>, vector<1x1x16x8xf32>,
    %149 = vector.extract_strided_slice %120 {offsets = [140, 0], sizes = [16, 8], strides = [1, 1]} : vector<160x8xf32> to vector<16x8xf32>
    %c0_135 = arith.constant 0 : index
    %c7_136 = arith.constant 7 : index
    %c0_137 = arith.constant 0 : index
    %c0_138 = arith.constant 0 : index
    %150 = vector.load %arg10[%c0_135, %c7_136, %c0_137, %c0_138] : memref<1x8x16x8xf32, #tpu.memory_space<vmem>>, vector<1x1x16x8xf32>
    %151 = vector.shape_cast %150 : vector<1x1x16x8xf32> to vector<16x8xf32>
    %152 = vector.shape_cast %149 : vector<16x8xf32> to vector<1x1x16x8xf32>
    tpu.vector_store %arg10[%c0_135, %c7_136, %c0_137, %c0_138], %152 {strides = array<i32>} : memref<1x8x16x8xf32, #tpu.memory_space<vmem>>, vector<1x1x16x8xf32>,
    return
  }
  func.func @transform_0(%arg0: i32, %arg1: i32) -> (i32, i32, i32, i32) {
    %c0_i32 = arith.constant 0 : i32
    %c0_i32_0 = arith.constant 0 : i32
    %c0_i32_1 = arith.constant 0 : i32
    return %arg0, %arg1, %c0_i32, %c0_i32_0 : i32, i32, i32, i32
  }
  func.func @transform_1(%arg0: i32, %arg1: i32) -> (i32, i32, i32) {
    %c0_i32 = arith.constant 0 : i32
    %c0_i32_0 = arith.constant 0 : i32
    %c0_i32_1 = arith.constant 0 : i32
    return %arg1, %c0_i32, %c0_i32_0 : i32, i32, i32
  }
  func.func @transform_2(%arg0: i32, %arg1: i32) -> (i32, i32, i32) {
    %c0_i32 = arith.constant 0 : i32
    %c0_i32_0 = arith.constant 0 : i32
    %c0_i32_1 = arith.constant 0 : i32
    %c0_i32_2 = arith.constant 0 : i32
    return %c0_i32, %c0_i32_0, %c0_i32_1 : i32, i32, i32
  }
  func.func @transform_3(%arg0: i32, %arg1: i32) -> (i32, i32) {
    %c0_i32 = arith.constant 0 : i32
    %c0_i32_0 = arith.constant 0 : i32
    %c0_i32_1 = arith.constant 0 : i32
    return %c0_i32, %c0_i32_0 : i32, i32
  }
  func.func @transform_4(%arg0: i32, %arg1: i32) -> (i32, i32) {
    %c0_i32 = arith.constant 0 : i32
    %c0_i32_0 = arith.constant 0 : i32
    %c0_i32_1 = arith.constant 0 : i32
    return %c0_i32, %c0_i32_0 : i32, i32
  }
  func.func @transform_5(%arg0: i32, %arg1: i32) -> (i32, i32, i32) {
    %c0_i32 = arith.constant 0 : i32
    %c0_i32_0 = arith.constant 0 : i32
    %c0_i32_1 = arith.constant 0 : i32
    %c0_i32_2 = arith.constant 0 : i32
    return %c0_i32, %c0_i32_0, %c0_i32_1 : i32, i32, i32
  }
  func.func @transform_6(%arg0: i32, %arg1: i32) -> (i32, i32) {
    %c0_i32 = arith.constant 0 : i32
    %c0_i32_0 = arith.constant 0 : i32
    %c0_i32_1 = arith.constant 0 : i32
    return %c0_i32, %c0_i32_0 : i32, i32
  }
  func.func @transform_7(%arg0: i32, %arg1: i32) -> (i32, i32) {
    %c0_i32 = arith.constant 0 : i32
    %c0_i32_0 = arith.constant 0 : i32
    %c0_i32_1 = arith.constant 0 : i32
    return %c0_i32, %c0_i32_0 : i32, i32
  }
  func.func @transform_8(%arg0: i32, %arg1: i32) -> (i32, i32, i32, i32) {
    %c0_i32 = arith.constant 0 : i32
    %c0_i32_0 = arith.constant 0 : i32
    %c0_i32_1 = arith.constant 0 : i32
    return %arg0, %arg1, %c0_i32, %c0_i32_0 : i32, i32, i32, i32
  }
}

</mosaic_0001>

<bundles_post_ra>
// kernel: _lambda_.1
= control target key start
LH: loop header
LB: loop body
LE: loop exit
PB: predicated region body
PF: predicated region fallthrough
CT: control target
= control target key end

     0   :  { %s7637_s27 = smov 0   ;;  %s7639_s28 = smov 0   ;;  %s10301_s0 = inlined_call_operand.vmem [shape: f32[2,2,256,4], index: 0, kind: input, shape index: {}]   ;;  %s10302_s1 = inlined_call_operand.vmem [shape: f32[2,208,1], index: 1, kind: input, shape index: {}]   ;;  %s10303_s2 = inlined_call_operand.vmem [shape: f32[9,4,8], index: 2, kind: input, shape index: {}]   ;;  %s10304_s3 = inlined_call_operand.vmem [shape: f32[1,8], index: 3, kind: input, shape index: {}]   ;;  %s10305_s4 = inlined_call_operand.vmem [shape: f32[1,8], index: 4, kind: input, shape index: {}]   ;;  %s10306_s5 = inlined_call_operand.vmem [shape: f32[9,8,8], index: 5, kind: input, shape index: {}]   ;;  %s10307_s6 = inlined_call_operand.vmem [shape: f32[1,8], index: 6, kind: input, shape index: {}]   ;;  %s10308_s7 = inlined_call_operand.vmem [shape: f32[1,8], index: 7, kind: input, shape index: {}]   ;;  %s10309_s8 = inlined_call_operand.vmem [shape: f32[2,16,16,8], index: 8, kind: output, shape index: {}]  }
   0x1   :  { %s7641_s29 = smov 0   ;;  %s7643_s30 = smov 0  }
   0x2   :  { %s7645_s9 = smov 0  }
   0x3 LB: > { %s27_s10 = sadd.s32 1, %s7581_s29  ;;  %s30_s11 = sadd.s32 1, %s7585_s30  ;;  %s7589_s9 = sphi %s7645_s9, %s18_s9   ;;  %s7585_s30 = sphi %s7643_s30, %s10552_s30   ;;  %s7581_s29 = sphi %s7641_s29, %s10551_s29   ;;  %s7577_s28 = sphi %s7639_s28, %s10550_s28   ;;  %s7573_s27 = sphi %s7637_s27, %s10549_s27  }
   0x4   : > { %p28_p0 = scmp.ge.s32.totalorder %s27_s10, 2  ;;  %p5944_p1 = scmp.ge.s32.totalorder %s7589_s9, 1 }
   0x5   : > { %p292_p2 = scmp.lt.s32.totalorder %s7589_s9, 5 }
   0x6   : > { %s10554_s10 = smov (%p28_p0, %s27_s10), 0  ;;  %s10556_s11 = smov (!%p28_p0, %s30_s11), %s7585_s30 }
   0x7   : > { %p293_p3 = pnand %p5944_p1, %p292_p2  ;;  %p32_p4 = scmp.ge.s32.totalorder %s10556_s11, 2 }
   0x9   : > { %s10558_s11 = smov (%p32_p4, %s10556_s11), 0  ;;  %296 = sbr.rel (%p293_p3) target bundleno = 850 (0x352), region = 52 }
   0xe   : > { %v5953_v0 = vld [vmem:[%s10303_s2 + $0x4] sm:$0xf]  ;;  %vm499_vm0 = vcmask 1043456   ;;  %p340_p5 = scmp.lt.s32.totalorder %s7577_s28, 1  ;;  %p342_p6 = scmp.lt.s32.totalorder %s7573_s27, 1  ;;  %vm420_vm1 = vcmask 31744  }
   0xf   : > { %6848 = vmatprep.subr.msk.mxu0 %vm499_vm0, %v5953_v0  ;;  %7505 = vmatprep.subr.msk.mxu1 %vm499_vm0, %v5953_v0  ;;  %v6008_v1 = vld [vmem:[%s10303_s2 + $0x8] sm:$0xf]  ;;  %v391_v2 = vld [vmem:[%s10303_s2] sm:$0xf]  ;;  %v6036_v9 = vld [vmem:[%s10303_s2 + $0xc] sm:$0xf] }
  0x10   : > { %6849 = vmatpush3.msk.msra.mxu0 %vm499_vm0, %v5953_v0  ;;  %7506 = vmatpush3.msk.msra.mxu1 %vm499_vm0, %v5953_v0  ;;  %s10560_s28 = smov (!%p340_p5, %s7577_s28), 1  ;;  %v7719_v10 = vld [vmem:[%s10303_s2 + $0x10] sm:$0xf]  ;;  %v7737_v15 = vld [vmem:[%s10303_s2 + $0x14] sm:$0xf]  ;;  %vm3582_vm2 = vcmask 1046528  }
  0x11   : > { %s7686_s18 = scalar_select %p342_p6, %s7573_s27, 1  ;;  %6930 = vmatprep.subr.msk.mxu0 %vm499_vm0, %v6008_v1  ;;  %6889 = vmatprep.subr.msk.mxu1 %vm499_vm0, %v391_v2  ;;  %v7946_v60 = vld [vmem:[%s10303_s2 + $0x18] sm:$0xf]  ;;  %vm4037_vm3 = vcmask 1045504   ;;  %vm3624_vm4 = vcmask 64512   ;;  %vm4576_vm5 = vcmask 1042432  }
  0x12   : > { %s5946_s19 = sshll.u32 %s10560_s28, 6  ;;  %vm4845_vm6 = vcmask 1041408   ;;  %vm5803_vm7 = vcmask 64516   ;;  %vm5806_vm8 = vcmask 60416  }
  0x13   : > { %s5945_s20 = sshll.u32 %s7686_s18, 5  ;;  %s7507_s24 = smul.u32 208, %s7686_s18 }
  0x14   : > { %s346_s21 = sadd.s32 %s5946_s19, %s5945_s20  ;;  %s5949_s20 = sshll.u32 %s7573_s27, 3 }
  0x15   : > { %s5947_s22 = sshll.u32 %s346_s21, 3  ;;  %s8156_s13 = scalar_lea.vmem %s10302_s1, %s7507_s24 }
  0x16   : > { %s7695_s25 = scalar_lea.vmem %s10301_s0, %s5947_s22  ;;  %p357_p7 = scmp.lt.s32.totalorder %s5949_s20, 15 }
  0x17   : > { %v392_v3 = vld [vmem:[%s7695_s25 + $0x1] sm:$0xff]  ;;  %v393_v5 = vld [vmem:[%s7695_s25 + $0x9] sm:$0xff]  ;;  %v394_v7 = vld [vmem:[%s7695_s25 + $0x11] sm:$0xff]  ;;  %s5951_s21 = sshll.u32 %s10560_s28, 5 }
  0x18   : > { %v7699_v4 = vld [vmem:[%s7695_s25 + $0xc1] sm:$0xff]  ;;  %6850 = vmatprep.mubr.msk.f32.mxu0 %vm420_vm1, %v392_v3  ;;  %v7706_v6 = vld [vmem:[%s7695_s25 + $0xc9] sm:$0xff]  ;;  %v395_v11 = vld [vmem:[%s7695_s25 + $0x19] sm:$0xff]  ;;  %s10562_s20 = smov (!%p357_p7, %s5949_s20), 15 }
  0x19   : > { %6886 = vmatprep.mubr.msk.f32.mxu1 %vm420_vm1, %v7699_v4  ;;  %v365_v8 = vld [vmem:[%s7695_s25] sm:$0xff]  ;;  %6851 = vmatmul.mubr.msk.f32.vlgmr.msra.gmra.mxu0 %vm420_vm1, %v393_v5  ;;  %v366_v12 = vld [vmem:[%s7695_s25 + $0x8] sm:$0xff]  ;;  %v367_v14 = vld [vmem:[%s7695_s25 + $0x10] sm:$0xff]  ;;  %s5950_s27 = sshll.u32 %s10562_s20, 1 }
  0x1a   : > { %6887 = vmatmul.mubr.msk.f32.vlgmr.msra.gmra.mxu1 %vm420_vm1, %v7706_v6  ;;  %6931 = vmatpush3.msk.msra.mxu0 %vm499_vm0, %v6008_v1  ;;  %v396_v13 = vld [vmem:[%s7695_s25 + $0x21] sm:$0xff]  ;;  %v7742_v16 = vld [vmem:[%s7695_s25 + $0x29] sm:$0xff]  ;;  %v368_v17 = vld [vmem:[%s7695_s25 + $0x18] sm:$0xff]  ;;  %s361_s22 = sadd.s32 %s5951_s21, %s5950_s27 }
  0x1b   : > { %6853 = vmatprep.mubr.msk.f32.mxu0 %vm420_vm1, %v394_v7  ;;  %6890 = vmatpush3.msk.msra.mxu1 %vm499_vm0, %v391_v2  ;;  %v7746_v18 = vld [vmem:[%s7695_s25 + $0x31] sm:$0xff]  ;;  %v369_v19 = vld [vmem:[%s7695_s25 + $0x20] sm:$0xff]  ;;  %v7762_v21 = vld [vmem:[%s7695_s25 + $0x28] sm:$0xff]  ;;  %s5952_s12 = sshll.u32 %s361_s22, 3 }
  0x1c   : > { %6891 = vmatprep.mubr.msk.f32.mxu1 %vm420_vm1, %v365_v8  ;;  %6971 = vmatprep.subr.msk.mxu1 %vm499_vm0, %v6036_v9  ;;  %v7759_v20 = vld [vmem:[%s7695_s25 + $0x39] sm:$0xff]  ;;  %v7765_v22 = vld [vmem:[%s7695_s25 + $0x41] sm:$0xff]  ;;  %v7768_v23 = vld [vmem:[%s7695_s25 + $0x30] sm:$0xff]  ;;  %s10154_s14 = scalar_lea.vmem %s10309_s8, %s5952_s12 }
  0x1d   : > { %7012 = vmatprep.subr.msk.mxu0 %vm499_vm0, %v7719_v10  ;;  %6854 = vmatmul.mubr.msk.f32.gmra.mxu0 %vm420_vm1, %v395_v11  ;;  %v7779_v24 = vld [vmem:[%s7695_s25 + $0x49] sm:$0xff]  ;;  %v7782_v25 = vld [vmem:[%s7695_s25 + $0x38] sm:$0xff]  ;;  %v7788_v27 = vld [vmem:[%s7695_s25 + $0x40] sm:$0xff] }
  0x1e   : > { %6892 = vmatmul.mubr.msk.f32.vlgmr.msra.gmra.mxu1 %vm420_vm1, %v366_v12  ;;  %6856 = vmatprep.mubr.msk.f32.mxu0 %vm420_vm1, %v396_v13  ;;  %v7785_v26 = vld [vmem:[%s7695_s25 + $0x51] sm:$0xff]  ;;  %v7799_v28 = vld [vmem:[%s7695_s25 + $0x59] sm:$0xff]  ;;  %v7802_v29 = vld [vmem:[%s7695_s25 + $0x48] sm:$0xff] }
  0x1f   : > { %6894 = vmatprep.mubr.msk.f32.mxu1 %vm420_vm1, %v367_v14  ;;  %6972 = vmatpush3.msk.msra.mxu1 %vm499_vm0, %v6036_v9  ;;  %v7805_v30 = vld [vmem:[%s7695_s25 + $0x61] sm:$0xff]  ;;  %v7808_v31 = vld [vmem:[%s7695_s25 + $0x50] sm:$0xff]  ;;  %v7822_v33 = vld [vmem:[%s7695_s25 + $0x58] sm:$0xff] }
  0x20   : > { %7053 = vmatprep.subr.msk.mxu1 %vm499_vm0, %v7737_v15  ;;  %v7819_v32 = vld [vmem:[%s7695_s25 + $0x69] sm:$0xff]  ;;  %v7825_v34 = vld [vmem:[%s7695_s25 + $0x71] sm:$0xff]  ;;  %v7828_v35 = vld [vmem:[%s7695_s25 + $0x60] sm:$0xff] }
  0x21   : > { %6857 = vmatmul.mubr.msk.f32.gmra.mxu0 %vm420_vm1, %v7742_v16  ;;  %v7839_v36 = vld [vmem:[%s7695_s25 + $0x79] sm:$0xff]  ;;  %v7842_v37 = vld [vmem:[%s7695_s25 + $0x68] sm:$0xff]  ;;  %v7848_v39 = vld [vmem:[%s7695_s25 + $0x70] sm:$0xff] }
  0x22   : > { %6895 = vmatmul.mubr.msk.f32.gmra.mxu1 %vm420_vm1, %v368_v17  ;;  %6859 = vmatprep.mubr.msk.f32.mxu0 %vm420_vm1, %v7746_v18  ;;  %v7845_v38 = vld [vmem:[%s7695_s25 + $0x81] sm:$0xff]  ;;  %v7859_v40 = vld [vmem:[%s7695_s25 + $0x89] sm:$0xff]  ;;  %v7862_v41 = vld [vmem:[%s7695_s25 + $0x78] sm:$0xff] }
  0x23   : > { %6897 = vmatprep.mubr.msk.f32.mxu1 %vm420_vm1, %v369_v19  ;;  %v7865_v42 = vld [vmem:[%s7695_s25 + $0x91] sm:$0xff]  ;;  %v7868_v43 = vld [vmem:[%s7695_s25 + $0x80] sm:$0xff]  ;;  %v7882_v45 = vld [vmem:[%s7695_s25 + $0x88] sm:$0xff] }
  0x24   : > { %v7879_v44 = vld [vmem:[%s7695_s25 + $0x99] sm:$0xff]  ;;  %v7885_v46 = vld [vmem:[%s7695_s25 + $0xa1] sm:$0xff]  ;;  %v7888_v47 = vld [vmem:[%s7695_s25 + $0x90] sm:$0xff] }
  0x25   : > { %6860 = vmatmul.mubr.msk.f32.gmra.mxu0 %vm420_vm1, %v7759_v20  ;;  %v7899_v48 = vld [vmem:[%s7695_s25 + $0xa9] sm:$0xff]  ;;  %v7902_v49 = vld [vmem:[%s7695_s25 + $0x98] sm:$0xff]  ;;  %v7908_v51 = vld [vmem:[%s7695_s25 + $0xa0] sm:$0xff] }
  0x26   : > { %6898 = vmatmul.mubr.msk.f32.gmra.mxu1 %vm420_vm1, %v7762_v21  ;;  %6862 = vmatprep.mubr.msk.f32.mxu0 %vm420_vm1, %v7765_v22  ;;  %v7905_v50 = vld [vmem:[%s7695_s25 + $0xb1] sm:$0xff]  ;;  %v7919_v52 = vld [vmem:[%s7695_s25 + $0xb9] sm:$0xff]  ;;  %v7922_v53 = vld [vmem:[%s7695_s25 + $0xa8] sm:$0xff] }
  0x27   : > { %6900 = vmatprep.mubr.msk.f32.mxu1 %vm420_vm1, %v7768_v23  ;;  %v7925_v54 = vld [vmem:[%s7695_s25 + $0xb0] sm:$0xff]  ;;  %v974_v55 = vld [vmem:[%s7695_s25 + $0x2] sm:$0xff]  ;;  %v7936_v56 = vld [vmem:[%s7695_s25 + $0xb8] sm:$0xff] }
  0x28   : > { %v975_v57 = vld [vmem:[%s7695_s25 + $0xa] sm:$0xff]  ;;  %v7940_v58 = vld [vmem:[%s7695_s25 + $0xc0] sm:$0xff]  ;;  %v976_v59 = vld [vmem:[%s7695_s25 + $0x12] sm:$0xff] }
  0x29   : > { %6863 = vmatmul.mubr.msk.f32.gmra.mxu0 %vm420_vm1, %v7779_v24  ;;  %v7956_v61 = vld [vmem:[%s7695_s25 + $0xc8] sm:$0xff]  ;;  %v977_v62 = vld [vmem:[%s7695_s25 + $0x1a] sm:$0xff]  ;;  %v7974_v3 = vld [vmem:[%s7695_s25 + $0x32] sm:$0xff] }
  0x2a   : > { %6901 = vmatmul.mubr.msk.f32.gmra.mxu1 %vm420_vm1, %v7782_v25  ;;  %6865 = vmatprep.mubr.msk.f32.mxu0 %vm420_vm1, %v7785_v26  ;;  %v978_v63 = vld [vmem:[%s7695_s25 + $0x22] sm:$0xff]  ;;  %v1304_v0 = vld [vmem:[%s7695_s25 + $0x14] sm:$0xff]  ;;  %v7970_v1 = vld [vmem:[%s7695_s25 + $0x2a] sm:$0xff] }
  0x2b   : > { %6903 = vmatprep.mubr.msk.f32.mxu1 %vm420_vm1, %v7788_v27  ;;  %v1305_v2 = vld [vmem:[%s7695_s25 + $0x1c] sm:$0xff]  ;;  %v1306_v5 = vld [vmem:[%s7695_s25 + $0x24] sm:$0xff]  ;;  %v1307_v9 = vld [vmem:[%s7695_s25 + $0x2c] sm:$0xff] }
  0x2c   : > { %v7983_v7 = vld [vmem:[%s10303_s2 + $0x1c] sm:$0xf]  ;;  %v1308_v11 = vld [vmem:[%s7695_s25 + $0x34] sm:$0xff]  ;;  %v8007_v12 = vld [vmem:[%s7695_s25 + $0x4a] sm:$0xff] }
  0x2d   : > { %6866 = vmatmul.mubr.msk.f32.gmra.mxu0 %vm420_vm1, %v7799_v28  ;;  %v7989_v8 = vld [vmem:[%s7695_s25 + $0x3a] sm:$0xff]  ;;  %v8011_v14 = vld [vmem:[%s7695_s25 + $0x52] sm:$0xff] }
  0x2e   : > { %6904 = vmatmul.mubr.msk.f32.gmra.mxu1 %vm420_vm1, %v7802_v29  ;;  %6868 = vmatprep.mubr.msk.f32.mxu0 %vm420_vm1, %v7805_v30  ;;  %v1309_v13 = vld [vmem:[%s7695_s25 + $0x3c] sm:$0xff]  ;;  %v1311_v19 = vld [vmem:[%s7695_s25 + $0x4c] sm:$0xff] }
  0x2f   : > { %6906 = vmatprep.mubr.msk.f32.mxu1 %vm420_vm1, %v7808_v31  ;;  %v8021_v17 = vld [vmem:[%s7695_s25 + $0x5a] sm:$0xff] }
  0x31   : > { %6869 = vmatmul.mubr.msk.f32.gmra.mxu0 %vm420_vm1, %v7819_v32 }
  0x32   : > { %6907 = vmatmul.mubr.msk.f32.gmra.mxu1 %vm420_vm1, %v7822_v33  ;;  %6871 = vmatprep.mubr.msk.f32.mxu0 %vm420_vm1, %v7825_v34 }
  0x33   : > { %6909 = vmatprep.mubr.msk.f32.mxu1 %vm420_vm1, %v7828_v35 }
  0x35   : > { %6872 = vmatmul.mubr.msk.f32.gmra.mxu0 %vm420_vm1, %v7839_v36 }
  0x36   : > { %6910 = vmatmul.mubr.msk.f32.gmra.mxu1 %vm420_vm1, %v7842_v37  ;;  %6874 = vmatprep.mubr.msk.f32.mxu0 %vm420_vm1, %v7845_v38 }
  0x37   : > { %6912 = vmatprep.mubr.msk.f32.mxu1 %vm420_vm1, %v7848_v39 }
  0x39   : > { %6875 = vmatmul.mubr.msk.f32.gmra.mxu0 %vm420_vm1, %v7859_v40 }
  0x3a   : > { %6913 = vmatmul.mubr.msk.f32.gmra.mxu1 %vm420_vm1, %v7862_v41  ;;  %6877 = vmatprep.mubr.msk.f32.mxu0 %vm420_vm1, %v7865_v42 }
  0x3b   : > { %6915 = vmatprep.mubr.msk.f32.mxu1 %vm420_vm1, %v7868_v43 }
  0x3d   : > { %6878 = vmatmul.mubr.msk.f32.gmra.mxu0 %vm420_vm1, %v7879_v44 }
  0x3e   : > { %6916 = vmatmul.mubr.msk.f32.gmra.mxu1 %vm420_vm1, %v7882_v45  ;;  %6880 = vmatprep.mubr.msk.f32.mxu0 %vm420_vm1, %v7885_v46 }
  0x3f   : > { %6918 = vmatprep.mubr.msk.f32.mxu1 %vm420_vm1, %v7888_v47 }
  0x41   : > { %6881 = vmatmul.mubr.msk.f32.gmra.mxu0 %vm420_vm1, %v7899_v48 }
  0x42   : > { %6919 = vmatmul.mubr.msk.f32.gmra.mxu1 %vm420_vm1, %v7902_v49  ;;  %6883 = vmatprep.mubr.msk.f32.mxu0 %vm420_vm1, %v7905_v50 }
  0x43   : > { %6921 = vmatprep.mubr.msk.f32.mxu1 %vm420_vm1, %v7908_v51 }
  0x45   : > { %6884 = vmatmul.mubr.msk.f32.gmra.mxu0 %vm420_vm1, %v7919_v52 }
  0x46   : > { %6922 = vmatmul.mubr.msk.f32.gmra.mxu1 %vm420_vm1, %v7922_v53  ;;  %6932 = vmatprep.mubr.msk.f32.mxu0 %vm420_vm1, %v974_v55  ;;  %v8025_v55 = vld [vmem:[%s7695_s25 + $0x62] sm:$0xff] }
  0x47   : > { %6924 = vmatprep.mubr.msk.f32.mxu1 %vm420_vm1, %v7925_v54 }
  0x49   : > { %6933 = vmatmul.mubr.msk.f32.vlgmr.msra.gmra.mxu0 %vm420_vm1, %v975_v57  ;;  %v1312_v57 = vld [vmem:[%s7695_s25 + $0x54] sm:$0xff] }
  0x4a   : > { %6925 = vmatmul.mubr.msk.f32.gmra.mxu1 %vm420_vm1, %v7936_v56  ;;  %7013 = vmatpush3.msk.msra.mxu0 %vm499_vm0, %v7719_v10  ;;  %v7993_v10 = vld [vmem:[%s7695_s25 + $0x42] sm:$0xff] }
  0x4b   : > { %6927 = vmatprep.mubr.msk.f32.mxu1 %vm420_vm1, %v7940_v58  ;;  %6935 = vmatprep.mubr.msk.f32.mxu0 %vm420_vm1, %v976_v59  ;;  %v8035_v59 = vld [vmem:[%s7695_s25 + $0x6a] sm:$0xff] }
  0x4c   : > { %7094 = vmatprep.subr.msk.mxu0 %vm499_vm0, %v7946_v60 }
  0x4d   : > { %6936 = vmatmul.mubr.msk.f32.gmra.mxu0 %vm420_vm1, %v977_v62  ;;  %v1313_v62 = vld [vmem:[%s7695_s25 + $0x5c] sm:$0xff] }
  0x4e   : > { %6928 = vmatmul.mubr.msk.f32.gmra.mxu1 %vm420_vm1, %v7956_v61  ;;  %6938 = vmatprep.mubr.msk.f32.mxu0 %vm420_vm1, %v978_v63  ;;  %v8039_v63 = vld [vmem:[%s7695_s25 + $0x72] sm:$0xff] }
  0x4f   : > { %6973 = vmatprep.mubr.msk.f32.mxu1 %vm420_vm1, %v1304_v0  ;;  %v1314_v0 = vld [vmem:[%s7695_s25 + $0x64] sm:$0xff] }
  0x51   : > { %6939 = vmatmul.mubr.msk.f32.gmra.mxu0 %vm420_vm1, %v7970_v1 }
  0x52   : > { %6974 = vmatmul.mubr.msk.f32.vlgmr.msra.gmra.mxu1 %vm420_vm1, %v1305_v2  ;;  %6941 = vmatprep.mubr.msk.f32.mxu0 %vm420_vm1, %v7974_v3  ;;  %v8049_v2 = vld [vmem:[%s7695_s25 + $0x7a] sm:$0xff] }
  0x53   : > { %6976 = vmatprep.mubr.msk.f32.mxu1 %vm420_vm1, %v1306_v5  ;;  %7054 = vmatpush3.msk.msra.mxu1 %vm499_vm0, %v7737_v15  ;;  %v1310_v15 = vld [vmem:[%s7695_s25 + $0x44] sm:$0xff]  ;;  %10333 = vst [vmem:[#allocation2_spill] sm:$0xff] %v8049_v2  ;;  %v1315_v5 = vld [vmem:[%s7695_s25 + $0x6c] sm:$0xff] }
  0x54   : > { %7135 = vmatprep.subr.msk.mxu1 %vm499_vm0, %v7983_v7 }
  0x55   : > { %6942 = vmatmul.mubr.msk.f32.gmra.mxu0 %vm420_vm1, %v7989_v8 }
  0x56   : > { %6977 = vmatmul.mubr.msk.f32.gmra.mxu1 %vm420_vm1, %v1307_v9  ;;  %6944 = vmatprep.mubr.msk.f32.mxu0 %vm420_vm1, %v7993_v10  ;;  %v8053_v9 = vld [vmem:[%s7695_s25 + $0x82] sm:$0xff] }
  0x57   : > { %6979 = vmatprep.mubr.msk.f32.mxu1 %vm420_vm1, %v1308_v11  ;;  %10334 = vst [vmem:[#allocation3_spill] sm:$0xff] %v8053_v9  ;;  %v1316_v11 = vld [vmem:[%s7695_s25 + $0x74] sm:$0xff] }
  0x59   : > { %6945 = vmatmul.mubr.msk.f32.gmra.mxu0 %vm420_vm1, %v8007_v12 }
  0x5a   : > { %6980 = vmatmul.mubr.msk.f32.gmra.mxu1 %vm420_vm1, %v1309_v13  ;;  %6947 = vmatprep.mubr.msk.f32.mxu0 %vm420_vm1, %v8011_v14  ;;  %v8063_v13 = vld [vmem:[%s7695_s25 + $0x8a] sm:$0xff] }
  0x5b   : > { %6982 = vmatprep.mubr.msk.f32.mxu1 %vm420_vm1, %v1310_v15  ;;  %10335 = vst [vmem:[#allocation4_spill] sm:$0xff] %v8063_v13  ;;  %v1317_v15 = vld [vmem:[%s7695_s25 + $0x7c] sm:$0xff] }
  0x5d   : > { %6948 = vmatmul.mubr.msk.f32.gmra.mxu0 %vm420_vm1, %v8021_v17 }
  0x5e   : > { %6983 = vmatmul.mubr.msk.f32.gmra.mxu1 %vm420_vm1, %v1311_v19  ;;  %6950 = vmatprep.mubr.msk.f32.mxu0 %vm420_vm1, %v8025_v55  ;;  %v8067_v19 = vld [vmem:[%s7695_s25 + $0x92] sm:$0xff] }
  0x5f   : > { %6985 = vmatprep.mubr.msk.f32.mxu1 %vm420_vm1, %v1312_v57  ;;  %10336 = vst [vmem:[#allocation5_spill] sm:$0xff] %v8067_v19  ;;  %v1318_v57 = vld [vmem:[%s7695_s25 + $0x84] sm:$0xff] }
  0x61   : > { %6951 = vmatmul.mubr.msk.f32.gmra.mxu0 %vm420_vm1, %v8035_v59 }
  0x62   : > { %6986 = vmatmul.mubr.msk.f32.gmra.mxu1 %vm420_vm1, %v1313_v62  ;;  %6953 = vmatprep.mubr.msk.f32.mxu0 %vm420_vm1, %v8039_v63  ;;  %v8077_v62 = vld [vmem:[%s7695_s25 + $0x9a] sm:$0xff] }
  0x63   : > { %6988 = vmatprep.mubr.msk.f32.mxu1 %vm420_vm1, %v1314_v0  ;;  %10337 = vst [vmem:[#allocation6_spill] sm:$0xff] %v8077_v62  ;;  %v1319_v0 = vld [vmem:[%s7695_s25 + $0x8c] sm:$0xff] }
  0x65   : > { %6954 = vmatmul.mubr.msk.f32.gmra.mxu0 %vm420_vm1, %v8049_v2  ;;  %v3377_v2 = vld [vmem:[%s8156_s13 + $0x8] sm:$0xff] }
  0x66   : > { %6989 = vmatmul.mubr.msk.f32.gmra.mxu1 %vm420_vm1, %v1315_v5  ;;  %6956 = vmatprep.mubr.msk.f32.mxu0 %vm420_vm1, %v8053_v9  ;;  %v8081_v5 = vld [vmem:[%s7695_s25 + $0xa2] sm:$0xff] }
  0x67   : > { %6991 = vmatprep.mubr.msk.f32.mxu1 %vm420_vm1, %v1316_v11  ;;  %10338 = vst [vmem:[#allocation7_spill] sm:$0xff] %v8081_v5  ;;  %v1320_v11 = vld [vmem:[%s7695_s25 + $0x94] sm:$0xff]  ;;  %v8136_v9 = vld [vmem:[%s10303_s2 + $0x20] sm:$0xf] }
  0x69   : > { %6957 = vmatmul.mubr.msk.f32.gmra.mxu0 %vm420_vm1, %v8063_v13  ;;  %v1322_v13 = vld [vmem:[%s7695_s25 + $0xa4] sm:$0xff] }
  0x6a   : > { %6992 = vmatmul.mubr.msk.f32.gmra.mxu1 %vm420_vm1, %v1317_v15  ;;  %6959 = vmatprep.mubr.msk.f32.mxu0 %vm420_vm1, %v8067_v19  ;;  %v8091_v15 = vld [vmem:[%s7695_s25 + $0xaa] sm:$0xff]  ;;  %v8095_v19 = vld [vmem:[%s7695_s25 + $0xb2] sm:$0xff] }
  0x6b   : > { %6994 = vmatprep.mubr.msk.f32.mxu1 %vm420_vm1, %v1318_v57  ;;  %10339 = vst [vmem:[#allocation8_spill] sm:$0xff] %v8091_v15  ;;  %v1321_v57 = vld [vmem:[%s7695_s25 + $0x9c] sm:$0xff]  ;;  %10340 = vst [vmem:[#allocation9_spill] sm:$0xff] %v8095_v19 }
  0x6d   : > { %6960 = vmatmul.mubr.msk.f32.gmra.mxu0 %vm420_vm1, %v8077_v62  ;;  %v1324_v62 = vld [vmem:[%s7695_s25 + $0xb4] sm:$0xff] }
  0x6e   : > { %6995 = vmatmul.mubr.msk.f32.gmra.mxu1 %vm420_vm1, %v1319_v0  ;;  %6962 = vmatprep.mubr.msk.f32.mxu0 %vm420_vm1, %v8081_v5  ;;  %v8105_v0 = vld [vmem:[%s7695_s25 + $0xba] sm:$0xff]  ;;  %v8109_v5 = vld [vmem:[%s7695_s25 + $0xc2] sm:$0xff] }
  0x6f   : > { %6997 = vmatprep.mubr.msk.f32.mxu1 %vm420_vm1, %v1320_v11  ;;  %10341 = vst [vmem:[#allocation10_spill] sm:$0xff] %v8105_v0  ;;  %v1323_v11 = vld [vmem:[%s7695_s25 + $0xac] sm:$0xff]  ;;  %10342 = vst [vmem:[#allocation11_spill] sm:$0xff] %v8109_v5 }
  0x71   : > { %6963 = vmatmul.mubr.msk.f32.gmra.mxu0 %vm420_vm1, %v8091_v15  ;;  %v1634_v15 = vld [vmem:[%s7695_s25 + $0x15] sm:$0xff] }
  0x72   : > { %6998 = vmatmul.mubr.msk.f32.gmra.mxu1 %vm420_vm1, %v1321_v57  ;;  %6965 = vmatprep.mubr.msk.f32.mxu0 %vm420_vm1, %v8095_v19  ;;  %v1325_v57 = vld [vmem:[%s7695_s25 + $0xbc] sm:$0xff]  ;;  %v1326_v19 = vld [vmem:[%s7695_s25 + $0xc4] sm:$0xff] }
  0x73   : > { %7000 = vmatprep.mubr.msk.f32.mxu1 %vm420_vm1, %v1322_v13  ;;  %v8119_v13 = vld [vmem:[%s7695_s25 + $0xca] sm:$0xff] }
  0x74   : > { %10343 = vst [vmem:[#allocation12_spill] sm:$0xff] %v8119_v13 }
  0x75   : > { %6966 = vmatmul.mubr.msk.f32.gmra.mxu0 %vm420_vm1, %v8105_v0  ;;  %v1636_v0 = vld [vmem:[%s7695_s25 + $0x25] sm:$0xff] }
  0x76   : > { %7001 = vmatmul.mubr.msk.f32.gmra.mxu1 %vm420_vm1, %v1323_v11  ;;  %6968 = vmatprep.mubr.msk.f32.mxu0 %vm420_vm1, %v8109_v5  ;;  %v1635_v11 = vld [vmem:[%s7695_s25 + $0x1d] sm:$0xff]  ;;  %v1328_v5 = vld [vmem:[%s7695_s25 + $0xd4] sm:$0xff] }
  0x77   : > { %7003 = vmatprep.mubr.msk.f32.mxu1 %vm420_vm1, %v1324_v62  ;;  %v1327_v62 = vld [vmem:[%s7695_s25 + $0xcc] sm:$0xff] }
  0x79   : > { %6969 = vmatmul.mubr.msk.f32.gmra.mxu0 %vm420_vm1, %v8119_v13  ;;  %v1964_v13 = vld [vmem:[%s7695_s25 + $0x16] sm:$0xff] }
  0x7a   : > { %7004 = vmatmul.mubr.msk.f32.gmra.mxu1 %vm420_vm1, %v1325_v57  ;;  %7014 = vmatprep.mubr.msk.f32.mxu0 %vm420_vm1, %v1634_v15  ;;  %v1637_v15 = vld [vmem:[%s7695_s25 + $0x2d] sm:$0xff]  ;;  %v1638_v57 = vld [vmem:[%s7695_s25 + $0x35] sm:$0xff] }
  0x7b   : > { %7006 = vmatprep.mubr.msk.f32.mxu1 %vm420_vm1, %v1326_v19  ;;  %v1329_v19 = vld [vmem:[%s7695_s25 + $0xdc] sm:$0xff] }
  0x7d   : > { %7015 = vmatmul.mubr.msk.f32.vlgmr.msra.gmra.mxu0 %vm420_vm1, %v1635_v11  ;;  %v1966_v11 = vld [vmem:[%s7695_s25 + $0x26] sm:$0xff] }
  0x7e   : > { %7007 = vmatmul.mubr.msk.f32.gmra.mxu1 %vm420_vm1, %v1327_v62  ;;  %7095 = vmatpush3.msk.msra.mxu0 %vm499_vm0, %v7946_v60  ;;  %v1639_v60 = vld [vmem:[%s7695_s25 + $0x3d] sm:$0xff]  ;;  %v1640_v62 = vld [vmem:[%s7695_s25 + $0x45] sm:$0xff] }
  0x7f   : > { %7009 = vmatprep.mubr.msk.f32.mxu1 %vm420_vm1, %v1328_v5  ;;  %7017 = vmatprep.mubr.msk.f32.mxu0 %vm420_vm1, %v1636_v0  ;;  %v1965_v5 = vld [vmem:[%s7695_s25 + $0x1e] sm:$0xff] }
  0x80   : > { %7176 = vmatprep.subr.msk.mxu0 %vm499_vm0, %v8136_v9  ;;  %v3376_v0 = vld [vmem:[%s8156_s13] sm:$0xff] }
  0x81   : > { %7018 = vmatmul.mubr.msk.f32.gmra.mxu0 %vm420_vm1, %v1637_v15  ;;  %v1641_v15 = vld [vmem:[%s7695_s25 + $0x4d] sm:$0xff] }
  0x82   : > { %7010 = vmatmul.mubr.msk.f32.gmra.mxu1 %vm420_vm1, %v1329_v19  ;;  %7020 = vmatprep.mubr.msk.f32.mxu0 %vm420_vm1, %v1638_v57  ;;  %v7591_v19 = vmov 0   ;;  %v3378_v57 = vld [vmem:[%s8156_s13 + $0x10] sm:$0xff] }
  0x83   : > { %7055 = vmatprep.mubr.msk.f32.mxu1 %vm420_vm1, %v1964_v13  ;;  %7549 = vset.pattern.permute.xlu0 %v7591_v19  ;;  %v1967_v13 = vld [vmem:[%s7695_s25 + $0x2e] sm:$0xff] }
  0x84   : > { %7550 = vset.pattern.permute.xlu1 %v7591_v19  ;;  %3404 = vperm.xlu0 %7549, %v3376_v0   ;;  %v1642_v19 = vld [vmem:[%s7695_s25 + $0x55] sm:$0xff] }
  0x85   : > { %7021 = vmatmul.mubr.msk.f32.gmra.mxu0 %vm420_vm1, %v1639_v60  ;;  %v1968_v0 = vld [vmem:[%s7695_s25 + $0x36] sm:$0xff]  ;;  %3414 = vperm.xlu1 %7550, %v3378_v57   ;;  %v1970_v57 = vld [vmem:[%s7695_s25 + $0x46] sm:$0xff] }
  0x86   : > { %7056 = vmatmul.mubr.msk.f32.vlgmr.msra.gmra.mxu1 %vm420_vm1, %v1965_v5  ;;  %7023 = vmatprep.mubr.msk.f32.mxu0 %vm420_vm1, %v1640_v62  ;;  %v1643_v60 = vld [vmem:[%s7695_s25 + $0x5d] sm:$0xff] }
  0x87   : > { %7058 = vmatprep.mubr.msk.f32.mxu1 %vm420_vm1, %v1966_v11  ;;  %7136 = vmatpush3.msk.msra.mxu1 %vm499_vm0, %v7983_v7  ;;  %v1969_v5 = vld [vmem:[%s7695_s25 + $0x3e] sm:$0xff] }
  0x88   : > { %3409 = vperm.xlu0 %7549, %v3377_v2   ;;  %v3379_v62 = vld [vmem:[%s8156_s13 + $0x18] sm:$0xff]  ;;  %v3380_v7 = vld [vmem:[%s8156_s13 + $0x20] sm:$0xff]  ;;  %v1645_v2 = vld [vmem:[%s7695_s25 + $0x6d] sm:$0xff] }
  0x89   : > { %7024 = vmatmul.mubr.msk.f32.gmra.mxu0 %vm420_vm1, %v1641_v15  ;;  %v1644_v11 = vld [vmem:[%s7695_s25 + $0x65] sm:$0xff]  ;;  %3419 = vperm.xlu1 %7550, %v3379_v62   ;;  %v1971_v15 = vld [vmem:[%s7695_s25 + $0x4e] sm:$0xff]  ;;  %v1972_v62 = vld [vmem:[%s7695_s25 + $0x56] sm:$0xff] }
  0x8a   : > { %7059 = vmatmul.mubr.msk.f32.gmra.mxu1 %vm420_vm1, %v1967_v13  ;;  %7026 = vmatprep.mubr.msk.f32.mxu0 %vm420_vm1, %v1642_v19  ;;  %v3381_v13 = vld [vmem:[%s8156_s13 + $0x28] sm:$0xff]  ;;  %v3382_v19 = vld [vmem:[%s8156_s13 + $0x30] sm:$0xff] }
  0x8b   : > { %7061 = vmatprep.mubr.msk.f32.mxu1 %vm420_vm1, %v1968_v0  ;;  %v1646_v0 = vld [vmem:[%s7695_s25 + $0x75] sm:$0xff] }
  0x8c   : > { %3424 = vperm.xlu0 %7549, %v3380_v7   ;;  %v3383_v7 = vld [vmem:[%s8156_s13 + $0x38] sm:$0xff] }
  0x8d   : > { %7027 = vmatmul.mubr.msk.f32.gmra.mxu0 %vm420_vm1, %v1643_v60  ;;  %3429 = vperm.xlu1 %7550, %v3381_v13   ;;  %v1647_v60 = vld [vmem:[%s7695_s25 + $0x7d] sm:$0xff]  ;;  %v1974_v13 = vld [vmem:[%s7695_s25 + $0x66] sm:$0xff] }
  0x8e   : > { %7062 = vmatmul.mubr.msk.f32.gmra.mxu1 %vm420_vm1, %v1969_v5  ;;  %7029 = vmatprep.mubr.msk.f32.mxu0 %vm420_vm1, %v1644_v11  ;;  %v1973_v5 = vld [vmem:[%s7695_s25 + $0x5e] sm:$0xff] }
  0x8f   : > { %7064 = vmatprep.mubr.msk.f32.mxu1 %vm420_vm1, %v1970_v57  ;;  %v3384_v11 = vld [vmem:[%s8156_s13 + $0x40] sm:$0xff] }
  0x90   : > { %3434 = vperm.xlu0 %7549, %v3382_v19   ;;  %v1648_v57 = vld [vmem:[%s7695_s25 + $0x85] sm:$0xff] }
  0x91   : > { %7030 = vmatmul.mubr.msk.f32.gmra.mxu0 %vm420_vm1, %v1645_v2  ;;  %3439 = vperm.xlu1 %7550, %v3383_v7   ;;  %v1649_v2 = vld [vmem:[%s7695_s25 + $0x8d] sm:$0xff]  ;;  %v1976_v7 = vld [vmem:[%s7695_s25 + $0x76] sm:$0xff] }
  0x92   : > { %7065 = vmatmul.mubr.msk.f32.gmra.mxu1 %vm420_vm1, %v1971_v15  ;;  %7032 = vmatprep.mubr.msk.f32.mxu0 %vm420_vm1, %v1646_v0  ;;  %v1975_v15 = vld [vmem:[%s7695_s25 + $0x6e] sm:$0xff] }
  0x93   : > { %7067 = vmatprep.mubr.msk.f32.mxu1 %vm420_vm1, %v1972_v62  ;;  %v3385_v19 = vld [vmem:[%s8156_s13 + $0x48] sm:$0xff]  ;;  %v3386_v0 = vld [vmem:[%s8156_s13 + $0x50] sm:$0xff] }
  0x94   : > { %3444 = vperm.xlu0 %7549, %v3384_v11   ;;  %v1650_v62 = vld [vmem:[%s7695_s25 + $0x95] sm:$0xff] }
  0x95   : > { %7033 = vmatmul.mubr.msk.f32.gmra.mxu0 %vm420_vm1, %v1647_v60  ;;  %3449 = vperm.xlu1 %7550, %v3385_v19   ;;  %v1651_v60 = vld [vmem:[%s7695_s25 + $0x9d] sm:$0xff]  ;;  %v1978_v19 = vld [vmem:[%s7695_s25 + $0x86] sm:$0xff] }
  0x96   : > { %7068 = vmatmul.mubr.msk.f32.gmra.mxu1 %vm420_vm1, %v1973_v5  ;;  %7035 = vmatprep.mubr.msk.f32.mxu0 %vm420_vm1, %v1648_v57  ;;  %v1977_v5 = vld [vmem:[%s7695_s25 + $0x7e] sm:$0xff] }
  0x97   : > { %7070 = vmatprep.mubr.msk.f32.mxu1 %vm420_vm1, %v1974_v13  ;;  %v3387_v11 = vld [vmem:[%s8156_s13 + $0x58] sm:$0xff]  ;;  %v3388_v57 = vld [vmem:[%s8156_s13 + $0x60] sm:$0xff] }
  0x98   : > { %3454 = vperm.xlu0 %7549, %v3386_v0   ;;  %v1652_v13 = vld [vmem:[%s7695_s25 + $0xa5] sm:$0xff] }
  0x99   : > { %7036 = vmatmul.mubr.msk.f32.gmra.mxu0 %vm420_vm1, %v1649_v2  ;;  %3459 = vperm.xlu1 %7550, %v3387_v11   ;;  %v1653_v2 = vld [vmem:[%s7695_s25 + $0xad] sm:$0xff]  ;;  %v1980_v11 = vld [vmem:[%s7695_s25 + $0x96] sm:$0xff] }
  0x9a   : > { %7071 = vmatmul.mubr.msk.f32.gmra.mxu1 %vm420_vm1, %v1975_v15  ;;  %7038 = vmatprep.mubr.msk.f32.mxu0 %vm420_vm1, %v1650_v62  ;;  %v1979_v15 = vld [vmem:[%s7695_s25 + $0x8e] sm:$0xff] }
  0x9b   : > { %7073 = vmatprep.mubr.msk.f32.mxu1 %vm420_vm1, %v1976_v7  ;;  %v3389_v0 = vld [vmem:[%s8156_s13 + $0x68] sm:$0xff]  ;;  %v3390_v62 = vld [vmem:[%s8156_s13 + $0x70] sm:$0xff] }
  0x9c   : > { %3464 = vperm.xlu0 %7549, %v3388_v57   ;;  %v1654_v7 = vld [vmem:[%s7695_s25 + $0xb5] sm:$0xff] }
  0x9d   : > { %7039 = vmatmul.mubr.msk.f32.gmra.mxu0 %vm420_vm1, %v1651_v60  ;;  %3469 = vperm.xlu1 %7550, %v3389_v0   ;;  %v1655_v60 = vld [vmem:[%s7695_s25 + $0xbd] sm:$0xff]  ;;  %v1982_v0 = vld [vmem:[%s7695_s25 + $0xa6] sm:$0xff] }
  0x9e   : > { %7074 = vmatmul.mubr.msk.f32.gmra.mxu1 %vm420_vm1, %v1977_v5  ;;  %7041 = vmatprep.mubr.msk.f32.mxu0 %vm420_vm1, %v1652_v13  ;;  %v1981_v5 = vld [vmem:[%s7695_s25 + $0x9e] sm:$0xff] }
  0x9f   : > { %7076 = vmatprep.mubr.msk.f32.mxu1 %vm420_vm1, %v1978_v19  ;;  %v3391_v57 = vld [vmem:[%s8156_s13 + $0x78] sm:$0xff]  ;;  %v3392_v13 = vld [vmem:[%s8156_s13 + $0x80] sm:$0xff] }
  0xa0   : > { %3474 = vperm.xlu0 %7549, %v3390_v62   ;;  %v1656_v19 = vld [vmem:[%s7695_s25 + $0xc5] sm:$0xff] }
  0xa1   : > { %7042 = vmatmul.mubr.msk.f32.gmra.mxu0 %vm420_vm1, %v1653_v2  ;;  %3479 = vperm.xlu1 %7550, %v3391_v57   ;;  %v1657_v2 = vld [vmem:[%s7695_s25 + $0xcd] sm:$0xff]  ;;  %v1984_v57 = vld [vmem:[%s7695_s25 + $0xb6] sm:$0xff] }
  0xa2   : > { %7077 = vmatmul.mubr.msk.f32.gmra.mxu1 %vm420_vm1, %v1979_v15  ;;  %7044 = vmatprep.mubr.msk.f32.mxu0 %vm420_vm1, %v1654_v7  ;;  %v1983_v15 = vld [vmem:[%s7695_s25 + $0xae] sm:$0xff] }
  0xa3   : > { %7079 = vmatprep.mubr.msk.f32.mxu1 %vm420_vm1, %v1980_v11  ;;  %v3393_v62 = vld [vmem:[%s8156_s13 + $0x88] sm:$0xff]  ;;  %v3394_v7 = vld [vmem:[%s8156_s13 + $0x90] sm:$0xff] }
  0xa4   : > { %3484 = vperm.xlu0 %7549, %v3392_v13   ;;  %v1658_v11 = vld [vmem:[%s7695_s25 + $0xd5] sm:$0xff] }
  0xa5   : > { %7045 = vmatmul.mubr.msk.f32.gmra.mxu0 %vm420_vm1, %v1655_v60  ;;  %3489 = vperm.xlu1 %7550, %v3393_v62   ;;  %v1659_v60 = vld [vmem:[%s7695_s25 + $0xdd] sm:$0xff]  ;;  %v3398_v62 = vld [vmem:[%s8156_s13 + $0xb0] sm:$0xff] }
  0xa6   : > { %7080 = vmatmul.mubr.msk.f32.gmra.mxu1 %vm420_vm1, %v1981_v5  ;;  %7047 = vmatprep.mubr.msk.f32.mxu0 %vm420_vm1, %v1656_v19  ;;  %v1985_v5 = vld [vmem:[%s7695_s25 + $0xbe] sm:$0xff] }
  0xa7   : > { %7082 = vmatprep.mubr.msk.f32.mxu1 %vm420_vm1, %v1982_v0  ;;  %v3395_v13 = vld [vmem:[%s8156_s13 + $0x98] sm:$0xff]  ;;  %v3396_v19 = vld [vmem:[%s8156_s13 + $0xa0] sm:$0xff] }
  0xa8   : > { %3494 = vperm.xlu0 %7549, %v3394_v7   ;;  %v1986_v0 = vld [vmem:[%s7695_s25 + $0xc6] sm:$0xff]  ;;  %v1988_v7 = vld [vmem:[%s7695_s25 + $0xd6] sm:$0xff] }
  0xa9   : > { %7048 = vmatmul.mubr.msk.f32.gmra.mxu0 %vm420_vm1, %v1657_v2  ;;  %3499 = vperm.xlu1 %7550, %v3395_v13   ;;  %v1987_v2 = vld [vmem:[%s7695_s25 + $0xce] sm:$0xff] }
  0xaa   : > { %7083 = vmatmul.mubr.msk.f32.gmra.mxu1 %vm420_vm1, %v1983_v15  ;;  %7050 = vmatprep.mubr.msk.f32.mxu0 %vm420_vm1, %v1658_v11  ;;  %v3397_v15 = vld [vmem:[%s8156_s13 + $0xa8] sm:$0xff]  ;;  %v1989_v11 = vld [vmem:[%s7695_s25 + $0xde] sm:$0xff] }
  0xab   : > { %7085 = vmatprep.mubr.msk.f32.mxu1 %vm420_vm1, %v1984_v57  ;;  %v3399_v57 = vld [vmem:[%s8156_s13 + $0xb8] sm:$0xff]  ;;  %v10345_v13 = vld [vmem:[#allocation3_spill] sm:$0xff] }
  0xac   : > { %3504 = vperm.xlu0 %7549, %v3396_v19  }
  0xad   : > { %7051 = vmatmul.mubr.msk.f32.gmra.mxu0 %vm420_vm1, %v1659_v60  ;;  %3509 = vperm.xlu1 %7550, %v3397_v15  }
  0xae   : > { %7086 = vmatmul.mubr.msk.f32.gmra.mxu1 %vm420_vm1, %v1985_v5  ;;  %7096 = vmatprep.mubr.msk.f32.mxu0 %vm420_vm1, %v7762_v21  ;;  %v3400_v21 = vld [vmem:[%s8156_s13 + $0xc0] sm:$0xff] }
  0xaf   : > { %7088 = vmatprep.mubr.msk.f32.mxu1 %vm420_vm1, %v1986_v0  ;;  %v10346_v0 = vld [vmem:[#allocation4_spill] sm:$0xff] }
  0xb0   : > { %3514 = vperm.xlu0 %7549, %v3398_v62  }
  0xb1   : > { %7097 = vmatmul.mubr.msk.f32.vlgmr.msra.gmra.mxu0 %vm420_vm1, %v7768_v23  ;;  %3519 = vperm.xlu1 %7550, %v3399_v57   ;;  %v3401_v23 = vld [vmem:[%s8156_s13 + $0xc8] sm:$0xff]  ;;  %v10348_v57 = vld [vmem:[#allocation6_spill] sm:$0xff] }
  0xb2   : > { %7089 = vmatmul.mubr.msk.f32.gmra.mxu1 %vm420_vm1, %v1987_v2  ;;  %7177 = vmatpush3.msk.msra.mxu0 %vm499_vm0, %v8136_v9  ;;  %v10344_v9 = vld [vmem:[#allocation2_spill] sm:$0xff] }
  0xb3   : > { %7091 = vmatprep.mubr.msk.f32.mxu1 %vm420_vm1, %v1988_v7  ;;  %7099 = vmatprep.mubr.msk.f32.mxu0 %vm420_vm1, %v7782_v25  ;;  %v10347_v7 = vld [vmem:[#allocation5_spill] sm:$0xff] }
  0xb4   : > { %3524 = vperm.xlu0 %7549, %v3400_v21  }
  0xb5   : > { %7100 = vmatmul.mubr.msk.f32.gmra.mxu0 %vm420_vm1, %v7788_v27  ;;  %3529 = vperm.xlu1 %7550, %v3401_v23   ;;  %v2318_v27 = vld [vmem:[%s7695_s25 + $0xe8] sm:$0xff] }
  0xb6   : > { %7092 = vmatmul.mubr.msk.f32.gmra.mxu1 %vm420_vm1, %v1989_v11  ;;  %7102 = vmatprep.mubr.msk.f32.mxu0 %vm420_vm1, %v7802_v29 }
  0xb7   : > { %7137 = vmatprep.mubr.msk.f32.mxu1 %vm420_vm1, %v7742_v16  ;;  %v2315_v16 = vld [vmem:[%s7695_s25 + $0xd0] sm:$0xff] }
  0xb9   : > { %7103 = vmatmul.mubr.msk.f32.gmra.mxu0 %vm420_vm1, %v7808_v31  ;;  %v2319_v31 = vld [vmem:[%s7695_s25 + $0xf0] sm:$0xff] }
  0xba   : > { %7138 = vmatmul.mubr.msk.f32.vlgmr.msra.gmra.mxu1 %vm420_vm1, %v7746_v18  ;;  %7105 = vmatprep.mubr.msk.f32.mxu0 %vm420_vm1, %v7822_v33  ;;  %v2316_v18 = vld [vmem:[%s7695_s25 + $0xd8] sm:$0xff] }
  0xbb   : > { %7140 = vmatprep.mubr.msk.f32.mxu1 %vm420_vm1, %v7759_v20 }
  0xbd   : > { %7106 = vmatmul.mubr.msk.f32.gmra.mxu0 %vm420_vm1, %v7828_v35  ;;  %v2646_v35 = vld [vmem:[%s7695_s25 + $0xd9] sm:$0xff] }
  0xbe   : > { %7141 = vmatmul.mubr.msk.f32.gmra.mxu1 %vm420_vm1, %v7765_v22  ;;  %7108 = vmatprep.mubr.msk.f32.mxu0 %vm420_vm1, %v7842_v37 }
  0xbf   : > { %7143 = vmatprep.mubr.msk.f32.mxu1 %vm420_vm1, %v7779_v24  ;;  %v2317_v24 = vld [vmem:[%s7695_s25 + $0xe0] sm:$0xff] }
  0xc1   : > { %7109 = vmatmul.mubr.msk.f32.gmra.mxu0 %vm420_vm1, %v7848_v39 }
  0xc2   : > { %7144 = vmatmul.mubr.msk.f32.gmra.mxu1 %vm420_vm1, %v7785_v26  ;;  %7111 = vmatprep.mubr.msk.f32.mxu0 %vm420_vm1, %v7862_v41 }
  0xc3   : > { %7146 = vmatprep.mubr.msk.f32.mxu1 %vm420_vm1, %v7799_v28 }
  0xc5   : > { %7112 = vmatmul.mubr.msk.f32.gmra.mxu0 %vm420_vm1, %v7868_v43 }
  0xc6   : > { %7147 = vmatmul.mubr.msk.f32.gmra.mxu1 %vm420_vm1, %v7805_v30  ;;  %7114 = vmatprep.mubr.msk.f32.mxu0 %vm420_vm1, %v7882_v45 }
  0xc7   : > { %7149 = vmatprep.mubr.msk.f32.mxu1 %vm420_vm1, %v7819_v32  ;;  %v2645_v32 = vld [vmem:[%s7695_s25 + $0xd1] sm:$0xff] }
  0xc9   : > { %7115 = vmatmul.mubr.msk.f32.gmra.mxu0 %vm420_vm1, %v7888_v47 }
  0xca   : > { %7150 = vmatmul.mubr.msk.f32.gmra.mxu1 %vm420_vm1, %v7825_v34  ;;  %7117 = vmatprep.mubr.msk.f32.mxu0 %vm420_vm1, %v7902_v49 }
  0xcb   : > { %7152 = vmatprep.mubr.msk.f32.mxu1 %vm420_vm1, %v7839_v36 }
  0xcd   : > { %7118 = vmatmul.mubr.msk.f32.gmra.mxu0 %vm420_vm1, %v7908_v51 }
  0xce   : > { %7153 = vmatmul.mubr.msk.f32.gmra.mxu1 %vm420_vm1, %v7845_v38  ;;  %7120 = vmatprep.mubr.msk.f32.mxu0 %vm420_vm1, %v7922_v53 }
  0xcf   : > { %7155 = vmatprep.mubr.msk.f32.mxu1 %vm420_vm1, %v7859_v40  ;;  %v2648_v40 = vld [vmem:[%s7695_s25 + $0xe9] sm:$0xff] }
  0xd1   : > { %7121 = vmatmul.mubr.msk.f32.gmra.mxu0 %vm420_vm1, %v7925_v54 }
  0xd2   : > { %7156 = vmatmul.mubr.msk.f32.gmra.mxu1 %vm420_vm1, %v7865_v42  ;;  %7123 = vmatprep.mubr.msk.f32.mxu0 %vm420_vm1, %v7936_v56 }
  0xd3   : > { %7158 = vmatprep.mubr.msk.f32.mxu1 %vm420_vm1, %v7879_v44  ;;  %v2649_v44 = vld [vmem:[%s7695_s25 + $0xf1] sm:$0xff] }
  0xd5   : > { %7124 = vmatmul.mubr.msk.f32.gmra.mxu0 %vm420_vm1, %v7940_v58 }
  0xd6   : > { %7159 = vmatmul.mubr.msk.f32.gmra.mxu1 %vm420_vm1, %v7885_v46  ;;  %7126 = vmatprep.mubr.msk.f32.mxu0 %vm420_vm1, %v7956_v61 }
  0xd7   : > { %7161 = vmatprep.mubr.msk.f32.mxu1 %vm420_vm1, %v7899_v48 }
  0xd9   : > { %v6852_v20 = vpop.f32.mrf.mxu0  ;;  %7127 = vmatmul.mubr.msk.f32.gmra.mxu0 %vm420_vm1, %v2315_v16 }
  0xda   : > { %v8360_v22 = vpop.f32.mrf.mxu1  ;;  %7162 = vmatmul.mubr.msk.f32.gmra.mxu1 %vm420_vm1, %v7905_v50  ;;  %7129 = vmatprep.mubr.msk.f32.mxu0 %vm420_vm1, %v2316_v18 }
  0xdb   : > { %7164 = vmatprep.mubr.msk.f32.mxu1 %vm420_vm1, %v7919_v52  ;;  %v8369_v25 = vpop.f32.mrf.mxu0 }
  0xdc   : > { %v8371_v26 = vpop.f32.mrf.mxu1 }
  0xdd   : > { %v6855_v28 = vpop.f32.mrf.mxu0  ;;  %7130 = vmatmul.mubr.msk.f32.gmra.mxu0 %vm420_vm1, %v2317_v24 }
  0xde   : > { %v6893_v29 = vpop.f32.mrf.mxu1  ;;  %7165 = vmatmul.mubr.msk.f32.gmra.mxu1 %vm420_vm1, %v7699_v4  ;;  %7132 = vmatprep.mubr.msk.f32.mxu0 %vm420_vm1, %v2318_v27  ;;  %v10350_v27 = vld [vmem:[#allocation8_spill] sm:$0xff] }
  0xdf   : > { %v8377_v30 = vadd.f32 %v6893_v29, %v6852_v20  ;;  %7167 = vmatprep.mubr.msk.f32.mxu1 %vm420_vm1, %v7706_v6  ;;  %v8384_v33 = vpop.f32.mrf.mxu0  ;;  %v2647_v6 = vld [vmem:[%s7695_s25 + $0xe1] sm:$0xff] }
  0xe0   : > { %v8386_v34 = vpop.f32.mrf.mxu1  ;;  %v10349_v20 = vld [vmem:[#allocation7_spill] sm:$0xff] }
  0xe1   : > { %v6858_v36 = vpop.f32.mrf.mxu0  ;;  %7133 = vmatmul.mubr.msk.f32.gmra.mxu0 %vm420_vm1, %v2319_v31  ;;  %v6206_v31 = vld [vmem:[%s10306_s5 + $0x8] sm:$0xff] }
  0xe2   : > { %v6896_v37 = vpop.f32.mrf.mxu1  ;;  %7168 = vmatmul.mubr.msk.f32.gmra.mxu1 %vm420_vm1, %v2645_v32  ;;  %7178 = vmatprep.mubr.msk.f32.mxu0 %vm420_vm1, %v7970_v1 }
  0xe3   : > { %v8391_v4 = vadd.f32 %v6896_v37, %v6855_v28  ;;  %7170 = vmatprep.mubr.msk.f32.mxu1 %vm420_vm1, %v2646_v35  ;;  %v8397_v38 = vpop.f32.mrf.mxu0  ;;  %7217 = vmatprep.subr.mxu1 %v6206_v31 }
  0xe4   : > { %v8399_v39 = vpop.f32.mrf.mxu1  ;;  %7218 = vmatpush3.msra.mxu1 %v6206_v31 }
  0xe5   : > { %v6861_v41 = vpop.f32.mrf.mxu0  ;;  %7179 = vmatmul.mubr.msk.f32.vlgmr.msra.gmra.mxu0 %vm420_vm1, %v7974_v3 }
  0xe6   : > { %v6899_v42 = vpop.f32.mrf.mxu1  ;;  %7171 = vmatmul.mubr.msk.f32.gmra.mxu1 %vm420_vm1, %v2647_v6  ;;  %7181 = vmatprep.mubr.msk.f32.mxu0 %vm420_vm1, %v7989_v8  ;;  %v10352_v6 = vld [vmem:[#allocation10_spill] sm:$0xff] }
  0xe7   : > { %v8405_v43 = vadd.f32 %v6899_v42, %v6858_v36  ;;  %7173 = vmatprep.mubr.msk.f32.mxu1 %vm420_vm1, %v2648_v40  ;;  %v8411_v45 = vpop.f32.mrf.mxu0  ;;  %v10351_v36 = vld [vmem:[#allocation9_spill] sm:$0xff] }
  0xe8   : > { %v8413_v46 = vpop.f32.mrf.mxu1 }
  0xe9   : > { %v6864_v47 = vpop.f32.mrf.mxu0  ;;  %7182 = vmatmul.mubr.msk.f32.gmra.mxu0 %vm420_vm1, %v7993_v10 }
  0xea   : > { %v6902_v48 = vpop.f32.mrf.mxu1  ;;  %7174 = vmatmul.mubr.msk.f32.gmra.mxu1 %vm420_vm1, %v2649_v44  ;;  %7184 = vmatprep.mubr.msk.f32.mxu0 %vm420_vm1, %v8007_v12 }
  0xeb   : > { %v8418_v49 = vadd.f32 %v6902_v48, %v6861_v41  ;;  %v8422_v50 = vpop.f32.mrf.mxu0 }
  0xec   : > { %v8424_v51 = vpop.f32.mrf.mxu1 }
  0xed   : > { %v6867_v52 = vpop.f32.mrf.mxu0  ;;  %7185 = vmatmul.mubr.msk.f32.gmra.mxu0 %vm420_vm1, %v8011_v14 }
  0xee   : > { %v6905_v53 = vpop.f32.mrf.mxu1  ;;  %7187 = vmatprep.mubr.msk.f32.mxu0 %vm420_vm1, %v8021_v17 }
  0xef   : > { %v8428_v54 = vadd.f32 %v6905_v53, %v6864_v47  ;;  %v8432_v56 = vpop.f32.mrf.mxu0  ;;  %v10353_v47 = vld [vmem:[#allocation11_spill] sm:$0xff]  ;;  %v10354_v53 = vld [vmem:[#allocation12_spill] sm:$0xff] }
  0xf0   : > { %v8434_v58 = vpop.f32.mrf.mxu1 }
  0xf1   : > { %v6870_v61 = vpop.f32.mrf.mxu0  ;;  %7188 = vmatmul.mubr.msk.f32.gmra.mxu0 %vm420_vm1, %v8025_v55 }
  0xf2   : > { %v6908_v1 = vpop.f32.mrf.mxu1  ;;  %7190 = vmatprep.mubr.msk.f32.mxu0 %vm420_vm1, %v8035_v59 }
  0xf3   : > { %v8438_v3 = vadd.f32 %v6908_v1, %v6867_v52  ;;  %v8442_v8 = vpop.f32.mrf.mxu0 }
  0xf4   : > { %v8444_v10 = vpop.f32.mrf.mxu1 }
  0xf5   : > { %v6873_v12 = vpop.f32.mrf.mxu0  ;;  %7191 = vmatmul.mubr.msk.f32.gmra.mxu0 %vm420_vm1, %v8039_v63 }
  0xf6   : > { %v6911_v14 = vpop.f32.mrf.mxu1  ;;  %7193 = vmatprep.mubr.msk.f32.mxu0 %vm420_vm1, %v10344_v9 }
  0xf7   : > { %v8448_v17 = vadd.f32 %v6911_v14, %v6870_v61  ;;  %v8452_v55 = vpop.f32.mrf.mxu0  ;;  %v2975_v61 = vld [vmem:[%s7695_s25 + $0xd2] sm:$0xff]  ;;  %v2976_v14 = vld [vmem:[%s7695_s25 + $0xda] sm:$0xff] }
  0xf8   : > { %v8454_v60 = vpop.f32.mrf.mxu1 }
  0xf9   : > { %v6876_v5 = vpop.f32.mrf.mxu0  ;;  %7194 = vmatmul.mubr.msk.f32.gmra.mxu0 %vm420_vm1, %v10345_v13 }
  0xfa   : > { %v6914_v59 = vpop.f32.mrf.mxu1  ;;  %7196 = vmatprep.mubr.msk.f32.mxu0 %vm420_vm1, %v10346_v0 }
  0xfb   : > { %v8458_v19 = vadd.f32 %v6914_v59, %v6873_v12  ;;  %v8462_v63 = vpop.f32.mrf.mxu0 }
  0xfc   : > { %v8464_v2 = vpop.f32.mrf.mxu1 }
  0xfd   : > { %v6879_v15 = vpop.f32.mrf.mxu0  ;;  %7197 = vmatmul.mubr.msk.f32.gmra.mxu0 %vm420_vm1, %v10347_v7 }
  0xfe   : > { %v6917_v62 = vpop.f32.mrf.mxu1  ;;  %7199 = vmatprep.mubr.msk.f32.mxu0 %vm420_vm1, %v10348_v57 }
  0xff   : > { %v8468_v11 = vadd.f32 %v6917_v62, %v6876_v5  ;;  %v8472_v21 = vpop.f32.mrf.mxu0  ;;  %v2978_v62 = vld [vmem:[%s7695_s25 + $0xea] sm:$0xff] }
 0x100   : > { %v8474_v23 = vpop.f32.mrf.mxu1 }
 0x101   : > { %v6882_v16 = vpop.f32.mrf.mxu0  ;;  %7200 = vmatmul.mubr.msk.f32.gmra.mxu0 %vm420_vm1, %v10349_v20 }
 0x102   : > { %v6920_v18 = vpop.f32.mrf.mxu1  ;;  %7202 = vmatprep.mubr.msk.f32.mxu0 %vm420_vm1, %v10350_v27 }
 0x103   : > { %v8478_v24 = vadd.f32 %v6920_v18, %v6879_v15  ;;  %v8482_v28 = vpop.f32.mrf.mxu0 }
 0x104   : > { %v8484_v29 = vpop.f32.mrf.mxu1 }
 0x105   : > { %v6885_v32 = vpop.f32.mrf.mxu0  ;;  %7203 = vmatmul.mubr.msk.f32.gmra.mxu0 %vm420_vm1, %v10351_v36 }
 0x106   : > { %v6923_v35 = vpop.f32.mrf.mxu1  ;;  %7205 = vmatprep.mubr.msk.f32.mxu0 %vm420_vm1, %v10352_v6 }
 0x107   : > { %v8491_v37 = vadd.f32 %v6923_v35, %v6882_v16  ;;  %v8495_v40 = vpop.f32.mrf.mxu0 }
 0x108   : > { %v8497_v41 = vpop.f32.mrf.mxu1 }
 0x109   : > { %v6934_v44 = vpop.f32.mrf.mxu0  ;;  %7206 = vmatmul.mubr.msk.f32.gmra.mxu0 %vm420_vm1, %v10353_v47 }
 0x10a   : > { %v6926_v42 = vpop.f32.mrf.mxu1  ;;  %v1279_v52 = vadd.f32 %v6934_v44, %v8377_v30  ;;  %7208 = vmatprep.mubr.msk.f32.mxu0 %vm420_vm1, %v10354_v53  ;;  %v2977_v30 = vld [vmem:[%s7695_s25 + $0xe2] sm:$0xff] }
 0x10b   : > { %v8501_v48 = vadd.f32 %v6926_v42, %v6885_v32  ;;  %v8509_v12 = vpop.f32.mrf.mxu0 }
 0x10c   : > { %v8507_v1 = vpop.f32.mrf.mxu1 }
 0x10d   : > { %v6937_v5 = vpop.f32.mrf.mxu0  ;;  %7209 = vmatmul.mubr.msk.f32.gmra.mxu0 %vm420_vm1, %v2975_v61 }
 0x10e   : > { %v6929_v9 = vpop.f32.mrf.mxu1  ;;  %v1281_v13 = vadd.f32 %v6937_v5, %v8391_v4  ;;  %7211 = vmatprep.mubr.msk.f32.mxu0 %vm420_vm1, %v2976_v14 }
 0x10f   : > { %v8514_v59 = vadd.f32 %v6929_v9, %v8360_v22  ;;  %v8521_v15 = vpop.f32.mrf.mxu0  ;;  %v2979_v22 = vld [vmem:[%s7695_s25 + $0xf2] sm:$0xff] }
 0x110   : > { %v8519_v0 = vpop.f32.mrf.mxu1 }
 0x111   : > { %v6940_v7 = vpop.f32.mrf.mxu0  ;;  %7212 = vmatmul.mubr.msk.f32.gmra.mxu0 %vm420_vm1, %v2977_v30 }
 0x112   : > { %v6975_v57 = vpop.f32.mrf.mxu1  ;;  %v1283_v16 = vadd.f32 %v6940_v7, %v8405_v43  ;;  %7214 = vmatprep.mubr.msk.f32.mxu0 %vm420_vm1, %v2978_v62 }
 0x113   : > { %v8526_v18 = vadd.f32 %v6975_v57, %v1279_v52  ;;  %v8530_v4 = vpop.f32.mrf.mxu0 }
 0x114   : > { %v8532_v20 = vpop.f32.mrf.mxu1 }
 0x115   : > { %v6943_v27 = vpop.f32.mrf.mxu0  ;;  %7215 = vmatmul.mubr.msk.f32.gmra.mxu0 %vm420_vm1, %v2979_v22 }
 0x116   : > { %v6978_v31 = vpop.f32.mrf.mxu1  ;;  %v1285_v32 = vadd.f32 %v6943_v27, %v8418_v49 }
 0x117   : > { %v8536_v35 = vadd.f32 %v6978_v31, %v1281_v13  ;;  %v8538_v36 = vpop.f32.mrf.mxu0 }
 0x118   : > { %v8540_v43 = vpop.f32.mrf.mxu1 }
 0x119   : > { %v6946_v6 = vpop.f32.mrf.mxu0 }
 0x11a   : > { %v6981_v42 = vpop.f32.mrf.mxu1  ;;  %v1287_v44 = vadd.f32 %v6946_v6, %v8428_v54 }
 0x11b   : > { %v8543_v47 = vadd.f32 %v6981_v42, %v1283_v16  ;;  %v8545_v52 = vpop.f32.mrf.mxu0 }
 0x11c   : > { %v8547_v53 = vpop.f32.mrf.mxu1 }
 0x11d   : > { %v6949_v61 = vpop.f32.mrf.mxu0 }
 0x11e   : > { %v6984_v14 = vpop.f32.mrf.mxu1  ;;  %v1289_v49 = vadd.f32 %v6949_v61, %v8438_v3 }
 0x11f   : > { %v8550_v9 = vadd.f32 %v6984_v14, %v1285_v32  ;;  %v8552_v5 = vpop.f32.mrf.mxu0 }
 0x120   : > { %v8554_v13 = vpop.f32.mrf.mxu1 }
 0x121   : > { %v6952_v30 = vpop.f32.mrf.mxu0 }
 0x122   : > { %v6987_v62 = vpop.f32.mrf.mxu1  ;;  %v1291_v54 = vadd.f32 %v6952_v30, %v8448_v17 }
 0x123   : > { %v8557_v7 = vadd.f32 %v6987_v62, %v1287_v44  ;;  %v8559_v57 = vpop.f32.mrf.mxu0 }
 0x124   : > { %v8561_v16 = vpop.f32.mrf.mxu1 }
 0x125   : > { %10355 = vst [vmem:[#allocation2_spill] sm:$0xff] %v8561_v16  ;;  %v6955_v22 = vpop.f32.mrf.mxu0 }
 0x126   : > { %v6990_v27 = vpop.f32.mrf.mxu1  ;;  %v1293_v3 = vadd.f32 %v6955_v22, %v8458_v19 }
 0x127   : > { %v8564_v31 = vadd.f32 %v6990_v27, %v1289_v49  ;;  %v8566_v32 = vpop.f32.mrf.mxu0 }
 0x128   : > { %10356 = vst [vmem:[#allocation3_spill] sm:$0xff] %v8566_v32  ;;  %v8568_v6 = vpop.f32.mrf.mxu1 }
 0x129   : > { %10357 = vst [vmem:[#allocation4_spill] sm:$0xff] %v8568_v6  ;;  %v6958_v42 = vpop.f32.mrf.mxu0 }
 0x12a   : > { %v6993_v61 = vpop.f32.mrf.mxu1  ;;  %v1295_v17 = vadd.f32 %v6958_v42, %v8468_v11 }
 0x12b   : > { %v8571_v44 = vadd.f32 %v6993_v61, %v1291_v54  ;;  %v8573_v14 = vpop.f32.mrf.mxu0 }
 0x12c   : > { %10358 = vst [vmem:[#allocation5_spill] sm:$0xff] %v8573_v14  ;;  %v8575_v30 = vpop.f32.mrf.mxu1 }
 0x12d   : > { %10359 = vst [vmem:[#allocation6_spill] sm:$0xff] %v8575_v30  ;;  %v6961_v62 = vpop.f32.mrf.mxu0 }
 0x12e   : > { %v6996_v16 = vpop.f32.mrf.mxu1  ;;  %v1297_v19 = vadd.f32 %v6961_v62, %v8478_v24 }
 0x12f   : > { %v8578_v49 = vadd.f32 %v6996_v16, %v1293_v3  ;;  %v8580_v22 = vpop.f32.mrf.mxu0  ;;  %v6247_v3 = vld [vmem:[%s10306_s5 + $0x10] sm:$0xff] }
 0x130   : > { %v8582_v27 = vpop.f32.mrf.mxu1  ;;  %7281 = vmatprep.subr.mxu0 %v6247_v3 }
 0x131   : > { %10360 = vst [vmem:[#allocation7_spill] sm:$0xff] %v8582_v27  ;;  %v6964_v6 = vpop.f32.mrf.mxu0  ;;  %7282 = vmatpush3.msra.mxu0 %v6247_v3  ;;  %v8616_v3 = vld [vmem:[%s10306_s5] sm:$0xff] }
 0x132   : > { %v6999_v32 = vpop.f32.mrf.mxu1  ;;  %v1299_v11 = vadd.f32 %v6964_v6, %v8491_v37  ;;  %10369 = vst [vmem:[#allocation16_spill] sm:$0xff] %v8616_v3  ;;  %7249 = vmatprep.subr.mxu1 %v8616_v3 }
 0x133   : > { %v8585_v54 = vadd.f32 %v6999_v32, %v1295_v17  ;;  %v8587_v42 = vpop.f32.mrf.mxu0 }
 0x134   : > { %10361 = vst [vmem:[#allocation8_spill] sm:$0xff] %v8587_v42  ;;  %v8589_v61 = vpop.f32.mrf.mxu1 }
 0x135   : > { %10362 = vst [vmem:[#allocation9_spill] sm:$0xff] %v8589_v61  ;;  %v6967_v30 = vpop.f32.mrf.mxu0 }
 0x136   : > { %v7002_v14 = vpop.f32.mrf.mxu1  ;;  %v1301_v24 = vadd.f32 %v6967_v30, %v8501_v48 }
 0x137   : > { %v8592_v16 = vadd.f32 %v7002_v14, %v1297_v19  ;;  %v8597_v62 = vpop.f32.mrf.mxu0 }
 0x138   : > { %10363 = vst [vmem:[#allocation10_spill] sm:$0xff] %v8597_v62  ;;  %v8599_v27 = vpop.f32.mrf.mxu1 }
 0x139   : > { %10364 = vst [vmem:[#allocation11_spill] sm:$0xff] %v8599_v27  ;;  %v6970_v37 = vpop.f32.mrf.mxu0 }
 0x13a   : > { %v7005_v32 = vpop.f32.mrf.mxu1  ;;  %v1303_v6 = vadd.f32 %v6970_v37, %v8514_v59 }
 0x13b   : > { %v1629_v17 = vadd.f32 %v7005_v32, %v1299_v11  ;;  %v8602_v61 = vpop.f32.mrf.mxu0 }
 0x13c   : > { %v8604_v48 = vpop.f32.mrf.mxu1 }
 0x13d   : > { %10365 = vst [vmem:[#allocation12_spill] sm:$0xff] %v8604_v48  ;;  %v7016_v30 = vpop.f32.mrf.mxu0 }
 0x13e   : > { %v7008_v14 = vpop.f32.mrf.mxu1  ;;  %v8607_v42 = vadd.f32 %v7016_v30, %v8526_v18 }
 0x13f   : > { %v1631_v19 = vadd.f32 %v7008_v14, %v1301_v24  ;;  %v8611_v27 = vpop.f32.mrf.mxu0 }
 0x140   : > { %10366 = vst [vmem:[#allocation13_spill] sm:$0xff] %v8607_v42  ;;  %v8609_v62 = vpop.f32.mrf.mxu1  ;;  %10368 = vst [vmem:[#allocation15_spill] sm:$0xff] %v8611_v27 }
 0x141   : > { %10367 = vst [vmem:[#allocation14_spill] sm:$0xff] %v8609_v62  ;;  %v7019_v11 = vpop.f32.mrf.mxu0 }
 0x142   : > { %v7011_v59 = vpop.f32.mrf.mxu1  ;;  %v8620_v32 = vadd.f32 %v7019_v11, %v8536_v35 }
 0x143   : > { %v1633_v37 = vadd.f32 %v7011_v59, %v1303_v6  ;;  %v8624_v18 = vpop.f32.mrf.mxu0 }
 0x144   : > { %10370 = vst [vmem:[#allocation17_spill] sm:$0xff] %v8620_v32  ;;  %v8622_v24 = vpop.f32.mrf.mxu1 }
 0x145   : > { %v7022_v14 = vpop.f32.mrf.mxu0 }
 0x146   : > { %v8626_v30 = vpop.f32.mrf.mxu1  ;;  %v8629_v42 = vadd.f32 %v7022_v14, %v8543_v47 }
 0x147   : > { %10371 = vst [vmem:[#allocation18_spill] sm:$0xff] %v8626_v30  ;;  %v8631_v62 = vpop.f32.mrf.mxu0 }
 0x148   : > { %10372 = vst [vmem:[#allocation19_spill] sm:$0xff] %v8629_v42  ;;  %v8633_v27 = vpop.f32.mrf.mxu1 }
 0x149   : > { %10373 = vst [vmem:[#allocation20_spill] sm:$0xff] %v8633_v27  ;;  %v7025_v48 = vpop.f32.mrf.mxu0 }
 0x14a   : > { %v8635_v3 = vpop.f32.mrf.mxu1  ;;  %v8638_v35 = vadd.f32 %v7025_v48, %v8550_v9 }
 0x14b   : > { %v8640_v6 = vpop.f32.mrf.mxu0 }
 0x14c   : > { %10374 = vst [vmem:[#allocation21_spill] sm:$0xff] %v8638_v35  ;;  %10375 = vst [vmem:[#allocation22_spill] sm:$0xff] %v8640_v6  ;;  %v8642_v59 = vpop.f32.mrf.mxu1 }
 0x14d   : > { %10376 = vst [vmem:[#allocation23_spill] sm:$0xff] %v8642_v59  ;;  %v7028_v11 = vpop.f32.mrf.mxu0 }
 0x14e   : > { %v8644_v32 = vpop.f32.mrf.mxu1  ;;  %v8647_v47 = vadd.f32 %v7028_v11, %v8557_v7 }
 0x14f   : > { %v8649_v14 = vpop.f32.mrf.mxu0 }
 0x150   : > { %10377 = vst [vmem:[#allocation24_spill] sm:$0xff] %v8647_v47  ;;  %10378 = vst [vmem:[#allocation25_spill] sm:$0xff] %v8649_v14  ;;  %v8651_v42 = vpop.f32.mrf.mxu1 }
 0x151   : > { %10379 = vst [vmem:[#allocation26_spill] sm:$0xff] %v8651_v42  ;;  %v7031_v27 = vpop.f32.mrf.mxu0 }
 0x152   : > { %v8653_v30 = vpop.f32.mrf.mxu1  ;;  %v8656_v9 = vadd.f32 %v7031_v27, %v8564_v31 }
 0x153   : > { %v8658_v48 = vpop.f32.mrf.mxu0 }
 0x154   : > { %10380 = vst [vmem:[#allocation27_spill] sm:$0xff] %v8656_v9  ;;  %10381 = vst [vmem:[#allocation28_spill] sm:$0xff] %v8658_v48  ;;  %v8660_v35 = vpop.f32.mrf.mxu1 }
 0x155   : > { %10382 = vst [vmem:[#allocation29_spill] sm:$0xff] %v8660_v35  ;;  %v7034_v59 = vpop.f32.mrf.mxu0 }
 0x156   : > { %v8662_v6 = vpop.f32.mrf.mxu1  ;;  %v8665_v7 = vadd.f32 %v7034_v59, %v8571_v44 }
 0x157   : > { %v8667_v11 = vpop.f32.mrf.mxu0 }
 0x158   : > { %10383 = vst [vmem:[#allocation30_spill] sm:$0xff] %v8665_v7  ;;  %10384 = vst [vmem:[#allocation31_spill] sm:$0xff] %v8667_v11  ;;  %v8669_v47 = vpop.f32.mrf.mxu1 }
 0x159   : > { %10385 = vst [vmem:[#allocation32_spill] sm:$0xff] %v8669_v47  ;;  %v7037_v42 = vpop.f32.mrf.mxu0 }
 0x15a   : > { %v8671_v14 = vpop.f32.mrf.mxu1  ;;  %v8674_v31 = vadd.f32 %v7037_v42, %v8578_v49 }
 0x15b   : > { %10386 = vst [vmem:[#allocation33_spill] sm:$0xff] %v8671_v14  ;;  %v8676_v27 = vpop.f32.mrf.mxu0 }
 0x15c   : > { %10387 = vst [vmem:[#allocation34_spill] sm:$0xff] %v8674_v31  ;;  %v8678_v9 = vpop.f32.mrf.mxu1 }
 0x15d   : > { %10388 = vst [vmem:[#allocation35_spill] sm:$0xff] %v8678_v9  ;;  %v7040_v35 = vpop.f32.mrf.mxu0 }
 0x15e   : > { %v8680_v48 = vpop.f32.mrf.mxu1  ;;  %v8683_v44 = vadd.f32 %v7040_v35, %v8585_v54  ;;  %v8703_v54 = vld [vmem:[%s10306_s5 + $0x20] sm:$0xff] }
 0x15f   : > { %10389 = vst [vmem:[#allocation36_spill] sm:$0xff] %v8680_v48  ;;  %v8685_v59 = vpop.f32.mrf.mxu0  ;;  %10398 = vst [vmem:[#allocation45_spill] sm:$0xff] %v8703_v54  ;;  %7345 = vmatprep.subr.mxu0 %v8703_v54 }
 0x160   : > { %10390 = vst [vmem:[#allocation37_spill] sm:$0xff] %v8683_v44  ;;  %10391 = vst [vmem:[#allocation38_spill] sm:$0xff] %v8685_v59  ;;  %v8687_v7 = vpop.f32.mrf.mxu1 }
 0x161   : > { %10392 = vst [vmem:[#allocation39_spill] sm:$0xff] %v8687_v7  ;;  %v7043_v47 = vpop.f32.mrf.mxu0 }
 0x162   : > { %v8689_v11 = vpop.f32.mrf.mxu1  ;;  %v8692_v49 = vadd.f32 %v7043_v47, %v8592_v16 }
 0x163   : > { %10393 = vst [vmem:[#allocation40_spill] sm:$0xff] %v8689_v11  ;;  %v8694_v42 = vpop.f32.mrf.mxu0 }
 0x164   : > { %10394 = vst [vmem:[#allocation41_spill] sm:$0xff] %v8692_v49  ;;  %10395 = vst [vmem:[#allocation42_spill] sm:$0xff] %v8694_v42  ;;  %v8696_v31 = vpop.f32.mrf.mxu1 }
 0x165   : > { %10396 = vst [vmem:[#allocation43_spill] sm:$0xff] %v8696_v31  ;;  %v7046_v9 = vpop.f32.mrf.mxu0 }
 0x166   : > { %v8698_v14 = vpop.f32.mrf.mxu1  ;;  %v1959_v35 = vadd.f32 %v7046_v9, %v1629_v17 }
 0x167   : > { %10397 = vst [vmem:[#allocation44_spill] sm:$0xff] %v8698_v14  ;;  %v8706_v44 = vpop.f32.mrf.mxu0 }
 0x168   : > { %10399 = vst [vmem:[#allocation46_spill] sm:$0xff] %v8706_v44  ;;  %v8708_v11 = vpop.f32.mrf.mxu1 }
 0x169   : > { %10400 = vst [vmem:[#allocation47_spill] sm:$0xff] %v8708_v11  ;;  %v7049_v16 = vpop.f32.mrf.mxu0 }
 0x16a   : > { %v8710_v47 = vpop.f32.mrf.mxu1  ;;  %v1961_v49 = vadd.f32 %v7049_v16, %v1631_v19 }
 0x16b   : > { %10401 = vst [vmem:[#allocation48_spill] sm:$0xff] %v8710_v47  ;;  %v8712_v31 = vpop.f32.mrf.mxu0 }
 0x16c   : > { %10402 = vst [vmem:[#allocation49_spill] sm:$0xff] %v8712_v31  ;;  %v8714_v42 = vpop.f32.mrf.mxu1 }
 0x16d   : > { %10403 = vst [vmem:[#allocation50_spill] sm:$0xff] %v8714_v42  ;;  %v7052_v14 = vpop.f32.mrf.mxu0 }
 0x16e   : > { %v7087_v7 = vpop.f32.mrf.mxu1  ;;  %v1963_v59 = vadd.f32 %v7052_v14, %v1633_v37 }
 0x16f   : > { %v8716_v48 = vadd.f32 %v7087_v7, %v1959_v35  ;;  %v8718_v17 = vpop.f32.mrf.mxu0 }
 0x170   : > { %v8720_v9 = vpop.f32.mrf.mxu1 }
 0x171   : > { %v8722_v44 = vpop.f32.mrf.mxu0 }
 0x172   : > { %v7090_v54 = vpop.f32.mrf.mxu1  ;;  %10404 = vst [vmem:[#allocation51_spill] sm:$0xff] %v8722_v44 }
 0x173   : > { %v8724_v11 = vadd.f32 %v7090_v54, %v1961_v49  ;;  %v8728_v19 = vpop.f32.mrf.mxu0 }
 0x174   : > { %v8726_v47 = vpop.f32.mrf.mxu1  ;;  %10406 = vst [vmem:[#allocation53_spill] sm:$0xff] %v8728_v19 }
 0x175   : > { %10405 = vst [vmem:[#allocation52_spill] sm:$0xff] %v8726_v47  ;;  %v8730_v42 = vpop.f32.mrf.mxu0 }
 0x176   : > { %v7093_v16 = vpop.f32.mrf.mxu1 }
 0x177   : > { %v8732_v31 = vadd.f32 %v7093_v16, %v1963_v59  ;;  %v8736_v14 = vpop.f32.mrf.mxu0 }
 0x178   : > { %v8734_v37 = vpop.f32.mrf.mxu1  ;;  %10408 = vst [vmem:[#allocation55_spill] sm:$0xff] %v8736_v14 }
 0x179   : > { %10407 = vst [vmem:[#allocation54_spill] sm:$0xff] %v8732_v31  ;;  %v8738_v7 = vpop.f32.mrf.mxu0 }
 0x17a   : > { %10409 = vst [vmem:[#allocation56_spill] sm:$0xff] %v8738_v7  ;;  %v8740_v35 = vpop.f32.mrf.mxu1 }
 0x17b   : > { %10410 = vst [vmem:[#allocation57_spill] sm:$0xff] %v8740_v35  ;;  %v8742_v44 = vpop.f32.mrf.mxu0 }
 0x17c   : > { %10411 = vst [vmem:[#allocation58_spill] sm:$0xff] %v8742_v44  ;;  %v8744_v49 = vpop.f32.mrf.mxu1 }
 0x17d   : > { %10412 = vst [vmem:[#allocation59_spill] sm:$0xff] %v8744_v49  ;;  %v8746_v54 = vpop.f32.mrf.mxu0 }
 0x17e   : > { %10413 = vst [vmem:[#allocation60_spill] sm:$0xff] %v8746_v54  ;;  %v8748_v19 = vpop.f32.mrf.mxu1 }
 0x17f   : > { %10414 = vst [vmem:[#allocation61_spill] sm:$0xff] %v8748_v19  ;;  %v8750_v47 = vpop.f32.mrf.mxu0 }
 0x180   : > { %10415 = vst [vmem:[#allocation62_spill] sm:$0xff] %v8750_v47  ;;  %v8752_v59 = vpop.f32.mrf.mxu1 }
 0x181   : > { %10416 = vst [vmem:[#allocation63_spill] sm:$0xff] %v8752_v59  ;;  %v8754_v16 = vpop.f32.mrf.mxu0 }
 0x182   : > { %10417 = vst [vmem:[#allocation64_spill] sm:$0xff] %v8754_v16  ;;  %v8756_v31 = vpop.f32.mrf.mxu1 }
 0x183   : > { %v8758_v14 = vpop.f32.mrf.mxu0 }
 0x184   : > { %10418 = vst [vmem:[#allocation65_spill] sm:$0xff] %v8758_v14  ;;  %v8760_v7 = vpop.f32.mrf.mxu1  ;;  %v846_v14 = vadd.f32 %v8386_v34, %v8369_v25  ;;  %v906_v25 = vadd.f32 %v8454_v60, %v8442_v8  ;;  %v926_v34 = vadd.f32 %v8474_v23, %v8462_v63  ;;  %v966_v8 = vadd.f32 %v8519_v0, %v8371_v26 }
 0x185   : > { %10419 = vst [vmem:[#allocation66_spill] sm:$0xff] %v8760_v7  ;;  %v8762_v35 = vpop.f32.mrf.mxu0 }
 0x186   : > { %10420 = vst [vmem:[#allocation67_spill] sm:$0xff] %v8762_v35  ;;  %v8764_v44 = vpop.f32.mrf.mxu1  ;;  %v856_v35 = vadd.f32 %v8399_v39, %v8384_v33  ;;  %v916_v33 = vadd.f32 %v8464_v2, %v8452_v55  ;;  %v1290_v26 = vadd.f32 %v8559_v57, %v906_v25 }
 0x187   : > { %10421 = vst [vmem:[#allocation68_spill] sm:$0xff] %v8764_v44  ;;  %v8766_v49 = vpop.f32.mrf.mxu0 }
 0x188   : > { %v8768_v54 = vpop.f32.mrf.mxu1 }
 0x189   : > { %10422 = vst [vmem:[#allocation69_spill] sm:$0xff] %v8768_v54  ;;  %v8770_v19 = vpop.f32.mrf.mxu0  ;;  %v866_v54 = vadd.f32 %v8413_v46, %v8397_v38  ;;  %v936_v38 = vadd.f32 %v8484_v29, %v8472_v21  ;;  %v946_v46 = vadd.f32 %v8497_v41, %v8482_v28 }
 0x18a   : > { %v8772_v47 = vpop.f32.mrf.mxu1 }
 0x18b   : > { %10423 = vst [vmem:[#allocation70_spill] sm:$0xff] %v8772_v47  ;;  %v8774_v59 = vpop.f32.mrf.mxu0  ;;  %v876_v47 = vadd.f32 %v8424_v51, %v8411_v45  ;;  %v1280_v51 = vadd.f32 %v8521_v15, %v856_v35  ;;  %v10433_v35 = vld [vmem:[#allocation10_spill] sm:$0xff] }
 0x18c   : > { %10424 = vst [vmem:[#allocation71_spill] sm:$0xff] %v8774_v59  ;;  %v8776_v16 = vpop.f32.mrf.mxu1  ;;  %v886_v59 = vadd.f32 %v8434_v58, %v8422_v50  ;;  %v1278_v50 = vadd.f32 %v8509_v12, %v846_v14  ;;  %v956_v58 = vadd.f32 %v8507_v1, %v8495_v40  ;;  %v10426_v40 = vld [vmem:[#allocation2_spill] sm:$0xff]  ;;  %v10427_v1 = vld [vmem:[#allocation3_spill] sm:$0xff] }
 0x18d   : > { %10425 = vst [vmem:[#allocation72_spill] sm:$0xff] %v8776_v16  ;;  %v8782_v7 = vpop.f32.mrf.mxu0  ;;  %v896_v16 = vadd.f32 %v8444_v10, %v8432_v56  ;;  %v1282_v56 = vadd.f32 %v8530_v4, %v866_v54  ;;  %v1284_v10 = vadd.f32 %v8538_v36, %v876_v47  ;;  %v1610_v21 = vadd.f32 %v8540_v43, %v1280_v51  ;;  %v10428_v4 = vld [vmem:[#allocation4_spill] sm:$0xff]  ;;  %v10429_v36 = vld [vmem:[#allocation5_spill] sm:$0xff]  ;;  %v10431_v47 = vld [vmem:[#allocation6_spill] sm:$0xff] }
 0x18e   : > { %v8784_v44 = vpop.f32.mrf.mxu1  ;;  %v1286_v55 = vadd.f32 %v8545_v52, %v886_v59  ;;  %v1608_v2 = vadd.f32 %v8532_v20, %v1278_v50  ;;  %v1292_v12 = vadd.f32 %v10427_v1, %v916_v33  ;;  %v1294_v43 = vadd.f32 %v10429_v36, %v926_v34  ;;  %v10432_v14 = vld [vmem:[#allocation7_spill] sm:$0xff]  ;;  %v10434_v33 = vld [vmem:[#allocation9_spill] sm:$0xff]  ;;  %v10440_v1 = vld [vmem:[#allocation18_spill] sm:$0xff] }
 0x18f   : > { %v8802_v39 = vpop.f32.mrf.mxu0  ;;  %v1612_v23 = vadd.f32 %v8547_v53, %v1282_v56  ;;  %v1288_v28 = vadd.f32 %v8552_v5, %v896_v16  ;;  %v1614_v29 = vadd.f32 %v8554_v13, %v1284_v10  ;;  %v1296_v52 = vadd.f32 %v8580_v22, %v936_v38  ;;  %v10430_v53 = vld [vmem:[#allocation8_spill] sm:$0xff]  ;;  %v10435_v51 = vld [vmem:[#allocation11_spill] sm:$0xff]  ;;  %v10438_v10 = vld [vmem:[#allocation14_spill] sm:$0xff] }
 0x190   : > { %v8804_v45 = vpop.f32.mrf.mxu1  ;;  %v1616_v41 = vadd.f32 %v10426_v40, %v1286_v55  ;;  %v1298_v5 = vadd.f32 %v10430_v53, %v946_v46  ;;  %v1620_v13 = vadd.f32 %v10431_v47, %v1290_v26  ;;  %v1622_v57 = vadd.f32 %v10432_v14, %v1292_v12  ;;  %v10436_v56 = vld [vmem:[#allocation12_spill] sm:$0xff]  ;;  %v10437_v38 = vld [vmem:[#allocation15_spill] sm:$0xff]  ;;  %v10439_v40 = vld [vmem:[#allocation13_spill] sm:$0xff] }
 0x191   : > { %v8817_v60 = vpop.f32.mrf.mxu0  ;;  %v1618_v20 = vadd.f32 %v10428_v4, %v1288_v28  ;;  %v1300_v54 = vadd.f32 %v10433_v35, %v956_v58  ;;  %v1302_v59 = vadd.f32 %v8602_v61, %v966_v8  ;;  %v1624_v50 = vadd.f32 %v10434_v33, %v1294_v43  ;;  %v10441_v4 = vld [vmem:[#allocation20_spill] sm:$0xff]  ;;  %v10442_v43 = vld [vmem:[#allocation17_spill] sm:$0xff]  ;;  %v10445_v47 = vld [vmem:[#allocation19_spill] sm:$0xff] }
 0x192   : > { %v8819_v63 = vpop.f32.mrf.mxu1  ;;  %v1626_v34 = vadd.f32 %v10435_v51, %v1296_v52  ;;  %v1628_v22 = vadd.f32 %v10436_v56, %v1298_v5  ;;  %v1938_v46 = vadd.f32 %v10437_v38, %v1608_v2  ;;  %v1940_v58 = vadd.f32 %v8624_v18, %v1610_v21  ;;  %v10443_v52 = vld [vmem:[#allocation22_spill] sm:$0xff]  ;;  %v10444_v5 = vld [vmem:[#allocation23_spill] sm:$0xff]  ;;  %v10449_v51 = vld [vmem:[#allocation28_spill] sm:$0xff] }
 0x193   : > { %v8829_v0 = vpop.f32.mrf.mxu0  ;;  %v1630_v55 = vadd.f32 %v10438_v10, %v1300_v54  ;;  %v1632_v28 = vadd.f32 %v8622_v24, %v1302_v59  ;;  %v1942_v61 = vadd.f32 %v8631_v62, %v1612_v23  ;;  %v2269_v12 = vadd.f32 %v10440_v1, %v10439_v40  ;;  %v10446_v62 = vld [vmem:[#allocation25_spill] sm:$0xff]  ;;  %v10447_v23 = vld [vmem:[#allocation26_spill] sm:$0xff]  ;;  %v10452_v10 = vld [vmem:[#allocation31_spill] sm:$0xff] }
 0x194   : > { %v8831_v15 = vpop.f32.mrf.mxu1  ;;  %v2268_v36 = vadd.f32 %v10441_v4, %v1938_v46  ;;  %v2271_v2 = vadd.f32 %v8635_v3, %v10442_v43  ;;  %v1944_v53 = vadd.f32 %v10443_v52, %v1614_v29  ;;  %v2270_v24 = vadd.f32 %v10444_v5, %v1940_v58  ;;  %v10448_v59 = vld [vmem:[#allocation21_spill] sm:$0xff]  ;;  %v10451_v46 = vld [vmem:[#allocation24_spill] sm:$0xff]  ;;  %v10456_v52 = vld [vmem:[#allocation35_spill] sm:$0xff] }
 0x195   : > { %v8841_v16 = vpop.f32.mrf.mxu0  ;;  %v2273_v18 = vadd.f32 %v8644_v32, %v10445_v47  ;;  %v1946_v21 = vadd.f32 %v10446_v62, %v1616_v41  ;;  %v2272_v14 = vadd.f32 %v10447_v23, %v1942_v61  ;;  %v2275_v33 = vadd.f32 %v8653_v30, %v10448_v59  ;;  %v10450_v3 = vld [vmem:[#allocation29_spill] sm:$0xff]  ;;  %v10453_v58 = vld [vmem:[#allocation32_spill] sm:$0xff]  ;;  %v10454_v30 = vld [vmem:[#allocation27_spill] sm:$0xff]  ;;  %v8892_v23 = vpop.permute.xlu0 %3404 }
 0x196   : > { %v8843_v25 = vpop.f32.mrf.mxu1  ;;  %v1948_v56 = vadd.f32 %v10449_v51, %v1618_v20  ;;  %v2274_v38 = vadd.f32 %v10450_v3, %v1944_v53  ;;  %v2277_v32 = vadd.f32 %v8662_v6, %v10451_v46  ;;  %v1950_v41 = vadd.f32 %v10452_v10, %v1620_v13  ;;  %v10455_v20 = vld [vmem:[#allocation33_spill] sm:$0xff]  ;;  %v10458_v5 = vld [vmem:[#allocation36_spill] sm:$0xff]  ;;  %v10459_v62 = vld [vmem:[#allocation38_spill] sm:$0xff]  ;;  %10460 = vst [vmem:[#allocation2_spill] sm:$0xff] %v8892_v23 }
 0x197   : > { %v8853_v8 = vpop.f32.mrf.mxu0  ;;  %v2276_v61 = vadd.f32 %v10453_v58, %v1946_v21  ;;  %v1952_v40 = vadd.f32 %v8676_v27, %v1622_v57  ;;  %v2279_v43 = vadd.f32 %v10455_v20, %v10454_v30  ;;  %v1954_v6 = vadd.f32 %v10459_v62, %v1624_v50  ;;  %v10461_v13 = vld [vmem:[#allocation39_spill] sm:$0xff]  ;;  %v10463_v27 = vld [vmem:[#allocation40_spill] sm:$0xff]  ;;  %v10464_v59 = vld [vmem:[#allocation42_spill] sm:$0xff] }
 0x198   : > { %v8855_v26 = vpop.f32.mrf.mxu1  ;;  %v2278_v53 = vadd.f32 %v10456_v52, %v1948_v56  ;;  %v2280_v21 = vadd.f32 %v10461_v13, %v1950_v41  ;;  %v1956_v51 = vadd.f32 %v10464_v59, %v1626_v34  ;;  %v10465_v3 = vld [vmem:[#allocation43_spill] sm:$0xff]  ;;  %v10466_v56 = vld [vmem:[#allocation37_spill] sm:$0xff]  ;;  %v10467_v30 = vld [vmem:[#allocation44_spill] sm:$0xff] }
 0x199   : > { %v7128_v35 = vpop.f32.mrf.mxu0  ;;  %v2282_v46 = vadd.f32 %v10465_v3, %v1952_v40  ;;  %v2285_v20 = vadd.f32 %v10467_v30, %v10466_v56  ;;  %v10468_v52 = vld [vmem:[#allocation46_spill] sm:$0xff]  ;;  %v10469_v50 = vld [vmem:[#allocation49_spill] sm:$0xff]  ;;  %v10471_v41 = vld [vmem:[#allocation47_spill] sm:$0xff]  ;;  %v1962_v3 = vadd.f32 %v8718_v17, %v1632_v28 }
 0x19a   : > { %v8868_v54 = vpop.f32.mrf.mxu1  ;;  %v8875_v29 = vadd.f32 %v7128_v35, %v8716_v48  ;;  %v10457_v48 = vld [vmem:[#allocation30_spill] sm:$0xff]  ;;  %v2284_v13 = vadd.f32 %v10471_v41, %v1954_v6  ;;  %v10477_v6 = vld [vmem:[#allocation53_spill] sm:$0xff]  ;;  %v10480_v28 = vld [vmem:[#allocation55_spill] sm:$0xff] }
 0x19b   : > { %v8882_v1 = vpop.f32.mrf.mxu0  ;;  %v2281_v47 = vadd.f32 %v10458_v5, %v10457_v48  ;;  %v10462_v35 = vld [vmem:[#allocation34_spill] sm:$0xff]  ;;  %v1958_v48 = vadd.f32 %v10468_v52, %v1628_v22  ;;  %v1960_v5 = vadd.f32 %v10469_v50, %v1630_v55  ;;  %v10475_v55 = vld [vmem:[#allocation51_spill] sm:$0xff]  ;;  %v2598_v52 = vadd.f32 %v10477_v6, %v2268_v36  ;;  %v8927_v50 = vpop.permute.xlu1 %3414 }
 0x19c   : > { %v8884_v4 = vpop.f32.mrf.mxu1  ;;  %v2283_v57 = vadd.f32 %v10463_v27, %v10462_v35  ;;  %v10472_v35 = vld [vmem:[#allocation41_spill] sm:$0xff]  ;;  %v10473_v27 = vld [vmem:[#allocation48_spill] sm:$0xff]  ;;  %v10474_v59 = vld [vmem:[#allocation50_spill] sm:$0xff]  ;;  %10478 = vst [vmem:[#allocation4_spill] sm:$0xff] %v8927_v50  ;;  %v8931_v17 = vadd.f32 %v8734_v37, %v1962_v3  ;;  %v2600_v41 = vadd.f32 %v10480_v28, %v2270_v24 }
 0x19d   : > { %v7131_v10 = vpop.f32.mrf.mxu0  ;;  %v2287_v34 = vadd.f32 %v10473_v27, %v10472_v35  ;;  %v8912_v40 = vadd.f32 %v10474_v59, %v1956_v51  ;;  %v8920_v22 = vadd.f32 %v8720_v9, %v1958_v48  ;;  %v2601_v51 = vadd.f32 %v8730_v42, %v2271_v2  ;;  %v10481_v35 = vld [vmem:[#allocation56_spill] sm:$0xff]  ;;  %v10482_v48 = vld [vmem:[#allocation57_spill] sm:$0xff]  ;;  %v10488_v50 = vld [vmem:[#allocation62_spill] sm:$0xff] }
 0x19e   : > { %v8899_v58 = vpop.f32.mrf.mxu1  ;;  %v8906_v62 = vadd.f32 %v7131_v10, %v8724_v11  ;;  %v2599_v11 = vadd.f32 %v10475_v55, %v2269_v12  ;;  %v10476_v10 = vld [vmem:[#allocation52_spill] sm:$0xff]  ;;  %10479 = vst [vmem:[#allocation5_spill] sm:$0xff] %v8931_v17  ;;  %v2603_v27 = vadd.f32 %v10481_v35, %v2273_v18  ;;  %v10483_v12 = vld [vmem:[#allocation58_spill] sm:$0xff]  ;;  %v10487_v37 = vld [vmem:[#allocation61_spill] sm:$0xff]  ;;  %v2604_v24 = vadd.f32 %v10488_v50, %v2274_v38  ;;  %v3410_v35 = vpop.permute.xlu0 %3409 }
 0x19f   : > { %v8915_v23 = vpop.f32.mrf.mxu0  ;;  %v8924_v30 = vadd.f32 %v10476_v10, %v1960_v5  ;;  %v2602_v55 = vadd.f32 %v10483_v12, %v2272_v14  ;;  %v10484_v5 = vld [vmem:[#allocation59_spill] sm:$0xff]  ;;  %v10486_v42 = vld [vmem:[#allocation60_spill] sm:$0xff]  ;;  %v2931_v3 = vadd.f32 %v10487_v37, %v2601_v51  ;;  %v2608_v38 = vadd.f32 %v8766_v49, %v2278_v53  ;;  %v10495_v50 = vld [vmem:[#allocation69_spill] sm:$0xff] }
 0x1a0   : > { %10470 = vst [vmem:[#allocation3_spill] sm:$0xff] %v8906_v62  ;;  %v8917_v56 = vpop.f32.mrf.mxu1  ;;  %v2929_v59 = vadd.f32 %v10482_v48, %v2599_v11  ;;  %v2928_v10 = vadd.f32 %v10484_v5, %v2598_v52  ;;  %v10485_v62 = vld [vmem:[#allocation54_spill] sm:$0xff]  ;;  %v2605_v2 = vadd.f32 %v10486_v42, %v2275_v33  ;;  %v10489_v28 = vld [vmem:[#allocation63_spill] sm:$0xff]  ;;  %v10490_v11 = vld [vmem:[#allocation64_spill] sm:$0xff]  ;;  %v2933_v52 = vadd.f32 %v8756_v31, %v2603_v27 }
 0x1a1   : > { %v7134_v9 = vpop.f32.mrf.mxu0  ;;  %v2930_v18 = vadd.f32 %v10489_v28, %v2600_v41  ;;  %v2607_v14 = vadd.f32 %v10490_v11, %v2277_v32  ;;  %v10491_v48 = vld [vmem:[#allocation65_spill] sm:$0xff]  ;;  %v10493_v5 = vld [vmem:[#allocation67_spill] sm:$0xff]  ;;  %v10494_v42 = vld [vmem:[#allocation68_spill] sm:$0xff]  ;;  %v8961_v41 = vadd.f32 %v10495_v50, %v2604_v24  ;;  %v8968_v32 = vpop.permute.xlu1 %3419  ;;  %v2613_v11 = vadd.f32 %v8782_v7, %v2283_v57 }
 0x1a2   : > { %v8939_v36 = vadd.f32 %v7134_v9, %v10485_v62  ;;  %v8941_v6 = vpop.f32.mrf.mxu1  ;;  %v2606_v62 = vadd.f32 %v10491_v48, %v2276_v61  ;;  %v10492_v9 = vld [vmem:[#allocation66_spill] sm:$0xff]  ;;  %v2609_v33 = vadd.f32 %v10493_v5, %v2279_v43  ;;  %v8957_v51 = vadd.f32 %v10494_v42, %v2605_v2  ;;  %v10498_v53 = vld [vmem:[#allocation72_spill] sm:$0xff]  ;;  %v8993_v7 = vpop.permute.xlu0 %3424 }
 0x1a3   : > { %v8947_v17 = vpop.f32.mrf.mxu0  ;;  %v8953_v12 = vadd.f32 %v10492_v9, %v2602_v55  ;;  %v8966_v31 = vld [vmem:[%s10304_s3] ss:$0 sm:$0xff]  ;;  %v2611_v61 = vadd.f32 %v8770_v19, %v2281_v47  ;;  %v10497_v55 = vld [vmem:[#allocation71_spill] sm:$0xff]  ;;  %v2612_v9 = vadd.f32 %v8802_v39, %v2282_v46  ;;  %v2614_v39 = vadd.f32 %v8829_v0, %v2284_v13 }
 0x1a4   : > { %v10496_v27 = vld [vmem:[#allocation70_spill] sm:$0xff]  ;;  %v2610_v2 = vadd.f32 %v10497_v55, %v2280_v21  ;;  %v2899_v28 = vpop.f32.mrf.mxu1  ;;  %v8976_v24 = vadd.f32 %v10498_v53, %v2606_v62  ;;  %v8980_v48 = vadd.f32 %v8784_v44, %v2609_v33  ;;  %v8989_v21 = vadd.f32 %v8804_v45, %v2608_v38 }
 0x1a5   : > { %v7180_v37 = vpop.f32.mrf.mxu0  ;;  %v8972_v43 = vadd.f32 %v10496_v27, %v2607_v14  ;;  %v8986_v19 = vld [vmem:[%s10305_s4] ss:$0 sm:$0xff]  ;;  %v8996_v44 = vadd.f32 %v8819_v63, %v2611_v61  ;;  %v2617_v46 = vadd.f32 %v8841_v16, %v2287_v34  ;;  %v9004_v45 = vadd.f32 %v8843_v25, %v2613_v11  ;;  %v3430_v13 = vpop.permute.xlu1 %3429  ;;  %v10499_v55 = vld [vmem:[#allocation5_spill] sm:$0xff] }
 0x1a6   : > { %v3259_v49 = vadd.f32 %v7180_v37, %v2929_v59  ;;  %v2615_v59 = vadd.f32 %v8817_v60, %v2285_v20  ;;  %v9000_v57 = vadd.f32 %v8831_v15, %v2610_v2  ;;  %v7172_v60 = vpop.f32.mrf.mxu1  ;;  %v2616_v63 = vadd.f32 %v8853_v8, %v8912_v40  ;;  %v9034_v27 = vpop.permute.xlu0 %3434 }
 0x1a7   : > { %v3129_v47 = vpop.f32.mrf.mxu0  ;;  %v9011_v0 = vadd.f32 %v8855_v26, %v2612_v9  ;;  %v2618_v16 = vadd.f32 %v8882_v1, %v8920_v22  ;;  %v9019_v34 = vadd.f32 %v8884_v4, %v2614_v39  ;;  %v9024_v26 = vadd.f32 %v8899_v58, %v2617_v46  ;;  %v10501_v11 = vld [vmem:[#allocation3_spill] sm:$0xff] }
 0x1a8   : > { %v3292_v14 = vmul.f32 %v8966_v31, %v3259_v49  ;;  %v3258_v62 = vadd.f32 %v3129_v47, %v2928_v10  ;;  %v9014_v15 = vadd.f32 %v8868_v54, %v2615_v59  ;;  %v2620_v54 = vadd.f32 %v8915_v23, %v8924_v30  ;;  %v2909_v4 = vpop.f32.mrf.mxu1 }
 0x1a9   : > { %v7183_v5 = vpop.f32.mrf.mxu0  ;;  %v9029_v40 = vadd.f32 %v8917_v56, %v2616_v63  ;;  %v9038_v58 = vadd.f32 %v8941_v6, %v8875_v29  ;;  %v9042_v23 = vadd.f32 %v8947_v17, %v10499_v55  ;;  %v9044_v56 = vadd.f32 %v2899_v28, %v2618_v16  ;;  %v9059_v47 = vpop.permute.xlu1 %3439 }
 0x1aa   : > { %v3325_v20 = vadd.f32 %v8986_v19, %v3292_v14  ;;  %v3291_v10 = vmul.f32 %v8966_v31, %v3258_v62  ;;  %v3261_v33 = vadd.f32 %v7183_v5, %v2931_v3  ;;  %v9053_v29 = vadd.f32 %v7172_v60, %v10501_v11  ;;  %v7175_v59 = vpop.f32.mrf.mxu1 }
 0x1ab   : > { %v3139_v25 = vpop.f32.mrf.mxu0  ;;  %v9055_v6 = vadd.f32 %v2909_v4, %v2620_v54 }
 0x1ac   : > { %v3351_v3 = vmax.f32 %v3325_v20, 0.0  ;;  %v3324_v42 = vadd.f32 %v8986_v19, %v3291_v10  ;;  %v3294_v8 = vmul.f32 %v8966_v31, %v3261_v33  ;;  %v3260_v1 = vadd.f32 %v3139_v25, %v2930_v18  ;;  %v9073_v25 = vpop.permute.xlu0 %3444 }
 0x1ad   : > { %v7186_v22 = vpop.f32.mrf.mxu0 }
 0x1ae   : > { %v9031_v38 = vmul.f32 %v3410_v35, %v3351_v3  ;;  %v3350_v50 = vmax.f32 %v3324_v42, 0.0  ;;  %v3327_v37 = vadd.f32 %v8986_v19, %v3294_v8  ;;  %v3263_v61 = vadd.f32 %v7186_v22, %v2933_v52  ;;  %v10500_v35 = vld [vmem:[#allocation2_spill] sm:$0xff] }
 0x1af   : > { %v3293_v30 = vmul.f32 %v8966_v31, %v3260_v1  ;;  %v3149_v18 = vpop.f32.mrf.mxu0  ;;  %v9076_v3 = vadd.f32 %v7175_v59, %v8939_v36  ;;  %v2919_v59 = vpop.f32.mrf.mxu1 }
 0x1b0   : > { %v9048_v2 = vmul.f32 %v10500_v35, %v3350_v50  ;;  %v3353_v49 = vmax.f32 %v3327_v37, 0.0  ;;  %v3296_v52 = vmul.f32 %v8966_v31, %v3263_v61  ;;  %v3262_v53 = vadd.f32 %v3149_v18, %v8953_v12  ;;  %v9093_v18 = vpop.permute.xlu1 %3449 }
 0x1b1   : > { %v3326_v17 = vadd.f32 %v8986_v19, %v3293_v30  ;;  %v7189_v28 = vpop.f32.mrf.mxu0  ;;  %v3584_v9 = vrot.slane %v9031_v38, 1  ;;  %v4039_v10 = vrot.slane %v9031_v38, 2 }
 0x1b2   : > { %v9062_v14 = vmul.f32 %v8968_v32, %v3353_v49  ;;  %v3329_v62 = vadd.f32 %v8986_v19, %v3296_v52  ;;  %v3295_v12 = vmul.f32 %v8966_v31, %v3262_v53  ;;  %v3265_v39 = vadd.f32 %v7189_v28, %v8957_v51  ;;  %v10502_v51 = vld [vmem:[#allocation4_spill] sm:$0xff] }
 0x1b3   : > { %v3352_v46 = vmax.f32 %v3326_v17, 0.0  ;;  %v3159_v5 = vpop.f32.mrf.mxu0  ;;  %v3583_v60 = vrot.slane %v9048_v2, 1  ;;  %v4038_v20 = vrot.slane %v9048_v2, 2 }
 0x1b4   : > { %v3355_v33 = vmax.f32 %v3329_v62, 0.0  ;;  %v3328_v63 = vadd.f32 %v8986_v19, %v3295_v12  ;;  %v3298_v32 = vmul.f32 %v8966_v31, %v3265_v39  ;;  %v3264_v16 = vadd.f32 %v3159_v5, %v8961_v41  ;;  %v10503_v5 = vld [vmem:[#allocation16_spill] sm:$0xff] }
 0x1b5   : > { %v9079_v42 = vmul.f32 %v10502_v51, %v3352_v46  ;;  %v7192_v8 = vpop.f32.mrf.mxu0  ;;  %v3585_v54 = vsel %vm3582_vm2, %v3583_v60, %v3584_v9  ;;  %v4040_v1 = vsel %vm4037_vm3, %v4038_v20, %v4039_v10  ;;  %v3588_v36 = vrot.slane %v9062_v14, 1  ;;  %v9130_v51 = vld [vmem:[%s10306_s5 + $0x30] sm:$0xff] }
 0x1b6   : > { %v3354_v22 = vmax.f32 %v3328_v63, 0.0  ;;  %v3331_v4 = vadd.f32 %v8986_v19, %v3298_v32  ;;  %v3297_v50 = vmul.f32 %v8966_v31, %v3264_v16  ;;  %7219 = vmatprep.mubr.msk.f32.mxu1 %vm3624_vm4, %v3585_v54  ;;  %7283 = vmatprep.mubr.msk.f32.mxu0 %vm3624_vm4, %v4040_v1  ;;  %v9088_v41 = vmul.f32 %v3430_v13, %v3355_v33 }
 0x1b7   : > { %v3267_v37 = vadd.f32 %v7192_v8, %v8972_v43  ;;  %v3169_v61 = vpop.f32.mrf.mxu0  ;;  %v3586_v55 = vrot.slane %v9079_v42, 1  ;;  %v4041_v30 = vrot.slane %v9079_v42, 2  ;;  %v4043_v53 = vrot.slane %v9062_v14, 2 }
 0x1b8   : > { %v9096_v35 = vmul.f32 %v8993_v7, %v3354_v22  ;;  %v3330_v49 = vadd.f32 %v8986_v19, %v3297_v50  ;;  %v3266_v52 = vadd.f32 %v3169_v61, %v8976_v24  ;;  %v3357_v62 = vmax.f32 %v3331_v4, 0.0  ;;  %v9112_v24 = vld [vmem:[%s10306_s5 + $0x18] sm:$0xff] }
 0x1b9   : > { %v3300_v13 = vmul.f32 %v8966_v31, %v3267_v37  ;;  %v7195_v11 = vpop.f32.mrf.mxu0  ;;  %v3587_v43 = vsel %vm3582_vm2, %v3584_v9, %v3586_v55  ;;  %v4042_v17 = vsel %vm4037_vm3, %v4039_v10, %v4041_v30  ;;  %v3589_v28 = vsel %vm3582_vm2, %v3586_v55, %v3588_v36  ;;  %v3455_v9 = vpop.permute.xlu0 %3454  ;;  %v10504_v4 = vld [vmem:[#allocation45_spill] sm:$0xff] }
 0x1ba   : > { %v3356_v12 = vmax.f32 %v3330_v49, 0.0  ;;  %v3299_v7 = vmul.f32 %v8966_v31, %v3266_v52  ;;  %v3269_v39 = vadd.f32 %v7195_v11, %v8980_v48  ;;  %7220 = vmatmul.mubr.msk.f32.vlgmr.msra.gmra.mxu1 %vm3624_vm4, %v3587_v43  ;;  %7284 = vmatmul.mubr.msk.f32.vlgmr.msra.gmra.mxu0 %vm3624_vm4, %v4042_v17  ;;  %v4044_v60 = vsel %vm4037_vm3, %v4041_v30, %v4043_v53 }
 0x1bb   : > { %v3333_v46 = vadd.f32 %v8986_v19, %v3300_v13  ;;  %7250 = vmatpush3.msra.mxu1 %v10503_v5  ;;  %7222 = vmatprep.mubr.msk.f32.mxu1 %vm3624_vm4, %v3589_v28  ;;  %v3179_v20 = vpop.f32.mrf.mxu0  ;;  %v3590_v48 = vrot.slane %v9096_v35, 1  ;;  %v4045_v10 = vrot.slane %v9096_v35, 2  ;;  %v9133_v8 = vadd.f32 %v2919_v59, %v9042_v23 }
 0x1bc   : > { %v9121_v33 = vmul.f32 %v9034_v27, %v3356_v12  ;;  %v3332_v63 = vadd.f32 %v8986_v19, %v3299_v7  ;;  %v3302_v32 = vmul.f32 %v8966_v31, %v3269_v39  ;;  %7286 = vmatprep.mubr.msk.f32.mxu0 %vm3624_vm4, %v4044_v60  ;;  %v3268_v16 = vadd.f32 %v3179_v20, %v8989_v21  ;;  %v3460_v21 = vpop.permute.xlu1 %3459 }
 0x1bd   : > { %v7198_v54 = vpop.f32.mrf.mxu0  ;;  %v3591_v27 = vsel %vm3582_vm2, %v3588_v36, %v3590_v48  ;;  %v4046_v1 = vsel %vm4037_vm3, %v4043_v53, %v4045_v10  ;;  %v3592_v22 = vrot.slane %v9088_v41, 1  ;;  %7313 = vmatprep.subr.mxu1 %v9112_v24  ;;  %7346 = vmatpush3.msra.mxu0 %v10504_v4  ;;  %v3359_v50 = vmax.f32 %v3333_v46, 0.0 }
 0x1be   : > { %v3358_v37 = vmax.f32 %v3332_v63, 0.0  ;;  %v3301_v61 = vmul.f32 %v8966_v31, %v3268_v16  ;;  %v3271_v55 = vadd.f32 %v7198_v54, %v8996_v44  ;;  %7223 = vmatmul.mubr.msk.f32.gmra.mxu1 %vm3624_vm4, %v3591_v27  ;;  %7287 = vmatmul.mubr.msk.f32.gmra.mxu0 %vm3624_vm4, %v4046_v1  ;;  %v9145_v23 = vmul.f32 %v9059_v47, %v3357_v62  ;;  %v3465_v47 = vpop.permute.xlu0 %3464 }
 0x1bf   : > { %v3593_v36 = vsel %vm3582_vm2, %v3590_v48, %v3592_v22  ;;  %v4047_v30 = vrot.slane %v9088_v41, 2  ;;  %v3189_v49 = vpop.f32.mrf.mxu0  ;;  %v3594_v52 = vrot.slane %v9121_v33, 1  ;;  %7409 = vmatprep.subr.mxu0 %v9130_v51  ;;  %v3335_v44 = vadd.f32 %v8986_v19, %v3302_v32 }
 0x1c0   : > { %v9152_v53 = vmul.f32 %v9073_v25, %v3358_v37  ;;  %v3334_v13 = vadd.f32 %v8986_v19, %v3301_v61  ;;  %v3304_v11 = vmul.f32 %v8966_v31, %v3271_v55  ;;  %7225 = vmatprep.mubr.msk.f32.mxu1 %vm3624_vm4, %v3593_v36  ;;  %v3270_v17 = vadd.f32 %v3189_v49, %v9000_v57  ;;  %v3470_v20 = vpop.permute.xlu1 %3469 }
 0x1c1   : > { %v4048_v43 = vsel %vm4037_vm3, %v4045_v10, %v4047_v30  ;;  %v7201_v28 = vpop.f32.mrf.mxu0  ;;  %v9161_v59 = vsel %vm3582_vm2, %v3592_v22, %v3594_v52  ;;  %v4049_v25 = vrot.slane %v9121_v33, 2  ;;  %v9165_v62 = vmul.f32 %v9093_v18, %v3359_v50 }
 0x1c2   : > { %v3360_v12 = vmax.f32 %v3334_v13, 0.0  ;;  %v3337_v7 = vadd.f32 %v8986_v19, %v3304_v11  ;;  %7289 = vmatprep.mubr.msk.f32.mxu0 %vm3624_vm4, %v4048_v43  ;;  %v3273_v39 = vadd.f32 %v7201_v28, %v9004_v45  ;;  %7226 = vmatmul.mubr.msk.f32.gmra.mxu1 %vm3624_vm4, %v9161_v59  ;;  %v3303_v57 = vmul.f32 %v8966_v31, %v3270_v17  ;;  %v3475_v50 = vpop.permute.xlu0 %3474 }
 0x1c3   : > { %v9174_v46 = vsel %vm4037_vm3, %v4047_v30, %v4049_v25  ;;  %v3596_v5 = vrot.slane %v9145_v23, 1  ;;  %v4051_v18 = vrot.slane %v9145_v23, 2  ;;  %v3199_v60 = vpop.f32.mrf.mxu0  ;;  %v3361_v48 = vmax.f32 %v3335_v44, 0.0 }
 0x1c4   : > { %v9178_v10 = vmul.f32 %v3455_v9, %v3360_v12  ;;  %v3306_v63 = vmul.f32 %v8966_v31, %v3273_v39  ;;  %7290 = vmatmul.mubr.msk.f32.gmra.mxu0 %vm3624_vm4, %v9174_v46  ;;  %v3272_v45 = vadd.f32 %v3199_v60, %v9011_v0  ;;  %v3336_v32 = vadd.f32 %v8986_v19, %v3303_v57  ;;  %v3480_v28 = vpop.permute.xlu1 %3479 }
 0x1c5   : > { %v9186_v16 = vsel %vm3582_vm2, %v3594_v52, %v3596_v5  ;;  %v9189_v54 = vsel %vm4037_vm3, %v4049_v25, %v4051_v18  ;;  %v7204_v27 = vpop.f32.mrf.mxu0  ;;  %v3598_v1 = vrot.slane %v9152_v53, 1  ;;  %v3363_v9 = vmax.f32 %v3337_v7, 0.0 }
 0x1c6   : > { %v3339_v22 = vadd.f32 %v8986_v19, %v3306_v63  ;;  %7228 = vmatprep.mubr.msk.f32.mxu1 %vm3624_vm4, %v9186_v16  ;;  %7292 = vmatprep.mubr.msk.f32.mxu0 %vm3624_vm4, %v9189_v54  ;;  %v3305_v0 = vmul.f32 %v8966_v31, %v3272_v45  ;;  %v4053_v4 = vrot.slane %v9152_v53, 2  ;;  %v3362_v37 = vmax.f32 %v3336_v32, 0.0 }
 0x1c7   : > { %v3275_v61 = vadd.f32 %v7204_v27, %v9014_v15  ;;  %v9201_v55 = vsel %vm3582_vm2, %v3596_v5, %v3598_v1  ;;  %v3600_v36 = vrot.slane %v9165_v62, 1  ;;  %v3209_v30 = vpop.f32.mrf.mxu0  ;;  %v9204_v49 = vmul.f32 %v3460_v21, %v3361_v48 }
 0x1c8   : > { %v3338_v52 = vadd.f32 %v8986_v19, %v3305_v0  ;;  %7229 = vmatmul.mubr.msk.f32.gmra.mxu1 %vm3624_vm4, %v9201_v55  ;;  %v9210_v44 = vsel %vm4037_vm3, %v4051_v18, %v4053_v4  ;;  %v4055_v13 = vrot.slane %v9165_v62, 2  ;;  %v3365_v11 = vmax.f32 %v3339_v22, 0.0 }
 0x1c9   : > { %v3308_v15 = vmul.f32 %v8966_v31, %v3275_v61  ;;  %7293 = vmatmul.mubr.msk.f32.gmra.mxu0 %vm3624_vm4, %v9210_v44  ;;  %v9217_v43 = vsel %vm3582_vm2, %v3598_v1, %v3600_v36  ;;  %v3274_v21 = vadd.f32 %v3209_v30, %v9019_v34  ;;  %v7207_v17 = vpop.f32.mrf.mxu0  ;;  %v9220_v25 = vmul.f32 %v3470_v20, %v3363_v9 }
 0x1ca   : > { %v9222_v12 = vmul.f32 %v3465_v47, %v3362_v37  ;;  %7231 = vmatprep.mubr.msk.f32.mxu1 %vm3624_vm4, %v9217_v43  ;;  %v9227_v7 = vsel %vm4037_vm3, %v4053_v4, %v4055_v13  ;;  %v3277_v39 = vadd.f32 %v7207_v17, %v9024_v26  ;;  %v3364_v57 = vmax.f32 %v3338_v52, 0.0  ;;  %v3485_v26 = vpop.permute.xlu0 %3484 }
 0x1cb   : > { %7295 = vmatprep.mubr.msk.f32.mxu0 %vm3624_vm4, %v9227_v7  ;;  %v3307_v34 = vmul.f32 %v8966_v31, %v3274_v21  ;;  %v3602_v5 = vrot.slane %v9178_v10, 1  ;;  %v4057_v18 = vrot.slane %v9178_v10, 2  ;;  %v3219_v47 = vpop.f32.mrf.mxu0  ;;  %v3341_v60 = vadd.f32 %v8986_v19, %v3308_v15 }
 0x1cc   : > { %v3310_v20 = vmul.f32 %v8966_v31, %v3277_v39  ;;  %v3604_v48 = vrot.slane %v9204_v49, 1  ;;  %v4059_v63 = vrot.slane %v9204_v49, 2  ;;  %v9239_v45 = vmul.f32 %v3480_v28, %v3365_v11  ;;  %v3490_v11 = vpop.permute.xlu1 %3489 }
 0x1cd   : > { %v3340_v32 = vadd.f32 %v8986_v19, %v3307_v34  ;;  %v9243_v27 = vsel %vm3582_vm2, %v3600_v36, %v3602_v5  ;;  %v9246_v1 = vsel %vm4037_vm3, %v4055_v13, %v4057_v18  ;;  %v7210_v9 = vpop.f32.mrf.mxu0  ;;  %v3606_v37 = vrot.slane %v9222_v12, 1 }
 0x1ce   : > { %v3343_v22 = vadd.f32 %v8986_v19, %v3310_v20  ;;  %7232 = vmatmul.mubr.msk.f32.gmra.mxu1 %vm3624_vm4, %v9243_v27  ;;  %7296 = vmatmul.mubr.msk.f32.gmra.mxu0 %vm3624_vm4, %v9246_v1  ;;  %v9254_v0 = vsel %vm3582_vm2, %v3602_v5, %v3604_v48  ;;  %v9257_v4 = vsel %vm4037_vm3, %v4057_v18, %v4059_v63  ;;  %v3367_v15 = vmax.f32 %v3341_v60, 0.0  ;;  %v3495_v60 = vpop.permute.xlu0 %3494 }
 0x1cf   : > { %v9260_v61 = vmul.f32 %v3475_v50, %v3364_v57  ;;  %v3366_v36 = vmax.f32 %v3340_v32, 0.0  ;;  %7234 = vmatprep.mubr.msk.f32.mxu1 %vm3624_vm4, %v9254_v0  ;;  %7298 = vmatprep.mubr.msk.f32.mxu0 %vm3624_vm4, %v9257_v4  ;;  %v3276_v30 = vadd.f32 %v3219_v47, %v9029_v40  ;;  %v3279_v52 = vadd.f32 %v7210_v9, %v9038_v58  ;;  %v3229_v13 = vpop.f32.mrf.mxu0 }
 0x1d0   : > { %v9269_v21 = vsel %vm3582_vm2, %v3604_v48, %v3606_v37  ;;  %v4061_v50 = vrot.slane %v9222_v12, 2  ;;  %v3608_v17 = vrot.slane %v9220_v25, 1  ;;  %v3369_v28 = vmax.f32 %v3343_v22, 0.0 }
 0x1d1   : > { %v3309_v39 = vmul.f32 %v8966_v31, %v3276_v30  ;;  %v3312_v57 = vmul.f32 %v8966_v31, %v3279_v52  ;;  %v4063_v34 = vrot.slane %v9220_v25, 2  ;;  %v7213_v40 = vpop.f32.mrf.mxu0  ;;  %v9276_v5 = vmul.f32 %v3485_v26, %v3366_v36 }
 0x1d2   : > { %7235 = vmatmul.mubr.msk.f32.gmra.mxu1 %vm3624_vm4, %v9269_v21  ;;  %v9281_v58 = vsel %vm4037_vm3, %v4059_v63, %v4061_v50  ;;  %v9284_v18 = vsel %vm3582_vm2, %v3606_v37, %v3608_v17  ;;  %v3278_v47 = vadd.f32 %v3229_v13, %v9044_v56  ;;  %v3610_v26 = vrot.slane %v9260_v61, 1 }
 0x1d3   : > { %10505 = vst [vmem:[#allocation8_spill] sm:$0xff] %v9284_v18  ;;  %v3342_v20 = vadd.f32 %v8986_v19, %v3309_v39  ;;  %v9289_v48 = vadd.f32 %v8986_v19, %v3312_v57  ;;  %7299 = vmatmul.mubr.msk.f32.gmra.mxu0 %vm3624_vm4, %v9281_v58  ;;  %7237 = vmatprep.mubr.msk.f32.mxu1 %vm3624_vm4, %v9284_v18  ;;  %v3239_v32 = vpop.f32.mrf.mxu0  ;;  %v4065_v22 = vrot.slane %v9260_v61, 2  ;;  %v3612_v37 = vrot.slane %v9239_v45, 1  ;;  %v3500_v39 = vpop.permute.xlu1 %3499 }
 0x1d4   : > { %v9296_v63 = vsel %vm4037_vm3, %v4061_v50, %v4063_v34  ;;  %v3311_v56 = vmul.f32 %v8966_v31, %v3278_v47  ;;  %v3281_v9 = vadd.f32 %v7213_v40, %v9053_v29  ;;  %v9305_v36 = vmul.f32 %v3490_v11, %v3367_v15 }
 0x1d5   : > { %7301 = vmatprep.mubr.msk.f32.mxu0 %vm3624_vm4, %v9296_v63  ;;  %v3368_v30 = vmax.f32 %v3342_v20, 0.0  ;;  %v9308_v52 = vsel %vm3582_vm2, %v3608_v17, %v3610_v26  ;;  %v4067_v13 = vrot.slane %v9239_v45, 2  ;;  %v7216_v50 = vpop.f32.mrf.mxu0  ;;  %v9316_v29 = vsel %vm4037_vm3, %v4063_v34, %v4065_v22 }
 0x1d6   : > { %10506 = vst [vmem:[#allocation6_spill] sm:$0xff] %v9308_v52  ;;  %v3344_v57 = vadd.f32 %v8986_v19, %v3311_v56  ;;  %v3314_v47 = vmul.f32 %v8966_v31, %v3281_v9  ;;  %7238 = vmatmul.mubr.msk.f32.gmra.mxu1 %vm3624_vm4, %v9308_v52  ;;  %v9319_v11 = vsel %vm3582_vm2, %v3610_v26, %v3612_v37  ;;  %v3614_v20 = vrot.slane %v9276_v5, 1  ;;  %v3505_v9 = vpop.permute.xlu0 %3504 }
 0x1d7   : > { %10507 = vst [vmem:[#allocation7_spill] sm:$0xff] %v9319_v11  ;;  %v9321_v15 = vmul.f32 %v3500_v39, %v3369_v28  ;;  %v9323_v17 = vmul.f32 %v3495_v60, %v3368_v30  ;;  %7302 = vmatmul.mubr.msk.f32.gmra.mxu0 %vm3624_vm4, %v9316_v29  ;;  %7240 = vmatprep.mubr.msk.f32.mxu1 %vm3624_vm4, %v9319_v11  ;;  %v3249_v26 = vpop.f32.mrf.mxu0  ;;  %v3616_v39 = vrot.slane %v9305_v36, 1  ;;  %v4606_v18 = vrot.slane %v9305_v36, 5 }
 0x1d8   : > { %v9330_v40 = vsel %vm4037_vm3, %v4065_v22, %v4067_v13  ;;  %v3370_v34 = vmax.f32 %v3344_v57, 0.0  ;;  %v9334_v56 = vadd.f32 %v8986_v19, %v3314_v47  ;;  %v3280_v28 = vadd.f32 %v3239_v32, %v9055_v6 }
 0x1d9   : > { %7304 = vmatprep.mubr.msk.f32.mxu0 %vm3624_vm4, %v9330_v40  ;;  %v3283_v60 = vadd.f32 %v7216_v50, %v9076_v3  ;;  %v9341_v30 = vsel %vm3582_vm2, %v3612_v37, %v3614_v20  ;;  %v4069_v22 = vrot.slane %v9276_v5, 2  ;;  %v4071_v57 = vrot.slane %v9305_v36, 2 }
 0x1da   : > { %10508 = vst [vmem:[#allocation10_spill] sm:$0xff] %v9341_v30  ;;  %v9346_v47 = vmul.f32 %v3505_v9, %v3370_v34  ;;  %v3313_v11 = vmul.f32 %v8966_v31, %v3280_v28  ;;  %7241 = vmatmul.mubr.msk.f32.gmra.mxu1 %vm3624_vm4, %v9341_v30  ;;  %v9356_v3 = vsel %vm3582_vm2, %v3614_v20, %v3616_v39 }
 0x1db   : > { %v3316_v52 = vmul.f32 %v8966_v31, %v3283_v60  ;;  %v9353_v6 = vsel %vm4037_vm3, %v4067_v13, %v4069_v22  ;;  %10509 = vst [vmem:[#allocation9_spill] sm:$0xff] %v9356_v3  ;;  %v9359_v32 = vsel %vm4037_vm3, %v4069_v22, %v4071_v57  ;;  %v3282_v37 = vadd.f32 %v3249_v26, %v9133_v8 }
 0x1dc   : > { %v9363_v50 = vadd.f32 %v8986_v19, %v3313_v11  ;;  %7305 = vmatmul.mubr.msk.f32.gmra.mxu0 %vm3624_vm4, %v9353_v6  ;;  %7243 = vmatprep.mubr.msk.f32.mxu1 %vm3624_vm4, %v9356_v3  ;;  %v3618_v13 = vrot.slane %v9323_v17, 1  ;;  %v4073_v8 = vrot.slane %v9323_v17, 2  ;;  %v3620_v11 = vrot.slane %v9321_v15, 1 }
 0x1dd   : > { %v9366_v34 = vadd.f32 %v8986_v19, %v3316_v52  ;;  %7307 = vmatprep.mubr.msk.f32.mxu0 %vm3624_vm4, %v9359_v32  ;;  %v3315_v20 = vmul.f32 %v8966_v31, %v3282_v37  ;;  %v4075_v52 = vrot.slane %v9321_v15, 2  ;;  %v10325_v60 = vrot.slane %v9346_v47, 1 }
 0x1de   : > { %v9380_v28 = vsel %vm3582_vm2, %v3616_v39, %v3618_v13  ;;  %v9389_v9 = vsel %vm4037_vm3, %v4071_v57, %v4073_v8  ;;  %v9392_v31 = vsel %vm3582_vm2, %v3618_v13, %v3620_v11  ;;  %v10326_v39 = vrot.slane %v9346_v47, 2 }
 0x1df   : > { %10510 = vst [vmem:[#allocation11_spill] sm:$0xff] %v9380_v28  ;;  %v9384_v26 = vadd.f32 %v8986_v19, %v3315_v20  ;;  %7244 = vmatmul.mubr.msk.f32.gmra.mxu1 %vm3624_vm4, %v9380_v28  ;;  %10511 = vst [vmem:[#allocation12_spill] sm:$0xff] %v9392_v31  ;;  %v9395_v22 = vsel %vm4037_vm3, %v4073_v8, %v4075_v52  ;;  %v9404_v19 = vsel %vm3582_vm2, %v3620_v11, %v10325_v60 }
 0x1e0   : > { %7308 = vmatmul.mubr.msk.f32.gmra.mxu0 %vm3624_vm4, %v9389_v9  ;;  %7246 = vmatprep.mubr.msk.f32.mxu1 %vm3624_vm4, %v9392_v31  ;;  %10512 = vst [vmem:[#allocation15_spill] sm:$0xff] %v9404_v19  ;;  %v4577_v57 = vrot.slane %v9079_v42, 5  ;;  %v9413_v37 = vsel %vm4037_vm3, %v4075_v52, %v10326_v39  ;;  %v4578_v13 = vrot.slane %v9062_v14, 5  ;;  %v4580_v20 = vrot.slane %v9096_v35, 5  ;;  %v9433_v39 = vld [vmem:[%s10306_s5 + $0x28] sm:$0xff] }
 0x1e1   : > { %7310 = vmatprep.mubr.msk.f32.mxu0 %vm3624_vm4, %v9395_v22  ;;  %v4582_v11 = vrot.slane %v9088_v41, 5  ;;  %v4584_v60 = vrot.slane %v9121_v33, 5  ;;  %v3374_v31 = vmax.f32 %v9384_v26, 0.0  ;;  %v4602_v28 = vrot.slane %v9239_v45, 5 }
 0x1e2   : > { %v4579_v8 = vsel %vm4576_vm5, %v4577_v57, %v4578_v13  ;;  %v4581_v52 = vsel %vm4576_vm5, %v4578_v13, %v4580_v20  ;;  %v9441_v57 = vld [vmem:[%s10306_s5 + $0x40] sm:$0xff]  ;;  %v4588_v13 = vrot.slane %v9152_v53, 5 }
 0x1e3   : > { %7247 = vmatmul.mubr.msk.f32.gmra.mxu1 %vm3624_vm4, %v9404_v19  ;;  %v4600_v19 = vrot.slane %v9260_v61, 5 }
 0x1e4   : > { %7311 = vmatmul.mubr.msk.f32.gmra.mxu0 %vm3624_vm4, %v9413_v37  ;;  %7251 = vmatprep.mubr.msk.f32.mxu1 %vm3624_vm4, %v9048_v2  ;;  %v4583_v2 = vsel %vm4576_vm5, %v4580_v20, %v4582_v11 }
 0x1e5   : > { %7347 = vmatprep.mubr.msk.f32.mxu0 %vm3624_vm4, %v4579_v8 }
 0x1e7   : > { %7252 = vmatmul.mubr.msk.f32.vlgmr.msra.gmra.mxu1 %vm3624_vm4, %v9031_v38  ;;  %v4586_v38 = vrot.slane %v9145_v23, 5 }
 0x1e8   : > { %7314 = vmatpush3.msra.mxu1 %v9112_v24  ;;  %7348 = vmatmul.mubr.msk.f32.vlgmr.msra.gmra.mxu0 %vm3624_vm4, %v4581_v52  ;;  %v4585_v24 = vsel %vm4576_vm5, %v4582_v11, %v4584_v60  ;;  %v4592_v11 = vrot.slane %v9178_v10, 5  ;;  %v3510_v52 = vpop.permute.xlu1 %3509 }
 0x1e9   : > { %7254 = vmatprep.mubr.msk.f32.mxu1 %vm3624_vm4, %v9079_v42  ;;  %7350 = vmatprep.mubr.msk.f32.mxu0 %vm3624_vm4, %v4583_v2  ;;  %v4587_v20 = vsel %vm4576_vm5, %v4584_v60, %v4586_v38  ;;  %v4589_v8 = vsel %vm4576_vm5, %v4586_v38, %v4588_v13  ;;  %v4594_v60 = vrot.slane %v9204_v49, 5  ;;  %v4596_v38 = vrot.slane %v9222_v12, 5 }
 0x1ea   : > { %7377 = vmatprep.subr.mxu1 %v9433_v39  ;;  %7410 = vmatpush3.msra.mxu0 %v9130_v51  ;;  %v4590_v51 = vrot.slane %v9165_v62, 5 }
 0x1eb   : > { %7255 = vmatmul.mubr.msk.f32.gmra.mxu1 %vm3624_vm4, %v9062_v14  ;;  %7473 = vmatprep.subr.mxu0 %v9441_v57 }
 0x1ec   : > { %7351 = vmatmul.mubr.msk.f32.gmra.mxu0 %vm3624_vm4, %v4585_v24  ;;  %7257 = vmatprep.mubr.msk.f32.mxu1 %vm3624_vm4, %v9096_v35  ;;  %v4591_v2 = vsel %vm4576_vm5, %v4588_v13, %v4590_v51  ;;  %v4593_v24 = vsel %vm4576_vm5, %v4590_v51, %v4592_v11  ;;  %v3515_v13 = vpop.permute.xlu0 %3514  ;;  %v4597_v51 = vsel %vm4576_vm5, %v4594_v60, %v4596_v38 }
 0x1ed   : > { %7353 = vmatprep.mubr.msk.f32.mxu0 %vm3624_vm4, %v4587_v20  ;;  %v4595_v20 = vsel %vm4576_vm5, %v4592_v11, %v4594_v60 }
 0x1ef   : > { %7258 = vmatmul.mubr.msk.f32.gmra.mxu1 %vm3624_vm4, %v9088_v41 }
 0x1f0   : > { %7354 = vmatmul.mubr.msk.f32.gmra.mxu0 %vm3624_vm4, %v4589_v8  ;;  %7260 = vmatprep.mubr.msk.f32.mxu1 %vm3624_vm4, %v9121_v33  ;;  %v3520_v8 = vpop.permute.xlu1 %3519  ;;  %v3525_v3 = vpop.permute.xlu0 %3524 }
 0x1f1   : > { %7356 = vmatprep.mubr.msk.f32.mxu0 %vm3624_vm4, %v4591_v2  ;;  %v4598_v2 = vrot.slane %v9220_v25, 5 }
 0x1f3   : > { %7261 = vmatmul.mubr.msk.f32.gmra.mxu1 %vm3624_vm4, %v9145_v23  ;;  %v4599_v11 = vsel %vm4576_vm5, %v4596_v38, %v4598_v2  ;;  %v4601_v60 = vsel %vm4576_vm5, %v4598_v2, %v4600_v19  ;;  %v9503_v38 = vmul.f32 %v3525_v3, %v3374_v31  ;;  %v3371_v2 = vmax.f32 %v9289_v48, 0.0 }
 0x1f4   : > { %7357 = vmatmul.mubr.msk.f32.gmra.mxu0 %vm3624_vm4, %v4593_v24  ;;  %7263 = vmatprep.mubr.msk.f32.mxu1 %vm3624_vm4, %v9152_v53  ;;  %v3373_v24 = vmax.f32 %v9334_v56, 0.0  ;;  %v3530_v30 = vpop.permute.xlu1 %3529  ;;  %v4603_v56 = vsel %vm4576_vm5, %v4600_v19, %v4602_v28  ;;  %v4608_v19 = vrot.slane %v9323_v17, 5 }
 0x1f5   : > { %7359 = vmatprep.mubr.msk.f32.mxu0 %vm3624_vm4, %v4595_v20  ;;  %v3375_v20 = vmax.f32 %v9366_v34, 0.0  ;;  %v9520_v31 = vmul.f32 %v3510_v52, %v3371_v2  ;;  %v5320_v2 = vrot.slane %v9503_v38, 1 }
 0x1f6   : > { %v9501_v34 = vmul.f32 %v3520_v8, %v3373_v24  ;;  %v4609_v24 = vsel %vm4576_vm5, %v4606_v18, %v4608_v19 }
 0x1f7   : > { %7264 = vmatmul.mubr.msk.f32.gmra.mxu1 %vm3624_vm4, %v9165_v62  ;;  %v3557_v26 = vmul.f32 %v3530_v30, %v3375_v20  ;;  %v4612_v20 = vrot.slane %v9346_v47, 5 }
 0x1f8   : > { %7360 = vmatmul.mubr.msk.f32.gmra.mxu0 %vm3624_vm4, %v4597_v51  ;;  %7266 = vmatprep.mubr.msk.f32.mxu1 %vm3624_vm4, %v9178_v10  ;;  %v4604_v51 = vrot.slane %v9276_v5, 5  ;;  %v5525_v48 = vrot.slane %v9501_v34, 2 }
 0x1f9   : > { %7362 = vmatprep.mubr.msk.f32.mxu0 %vm3624_vm4, %v4599_v11  ;;  %v3372_v11 = vmax.f32 %v9363_v50, 0.0  ;;  %v5529_v3 = vrot.slane %v3557_v26, 2  ;;  %v5527_v50 = vrot.slane %v9503_v38, 2  ;;  %v5322_v52 = vrot.slane %v3557_v26, 1 }
 0x1fa   : > { %v4607_v30 = vsel %vm4576_vm5, %v4604_v51, %v4606_v18  ;;  %v5318_v18 = vrot.slane %v9501_v34, 1 }
 0x1fb   : > { %7267 = vmatmul.mubr.msk.f32.gmra.mxu1 %vm3624_vm4, %v9204_v49  ;;  %v9522_v8 = vmul.f32 %v3515_v13, %v3372_v11  ;;  %v4614_v11 = vrot.slane %v9520_v31, 5  ;;  %v9551_v26 = vsel %vm3582_vm2, %v5320_v2, %v5322_v52  ;;  %v4311_v52 = vrot.slane %v9096_v35, 4 }
 0x1fc   : > { %7363 = vmatmul.mubr.msk.f32.gmra.mxu0 %vm3624_vm4, %v4601_v60  ;;  %7269 = vmatprep.mubr.msk.f32.mxu1 %vm3624_vm4, %v9222_v12  ;;  %v4605_v60 = vsel %vm4576_vm5, %v4602_v28, %v4604_v51  ;;  %v4610_v28 = vrot.slane %v9321_v15, 5  ;;  %v9532_v51 = vsel %vm4037_vm3, %v5525_v48, %v5527_v50 }
 0x1fd   : > { %7365 = vmatprep.mubr.msk.f32.mxu0 %vm3624_vm4, %v4603_v56  ;;  %v9535_v56 = vsel %vm4037_vm3, %v5527_v50, %v5529_v3  ;;  %v4308_v3 = vrot.slane %v9079_v42, 4  ;;  %v4615_v50 = vsel %vm4576_vm5, %v4612_v20, %v4614_v11 }
 0x1fe   : > { %v4611_v13 = vsel %vm4576_vm5, %v4608_v19, %v4610_v28  ;;  %v4613_v19 = vsel %vm4576_vm5, %v4610_v28, %v4612_v20 }
 0x1ff   : > { %7270 = vmatmul.mubr.msk.f32.gmra.mxu1 %vm3624_vm4, %v9220_v25 }
 0x200   : > { %7366 = vmatmul.mubr.msk.f32.gmra.mxu0 %vm3624_vm4, %v4605_v60  ;;  %7272 = vmatprep.mubr.msk.f32.mxu1 %vm3624_vm4, %v9260_v61  ;;  %v9548_v60 = vsel %vm3582_vm2, %v5318_v18, %v5320_v2  ;;  %v4313_v2 = vrot.slane %v9088_v41, 4 }
 0x201   : > { %7368 = vmatprep.mubr.msk.f32.mxu0 %vm3624_vm4, %v4607_v30  ;;  %v4616_v30 = vrot.slane %v9522_v8, 5 }
 0x203   : > { %7273 = vmatmul.mubr.msk.f32.gmra.mxu1 %vm3624_vm4, %v9239_v45  ;;  %v4617_v28 = vsel %vm4576_vm5, %v4614_v11, %v4616_v30  ;;  %v9580_v11 = vld [vmem:[%s10306_s5 + $0x38] sm:$0xff]  ;;  %v4314_v30 = vsel %vm499_vm0, %v4311_v52, %v4313_v2 }
 0x204   : > { %7369 = vmatmul.mubr.msk.f32.gmra.mxu0 %vm3624_vm4, %v4609_v24  ;;  %7275 = vmatprep.mubr.msk.f32.mxu1 %vm3624_vm4, %v9276_v5  ;;  %v4309_v24 = vrot.slane %v9062_v14, 4 }
 0x205   : > { %7371 = vmatprep.mubr.msk.f32.mxu0 %vm3624_vm4, %v4611_v13 }
 0x206   : > { %v4310_v13 = vsel %vm499_vm0, %v4308_v3, %v4309_v24  ;;  %v4312_v20 = vsel %vm499_vm0, %v4309_v24, %v4311_v52  ;;  %v4317_v3 = vrot.slane %v9145_v23, 4  ;;  %v4319_v24 = vrot.slane %v9152_v53, 4 }
 0x207   : > { %7276 = vmatmul.mubr.msk.f32.gmra.mxu1 %vm3624_vm4, %v9305_v36  ;;  %v4321_v52 = vrot.slane %v9165_v62, 4 }
 0x208   : > { %7372 = vmatmul.mubr.msk.f32.gmra.mxu0 %vm3624_vm4, %v4613_v19  ;;  %7278 = vmatprep.mubr.msk.f32.mxu1 %vm3624_vm4, %v9323_v17  ;;  %v4315_v19 = vrot.slane %v9121_v33, 4 }
 0x209   : > { %7374 = vmatprep.mubr.msk.f32.mxu0 %vm3624_vm4, %v4615_v50 }
 0x20a   : > { %v4316_v50 = vsel %vm499_vm0, %v4313_v2, %v4315_v19 }
 0x20b   : > { %7279 = vmatmul.mubr.msk.f32.gmra.mxu1 %vm3624_vm4, %v9321_v15 }
 0x20c   : > { %7375 = vmatmul.mubr.msk.f32.gmra.mxu0 %vm3624_vm4, %v4617_v28  ;;  %7315 = vmatprep.mubr.msk.f32.mxu1 %vm3624_vm4, %v4310_v13  ;;  %v4320_v28 = vsel %vm499_vm0, %v4317_v3, %v4319_v24  ;;  %v4323_v13 = vrot.slane %v9178_v10, 4 }
 0x20d   : > { %7411 = vmatprep.mubr.msk.f32.mxu0 %vm3624_vm4, %v9088_v41 }
 0x20e   : > { %v4324_v2 = vsel %vm499_vm0, %v4321_v52, %v4323_v13 }
 0x20f   : > { %7316 = vmatmul.mubr.msk.f32.vlgmr.msra.gmra.mxu1 %vm3624_vm4, %v4312_v20  ;;  %v4325_v20 = vrot.slane %v9204_v49, 4 }
 0x210   : > { %7378 = vmatpush3.msra.mxu1 %v9433_v39  ;;  %7412 = vmatmul.mubr.msk.f32.vlgmr.msra.gmra.mxu0 %vm3624_vm4, %v9121_v33  ;;  %v4318_v39 = vsel %vm499_vm0, %v4315_v19, %v4317_v3  ;;  %v4327_v19 = vrot.slane %v9222_v12, 4  ;;  %v4329_v3 = vrot.slane %v9220_v25, 4 }
 0x211   : > { %7318 = vmatprep.mubr.msk.f32.mxu1 %vm3624_vm4, %v4314_v30  ;;  %7414 = vmatprep.mubr.msk.f32.mxu0 %vm3624_vm4, %v9145_v23  ;;  %v4326_v30 = vsel %vm499_vm0, %v4323_v13, %v4325_v20  ;;  %v4335_v13 = vrot.slane %v9276_v5, 4 }
 0x212   : > { %7441 = vmatprep.subr.mxu1 %v9580_v11  ;;  %7474 = vmatpush3.msra.mxu0 %v9441_v57  ;;  %v4322_v57 = vsel %vm499_vm0, %v4319_v24, %v4321_v52  ;;  %v4331_v24 = vrot.slane %v9260_v61, 4  ;;  %v4333_v52 = vrot.slane %v9239_v45, 4 }
 0x213   : > { %7319 = vmatmul.mubr.msk.f32.gmra.mxu1 %vm3624_vm4, %v4316_v50  ;;  %v4328_v50 = vsel %vm499_vm0, %v4325_v20, %v4327_v19  ;;  %v4337_v20 = vrot.slane %v9305_v36, 4 }
 0x214   : > { %7415 = vmatmul.mubr.msk.f32.gmra.mxu0 %vm3624_vm4, %v9152_v53  ;;  %7321 = vmatprep.mubr.msk.f32.mxu1 %vm3624_vm4, %v4318_v39  ;;  %v4330_v39 = vsel %vm499_vm0, %v4327_v19, %v4329_v3  ;;  %v4339_v19 = vrot.slane %v9323_v17, 4 }
 0x215   : > { %7417 = vmatprep.mubr.msk.f32.mxu0 %vm3624_vm4, %v9165_v62 }
 0x217   : > { %7322 = vmatmul.mubr.msk.f32.gmra.mxu1 %vm3624_vm4, %v4320_v28  ;;  %v4332_v28 = vsel %vm499_vm0, %v4329_v3, %v4331_v24  ;;  %v4341_v3 = vrot.slane %v9321_v15, 4 }
 0x218   : > { %7418 = vmatmul.mubr.msk.f32.gmra.mxu0 %vm3624_vm4, %v9178_v10  ;;  %7324 = vmatprep.mubr.msk.f32.mxu1 %vm3624_vm4, %v4322_v57  ;;  %v4334_v57 = vsel %vm499_vm0, %v4331_v24, %v4333_v52  ;;  %v4343_v24 = vrot.slane %v9346_v47, 4 }
 0x219   : > { %7420 = vmatprep.mubr.msk.f32.mxu0 %vm3624_vm4, %v9204_v49 }
 0x21b   : > { %7325 = vmatmul.mubr.msk.f32.gmra.mxu1 %vm3624_vm4, %v4324_v2  ;;  %v4336_v2 = vsel %vm499_vm0, %v4333_v52, %v4335_v13  ;;  %v4345_v52 = vrot.slane %v9520_v31, 4 }
 0x21c   : > { %7421 = vmatmul.mubr.msk.f32.gmra.mxu0 %vm3624_vm4, %v9222_v12  ;;  %7327 = vmatprep.mubr.msk.f32.mxu1 %vm3624_vm4, %v4326_v30  ;;  %v4338_v30 = vsel %vm499_vm0, %v4335_v13, %v4337_v20  ;;  %v4347_v13 = vrot.slane %v9522_v8, 4 }
 0x21d   : > { %7423 = vmatprep.mubr.msk.f32.mxu0 %vm3624_vm4, %v9220_v25 }
 0x21f   : > { %7328 = vmatmul.mubr.msk.f32.gmra.mxu1 %vm3624_vm4, %v4328_v50  ;;  %v4340_v50 = vsel %vm499_vm0, %v4337_v20, %v4339_v19  ;;  %v4846_v20 = vrot.slane %v9079_v42, 6 }
 0x220   : > { %7424 = vmatmul.mubr.msk.f32.gmra.mxu0 %vm3624_vm4, %v9260_v61  ;;  %7330 = vmatprep.mubr.msk.f32.mxu1 %vm3624_vm4, %v4330_v39  ;;  %v4342_v39 = vsel %vm499_vm0, %v4339_v19, %v4341_v3  ;;  %v4348_v19 = vsel %vm499_vm0, %v4345_v52, %v4347_v13 }
 0x221   : > { %7426 = vmatprep.mubr.msk.f32.mxu0 %vm3624_vm4, %v9239_v45 }
 0x223   : > { %7331 = vmatmul.mubr.msk.f32.gmra.mxu1 %vm3624_vm4, %v4332_v28  ;;  %v4344_v28 = vsel %vm499_vm0, %v4341_v3, %v4343_v24 }
 0x224   : > { %7427 = vmatmul.mubr.msk.f32.gmra.mxu0 %vm3624_vm4, %v9276_v5  ;;  %7333 = vmatprep.mubr.msk.f32.mxu1 %vm3624_vm4, %v4334_v57  ;;  %v4346_v57 = vsel %vm499_vm0, %v4343_v24, %v4345_v52  ;;  %v10513_v24 = vrot.slane %v9346_v47, 2 }
 0x225   : > { %7429 = vmatprep.mubr.msk.f32.mxu0 %vm3624_vm4, %v9305_v36 }
 0x227   : > { %7334 = vmatmul.mubr.msk.f32.gmra.mxu1 %vm3624_vm4, %v4336_v2  ;;  %v4847_v2 = vrot.slane %v9062_v14, 6  ;;  %v4851_v14 = vrot.slane %v9088_v41, 6 }
 0x228   : > { %7430 = vmatmul.mubr.msk.f32.gmra.mxu0 %vm3624_vm4, %v9323_v17  ;;  %7336 = vmatprep.mubr.msk.f32.mxu1 %vm3624_vm4, %v4338_v30  ;;  %v4849_v30 = vrot.slane %v9096_v35, 6 }
 0x229   : > { %7432 = vmatprep.mubr.msk.f32.mxu0 %vm3624_vm4, %v9321_v15  ;;  %v4848_v3 = vsel %vm4845_vm6, %v4846_v20, %v4847_v2 }
 0x22a   : > { %v4850_v42 = vsel %vm4845_vm6, %v4847_v2, %v4849_v30  ;;  %v4852_v35 = vsel %vm4845_vm6, %v4849_v30, %v4851_v14  ;;  %v10522_v2 = vrot.slane %v9346_v47, 1 }
 0x22b   : > { %7337 = vmatmul.mubr.msk.f32.gmra.mxu1 %vm3624_vm4, %v4340_v50  ;;  %v4853_v50 = vrot.slane %v9121_v33, 6  ;;  %v4857_v33 = vrot.slane %v9152_v53, 6 }
 0x22c   : > { %7433 = vmatmul.mubr.msk.f32.gmra.mxu0 %vm3624_vm4, %v9346_v47  ;;  %7339 = vmatprep.mubr.msk.f32.mxu1 %vm3624_vm4, %v4342_v39 }
 0x22d   : > { %7435 = vmatprep.mubr.msk.f32.mxu0 %vm3624_vm4, %v9520_v31  ;;  %v4854_v41 = vsel %vm4845_vm6, %v4851_v14, %v4853_v50 }
 0x22f   : > { %7340 = vmatmul.mubr.msk.f32.gmra.mxu1 %vm3624_vm4, %v4344_v28  ;;  %v4885_v28 = vrot.slane %v9522_v8, 6 }
 0x230   : > { %7436 = vmatmul.mubr.msk.f32.gmra.mxu0 %vm3624_vm4, %v9522_v8  ;;  %7342 = vmatprep.mubr.msk.f32.mxu1 %vm3624_vm4, %v4346_v57 }
 0x231   : > { %7438 = vmatprep.mubr.msk.f32.mxu0 %vm3624_vm4, %v9501_v34 }
 0x233   : > { %7343 = vmatmul.mubr.msk.f32.gmra.mxu1 %vm3624_vm4, %v4348_v19 }
 0x234   : > { %7439 = vmatmul.mubr.msk.f32.gmra.mxu0 %vm3624_vm4, %v9503_v38  ;;  %7379 = vmatprep.mubr.msk.f32.mxu1 %vm3624_vm4, %v4848_v3 }
 0x235   : > { %7475 = vmatprep.mubr.msk.f32.mxu0 %vm3624_vm4, %v9174_v46  ;;  %v4855_v46 = vrot.slane %v9145_v23, 6 }
 0x237   : > { %7380 = vmatmul.mubr.msk.f32.vlgmr.msra.gmra.mxu1 %vm3624_vm4, %v4850_v42  ;;  %v4856_v38 = vsel %vm4845_vm6, %v4853_v50, %v4855_v46  ;;  %v4858_v23 = vsel %vm4845_vm6, %v4855_v46, %v4857_v33 }
 0x238   : > { %7442 = vmatpush3.msra.mxu1 %v9580_v11  ;;  %7476 = vmatmul.mubr.msk.f32.vlgmr.msra.gmra.mxu0 %vm3624_vm4, %v9189_v54  ;;  %v4859_v54 = vrot.slane %v9165_v62, 6  ;;  %v4881_v11 = vrot.slane %v9346_v47, 6 }
 0x239   : > { %7382 = vmatprep.mubr.msk.f32.mxu1 %vm3624_vm4, %v4852_v35  ;;  %7478 = vmatprep.mubr.msk.f32.mxu0 %vm3624_vm4, %v9210_v44  ;;  %v4861_v44 = vrot.slane %v9178_v10, 6 }
 0x23a   : > { %v4860_v53 = vsel %vm4845_vm6, %v4857_v33, %v4859_v54 }
 0x23b   : > { %7383 = vmatmul.mubr.msk.f32.gmra.mxu1 %vm3624_vm4, %v4854_v41  ;;  %v4862_v62 = vsel %vm4845_vm6, %v4859_v54, %v4861_v44 }
 0x23c   : > { %7479 = vmatmul.mubr.msk.f32.gmra.mxu0 %vm3624_vm4, %v9227_v7  ;;  %7385 = vmatprep.mubr.msk.f32.mxu1 %vm3624_vm4, %v4856_v38  ;;  %v4863_v7 = vrot.slane %v9204_v49, 6 }
 0x23d   : > { %7481 = vmatprep.mubr.msk.f32.mxu0 %vm3624_vm4, %v9246_v1  ;;  %v4865_v1 = vrot.slane %v9222_v12, 6 }
 0x23e   : > { %v4864_v10 = vsel %vm4845_vm6, %v4861_v44, %v4863_v7 }
 0x23f   : > { %7386 = vmatmul.mubr.msk.f32.gmra.mxu1 %vm3624_vm4, %v4858_v23  ;;  %v4866_v49 = vsel %vm4845_vm6, %v4863_v7, %v4865_v1 }
 0x240   : > { %7482 = vmatmul.mubr.msk.f32.gmra.mxu0 %vm3624_vm4, %v9257_v4  ;;  %7388 = vmatprep.mubr.msk.f32.mxu1 %vm3624_vm4, %v4860_v53  ;;  %v4867_v4 = vrot.slane %v9220_v25, 6 }
 0x241   : > { %7484 = vmatprep.mubr.msk.f32.mxu0 %vm3624_vm4, %v9281_v58  ;;  %v4869_v58 = vrot.slane %v9260_v61, 6 }
 0x242   : > { %v4868_v12 = vsel %vm4845_vm6, %v4865_v1, %v4867_v4 }
 0x243   : > { %7389 = vmatmul.mubr.msk.f32.gmra.mxu1 %vm3624_vm4, %v4862_v62  ;;  %v4870_v25 = vsel %vm4845_vm6, %v4867_v4, %v4869_v58 }
 0x244   : > { %7485 = vmatmul.mubr.msk.f32.gmra.mxu0 %vm3624_vm4, %v9296_v63  ;;  %7391 = vmatprep.mubr.msk.f32.mxu1 %vm3624_vm4, %v4864_v10  ;;  %v4871_v63 = vrot.slane %v9239_v45, 6 }
 0x245   : > { %7487 = vmatprep.mubr.msk.f32.mxu0 %vm3624_vm4, %v9316_v29  ;;  %v4873_v29 = vrot.slane %v9276_v5, 6 }
 0x246   : > { %v4872_v61 = vsel %vm4845_vm6, %v4869_v58, %v4871_v63 }
 0x247   : > { %7392 = vmatmul.mubr.msk.f32.gmra.mxu1 %vm3624_vm4, %v4866_v49  ;;  %v4874_v45 = vsel %vm4845_vm6, %v4871_v63, %v4873_v29 }
 0x248   : > { %7488 = vmatmul.mubr.msk.f32.gmra.mxu0 %vm3624_vm4, %v9330_v40  ;;  %7394 = vmatprep.mubr.msk.f32.mxu1 %vm3624_vm4, %v4868_v12  ;;  %v4875_v40 = vrot.slane %v9305_v36, 6  ;;  %v5521_v36 = vrot.slane %v9520_v31, 2 }
 0x249   : > { %7490 = vmatprep.mubr.msk.f32.mxu0 %vm3624_vm4, %v9353_v6  ;;  %v4877_v6 = vrot.slane %v9323_v17, 6 }
 0x24a   : > { %v4876_v5 = vsel %vm4845_vm6, %v4873_v29, %v4875_v40 }
 0x24b   : > { %7395 = vmatmul.mubr.msk.f32.gmra.mxu1 %vm3624_vm4, %v4870_v25  ;;  %v4878_v17 = vsel %vm4845_vm6, %v4875_v40, %v4877_v6 }
 0x24c   : > { %7491 = vmatmul.mubr.msk.f32.gmra.mxu0 %vm3624_vm4, %v9359_v32  ;;  %7397 = vmatprep.mubr.msk.f32.mxu1 %vm3624_vm4, %v4872_v61  ;;  %v5523_v32 = vrot.slane %v9522_v8, 2 }
 0x24d   : > { %7493 = vmatprep.mubr.msk.f32.mxu0 %vm3624_vm4, %v9389_v9  ;;  %v4879_v9 = vrot.slane %v9321_v15, 6  ;;  %v4883_v15 = vrot.slane %v9520_v31, 6 }
 0x24e   : > { %v5526_v13 = vsel %vm4037_vm3, %v5523_v32, %v5525_v48  ;;  %v10514_v48 = vld [vmem:[#allocation8_spill] sm:$0xff] }
 0x24f   : > { %7398 = vmatmul.mubr.msk.f32.gmra.mxu1 %vm3624_vm4, %v4874_v45  ;;  %v4880_v39 = vsel %vm4845_vm6, %v4877_v6, %v4879_v9  ;;  %v4882_v52 = vsel %vm4845_vm6, %v4879_v9, %v4881_v11  ;;  %v4884_v57 = vsel %vm4845_vm6, %v4881_v11, %v4883_v15  ;;  %v4886_v20 = vsel %vm4845_vm6, %v4883_v15, %v4885_v28 }
 0x250   : > { %7494 = vmatmul.mubr.msk.f32.gmra.mxu0 %vm3624_vm4, %v9395_v22  ;;  %7400 = vmatprep.mubr.msk.f32.mxu1 %vm3624_vm4, %v4876_v5  ;;  %v5522_v22 = vsel %vm4037_vm3, %v10513_v24, %v5521_v36 }
 0x251   : > { %7496 = vmatprep.mubr.msk.f32.mxu0 %vm3624_vm4, %v9413_v37  ;;  %v5524_v37 = vsel %vm4037_vm3, %v5521_v36, %v5523_v32 }
 0x253   : > { %7401 = vmatmul.mubr.msk.f32.gmra.mxu1 %vm3624_vm4, %v4878_v17 }
 0x254   : > { %7497 = vmatmul.mubr.msk.f32.gmra.mxu0 %vm3624_vm4, %v5522_v22  ;;  %7403 = vmatprep.mubr.msk.f32.mxu1 %vm3624_vm4, %v4880_v39 }
 0x255   : > { %7499 = vmatprep.mubr.msk.f32.mxu0 %vm3624_vm4, %v5524_v37 }
 0x257   : > { %7404 = vmatmul.mubr.msk.f32.gmra.mxu1 %vm3624_vm4, %v4882_v52 }
 0x258   : > { %7500 = vmatmul.mubr.msk.f32.gmra.mxu0 %vm3624_vm4, %v5526_v13  ;;  %7406 = vmatprep.mubr.msk.f32.mxu1 %vm3624_vm4, %v4884_v57 }
 0x259   : > { %7502 = vmatprep.mubr.msk.f32.mxu0 %vm3624_vm4, %v9532_v51  ;;  %v10521_v51 = vld [vmem:[#allocation15_spill] sm:$0xff] }
 0x25b   : > { %7407 = vmatmul.mubr.msk.f32.gmra.mxu1 %vm3624_vm4, %v4886_v20 }
 0x25c   : > { %7503 = vmatmul.mubr.msk.f32.gmra.mxu0 %vm3624_vm4, %v9535_v56  ;;  %7443 = vmatprep.mubr.msk.f32.mxu1 %vm3624_vm4, %v9161_v59  ;;  %v10515_v59 = vld [vmem:[#allocation6_spill] sm:$0xff]  ;;  %v5314_v56 = vrot.slane %v9520_v31, 1 }
 0x25e   : > { %v5315_v19 = vsel %vm3582_vm2, %v10522_v2, %v5314_v56 }
 0x25f   : > { %7444 = vmatmul.mubr.msk.f32.vlgmr.msra.gmra.mxu1 %vm3624_vm4, %v9186_v16  ;;  %v10516_v16 = vld [vmem:[#allocation7_spill] sm:$0xff] }
 0x260   : > { %7446 = vmatprep.mubr.msk.f32.mxu1 %vm3624_vm4, %v9201_v55  ;;  %v10517_v55 = vld [vmem:[#allocation10_spill] sm:$0xff] }
 0x263   : > { %7447 = vmatmul.mubr.msk.f32.gmra.mxu1 %vm3624_vm4, %v9217_v43  ;;  %v10518_v43 = vld [vmem:[#allocation9_spill] sm:$0xff] }
 0x264   : > { %7449 = vmatprep.mubr.msk.f32.mxu1 %vm3624_vm4, %v9243_v27  ;;  %v10519_v27 = vld [vmem:[#allocation11_spill] sm:$0xff] }
 0x267   : > { %7450 = vmatmul.mubr.msk.f32.gmra.mxu1 %vm3624_vm4, %v9254_v0  ;;  %v10520_v0 = vld [vmem:[#allocation12_spill] sm:$0xff] }
 0x268   : > { %7452 = vmatprep.mubr.msk.f32.mxu1 %vm3624_vm4, %v9269_v21  ;;  %v5316_v21 = vrot.slane %v9522_v8, 1 }
 0x26a   : > { %v5317_v42 = vsel %vm3582_vm2, %v5314_v56, %v5316_v21  ;;  %v5319_v8 = vsel %vm3582_vm2, %v5316_v21, %v5318_v18 }
 0x26b   : > { %7453 = vmatmul.mubr.msk.f32.gmra.mxu1 %vm3624_vm4, %v10514_v48 }
 0x26c   : > { %7455 = vmatprep.mubr.msk.f32.mxu1 %vm3624_vm4, %v10515_v59 }
 0x26f   : > { %7456 = vmatmul.mubr.msk.f32.gmra.mxu1 %vm3624_vm4, %v10516_v16 }
 0x270   : > { %7458 = vmatprep.mubr.msk.f32.mxu1 %vm3624_vm4, %v10517_v55 }
 0x273   : > { %7459 = vmatmul.mubr.msk.f32.gmra.mxu1 %vm3624_vm4, %v10518_v43 }
 0x274   : > { %7461 = vmatprep.mubr.msk.f32.mxu1 %vm3624_vm4, %v10519_v27 }
 0x277   : > { %7462 = vmatmul.mubr.msk.f32.gmra.mxu1 %vm3624_vm4, %v10520_v0 }
 0x278   : > { %7464 = vmatprep.mubr.msk.f32.mxu1 %vm3624_vm4, %v10521_v51 }
 0x27a   : > { %v7221_v30 = vpop.f32.mrf.mxu1  ;;  %v7285_v3 = vpop.f32.mrf.mxu0 }
 0x27b   : > { %7465 = vmatmul.mubr.msk.f32.gmra.mxu1 %vm3624_vm4, %v5315_v19 }
 0x27c   : > { %7467 = vmatprep.mubr.msk.f32.mxu1 %vm3624_vm4, %v5317_v42  ;;  %v3731_v14 = vpop.f32.mrf.mxu1  ;;  %v4185_v50 = vpop.f32.mrf.mxu0 }
 0x27e   : > { %v7224_v35 = vpop.f32.mrf.mxu1  ;;  %v7288_v31 = vpop.f32.mrf.mxu0 }
 0x27f   : > { %7468 = vmatmul.mubr.msk.f32.gmra.mxu1 %vm3624_vm4, %v5319_v8 }
 0x280   : > { %7470 = vmatprep.mubr.msk.f32.mxu1 %vm3624_vm4, %v9548_v60  ;;  %v3741_v47 = vpop.f32.mrf.mxu1  ;;  %v4195_v46 = vpop.f32.mrf.mxu0 }
 0x282   : > { %v7227_v41 = vpop.f32.mrf.mxu1 }
 0x283   : > { %7471 = vmatmul.mubr.msk.f32.gmra.mxu1 %vm3624_vm4, %v9551_v26 }
 0x284   : > { %v7291_v33 = vpop.f32.mrf.mxu0  ;;  %v3751_v38 = vpop.f32.mrf.mxu1 }
 0x286   : > { %v4205_v54 = vpop.f32.mrf.mxu0 }
 0x288   : > { %v7230_v23 = vpop.f32.mrf.mxu1 }
 0x289   : > { %v7294_v34 = vpop.f32.mrf.mxu0 }
 0x28a   : > { %v3761_v44 = vpop.f32.mrf.mxu1 }
 0x28b   : > { %v4215_v18 = vpop.f32.mrf.mxu0 }
 0x28e   : > { %v7233_v53 = vpop.f32.mrf.mxu1  ;;  %v7297_v7 = vpop.f32.mrf.mxu0 }
 0x290   : > { %v3771_v62 = vpop.f32.mrf.mxu1  ;;  %v9829_v1 = vpop.f32.mrf.mxu0 }
 0x292   : > { %v7236_v10 = vpop.f32.mrf.mxu1 }
 0x293   : > { %v9831_v60 = vpop.f32.mrf.mxu0 }
 0x294   : > { %v3781_v4 = vpop.f32.mrf.mxu1 }
 0x295   : > { %v9833_v49 = vpop.f32.mrf.mxu0 }
 0x296   : > { %v9835_v58 = vpop.f32.mrf.mxu1 }
 0x297   : > { %v9837_v26 = vpop.f32.mrf.mxu0 }
 0x298   : > { %v9839_v12 = vpop.f32.mrf.mxu1 }
 0x299   : > { %v9841_v63 = vpop.f32.mrf.mxu0 }
 0x29a   : > { %v9843_v25 = vpop.f32.mrf.mxu1 }
 0x29c   : > { %v9845_v29 = vpop.f32.mrf.mxu0  ;;  %v9847_v61 = vpop.f32.mrf.mxu1 }
 0x29e   : > { %v9849_v40 = vpop.f32.mrf.mxu0 }
 0x29f   : > { %v9851_v45 = vpop.f32.mrf.mxu1 }
 0x2a0   : > { %v9853_v6 = vpop.f32.mrf.mxu0 }
 0x2a1   : > { %v9855_v5 = vpop.f32.mrf.mxu1 }
 0x2a2   : > { %v9857_v32 = vpop.f32.mrf.mxu0 }
 0x2a3   : > { %v9859_v36 = vpop.f32.mrf.mxu1 }
 0x2a4   : > { %v9861_v9 = vpop.f32.mrf.mxu0 }
 0x2a5   : > { %v9863_v17 = vpop.f32.mrf.mxu1 }
 0x2a6   : > { %v9865_v11 = vpop.f32.mrf.mxu0 }
 0x2a7   : > { %v7253_v24 = vpop.f32.mrf.mxu1 }
 0x2a8   : > { %v3942_v22 = vadd.f32 %v7253_v24, %v7221_v30  ;;  %v9867_v39 = vpop.f32.mrf.mxu0 }
 0x2a9   : > { %v3936_v37 = vpop.f32.mrf.mxu1 }
 0x2aa   : > { %v3937_v15 = vadd.f32 %v3936_v37, %v3731_v14  ;;  %v9869_v52 = vpop.f32.mrf.mxu0  ;;  %v9871_v28 = vadd.f32 %v7285_v3, %v3942_v22 }
 0x2ab   : > { %v7256_v13 = vpop.f32.mrf.mxu1 }
 0x2ac   : > { %v3952_v57 = vadd.f32 %v7256_v13, %v7224_v35  ;;  %v9873_v20 = vpop.f32.mrf.mxu0  ;;  %v9875_v48 = vadd.f32 %v4185_v50, %v3937_v15 }
 0x2ad   : > { %v3946_v59 = vpop.f32.mrf.mxu1 }
 0x2ae   : > { %v3947_v16 = vadd.f32 %v3946_v59, %v3741_v47  ;;  %v9877_v55 = vpop.f32.mrf.mxu0  ;;  %v9879_v43 = vadd.f32 %v7288_v31, %v3952_v57 }
 0x2af   : > { %v7259_v27 = vpop.f32.mrf.mxu1 }
 0x2b0   : > { %v3962_v0 = vadd.f32 %v7259_v27, %v7227_v41  ;;  %v9881_v21 = vpop.f32.mrf.mxu0  ;;  %v9883_v51 = vadd.f32 %v4195_v46, %v3947_v16 }
 0x2b1   : > { %v3956_v56 = vpop.f32.mrf.mxu1 }
 0x2b2   : > { %v3957_v2 = vadd.f32 %v3956_v56, %v3751_v38  ;;  %v9885_v19 = vpop.f32.mrf.mxu0  ;;  %v9887_v30 = vadd.f32 %v7291_v33, %v3962_v0 }
 0x2b3   : > { %v7262_v3 = vpop.f32.mrf.mxu1 }
 0x2b4   : > { %v3972_v42 = vadd.f32 %v7262_v3, %v7230_v23  ;;  %v9889_v14 = vpop.f32.mrf.mxu0  ;;  %v9891_v50 = vadd.f32 %v4205_v54, %v3957_v2 }
 0x2b5   : > { %v3966_v8 = vpop.f32.mrf.mxu1 }
 0x2b6   : > { %v3967_v35 = vadd.f32 %v3966_v8, %v3761_v44  ;;  %v9893_v31 = vpop.f32.mrf.mxu0  ;;  %v9895_v47 = vadd.f32 %v7294_v34, %v3972_v42 }
 0x2b7   : > { %v7265_v46 = vpop.f32.mrf.mxu1 }
 0x2b8   : > { %v3982_v41 = vadd.f32 %v7265_v46, %v7233_v53  ;;  %v9897_v24 = vpop.f32.mrf.mxu0  ;;  %v9899_v38 = vadd.f32 %v4215_v18, %v3967_v35 }
 0x2b9   : > { %v3976_v33 = vpop.f32.mrf.mxu1 }
 0x2ba   : > { %v3977_v22 = vadd.f32 %v3976_v33, %v3771_v62  ;;  %v9901_v37 = vpop.f32.mrf.mxu0  ;;  %v9903_v23 = vadd.f32 %v7297_v7, %v3982_v41 }
 0x2bb   : > { %v7268_v54 = vpop.f32.mrf.mxu1 }
 0x2bc   : > { %v3992_v15 = vadd.f32 %v7268_v54, %v7236_v10  ;;  %v9905_v13 = vpop.f32.mrf.mxu0  ;;  %v9908_v44 = vadd.f32 %v9829_v1, %v3977_v22 }
 0x2bd   : > { %v3986_v34 = vpop.f32.mrf.mxu1 }
 0x2be   : > { %v3987_v57 = vadd.f32 %v3986_v34, %v3781_v4  ;;  %v9910_v53 = vpop.f32.mrf.mxu0  ;;  %v9913_v18 = vadd.f32 %v9831_v60, %v3992_v15 }
 0x2bf   : > { %v7271_v59 = vpop.f32.mrf.mxu1 }
 0x2c0   : > { %v4002_v62 = vadd.f32 %v7271_v59, %v9835_v58  ;;  %v9916_v16 = vpop.f32.mrf.mxu0  ;;  %v9919_v7 = vadd.f32 %v9833_v49, %v3987_v57 }
 0x2c1   : > { %v3996_v10 = vpop.f32.mrf.mxu1 }
 0x2c2   : > { %v3997_v27 = vadd.f32 %v3996_v10, %v9839_v12  ;;  %v9922_v1 = vpop.f32.mrf.mxu0  ;;  %v9925_v4 = vadd.f32 %v9837_v26, %v4002_v62 }
 0x2c3   : > { %v7274_v0 = vpop.f32.mrf.mxu1 }
 0x2c4   : > { %v4012_v60 = vadd.f32 %v7274_v0, %v9843_v25  ;;  %v9928_v56 = vpop.f32.mrf.mxu0  ;;  %v9931_v58 = vadd.f32 %v9841_v63, %v3997_v27 }
 0x2c5   : > { %v4006_v2 = vpop.f32.mrf.mxu1 }
 0x2c6   : > { %v4007_v49 = vadd.f32 %v4006_v2, %v9847_v61  ;;  %v9934_v3 = vpop.f32.mrf.mxu0  ;;  %v9937_v12 = vadd.f32 %v9845_v29, %v4012_v60 }
 0x2c7   : > { %v7277_v42 = vpop.f32.mrf.mxu1 }
 0x2c8   : > { %v4022_v26 = vadd.f32 %v7277_v42, %v9851_v45  ;;  %v9940_v8 = vpop.f32.mrf.mxu0  ;;  %v9943_v25 = vadd.f32 %v9849_v40, %v4007_v49 }
 0x2c9   : > { %v4016_v35 = vpop.f32.mrf.mxu1 }
 0x2ca   : > { %v4017_v63 = vadd.f32 %v4016_v35, %v9855_v5  ;;  %v9946_v46 = vpop.f32.mrf.mxu0  ;;  %v9949_v61 = vadd.f32 %v9853_v6, %v4022_v26 }
 0x2cb   : > { %v7280_v41 = vpop.f32.mrf.mxu1 }
 0x2cc   : > { %v4032_v29 = vadd.f32 %v7280_v41, %v9859_v36  ;;  %v9952_v33 = vpop.f32.mrf.mxu0  ;;  %v9955_v45 = vadd.f32 %v9857_v32, %v4017_v63 }
 0x2cd   : > { %v4026_v22 = vpop.f32.mrf.mxu1 }
 0x2ce   : > { %v4027_v40 = vadd.f32 %v4026_v22, %v9863_v17  ;;  %v9958_v54 = vpop.f32.mrf.mxu0  ;;  %v9961_v5 = vadd.f32 %v9861_v9, %v4032_v29 }
 0x2cf   : > { %v7317_v15 = vpop.f32.mrf.mxu1 }
 0x2d0   : > { %v4555_v6 = vadd.f32 %v7317_v15, %v9871_v28  ;;  %v9964_v34 = vpop.f32.mrf.mxu0  ;;  %v9967_v36 = vadd.f32 %v9865_v11, %v4027_v40 }
 0x2d1   : > { %v4455_v57 = vpop.f32.mrf.mxu1 }
 0x2d2   : > { %v4554_v32 = vadd.f32 %v4455_v57, %v9875_v48  ;;  %v9970_v59 = vpop.f32.mrf.mxu0  ;;  %v9973_v17 = vadd.f32 %v9867_v39, %v4555_v6 }
 0x2d3   : > { %v7320_v62 = vpop.f32.mrf.mxu1 }
 0x2d4   : > { %v4557_v9 = vadd.f32 %v7320_v62, %v9879_v43  ;;  %v9976_v10 = vpop.f32.mrf.mxu0  ;;  %v9979_v28 = vadd.f32 %v9869_v52, %v4554_v32 }
 0x2d5   : > { %v4465_v27 = vpop.f32.mrf.mxu1 }
 0x2d6   : > { %v4556_v11 = vadd.f32 %v4465_v27, %v9883_v51  ;;  %v9982_v0 = vpop.f32.mrf.mxu0  ;;  %v9985_v48 = vadd.f32 %v9873_v20, %v4557_v9 }
 0x2d7   : > { %v7323_v60 = vpop.f32.mrf.mxu1 }
 0x2d8   : > { %v4559_v39 = vadd.f32 %v7323_v60, %v9887_v30  ;;  %v9988_v2 = vpop.f32.mrf.mxu0  ;;  %v9991_v43 = vadd.f32 %v9877_v55, %v4556_v11 }
 0x2d9   : > { %v4475_v49 = vpop.f32.mrf.mxu1 }
 0x2da   : > { %v4558_v52 = vadd.f32 %v4475_v49, %v9891_v50  ;;  %v9994_v42 = vpop.f32.mrf.mxu0  ;;  %v9997_v51 = vadd.f32 %v9881_v21, %v4559_v39 }
 0x2db   : > { %v7326_v26 = vpop.f32.mrf.mxu1 }
 0x2dc   : > { %v4561_v20 = vadd.f32 %v7326_v26, %v9895_v47  ;;  %v10000_v35 = vpop.f32.mrf.mxu0  ;;  %v10003_v30 = vadd.f32 %v9885_v19, %v4558_v52 }
 0x2dd   : > { %v4485_v63 = vpop.f32.mrf.mxu1 }
 0x2de   : > { %v4560_v55 = vadd.f32 %v4485_v63, %v9899_v38  ;;  %v10006_v41 = vpop.f32.mrf.mxu0  ;;  %v10009_v50 = vadd.f32 %v9889_v14, %v4561_v20 }
 0x2df   : > { %v7329_v29 = vpop.f32.mrf.mxu1 }
 0x2e0   : > { %v4563_v21 = vadd.f32 %v7329_v29, %v9903_v23  ;;  %v10012_v22 = vpop.f32.mrf.mxu0  ;;  %v10015_v47 = vadd.f32 %v9893_v31, %v4560_v55 }
 0x2e1   : > { %v4495_v40 = vpop.f32.mrf.mxu1 }
 0x2e2   : > { %v4562_v19 = vadd.f32 %v4495_v40, %v9908_v44  ;;  %v10018_v15 = vpop.f32.mrf.mxu0  ;;  %v10021_v38 = vadd.f32 %v9897_v24, %v4563_v21 }
 0x2e3   : > { %v7332_v6 = vpop.f32.mrf.mxu1 }
 0x2e4   : > { %v4565_v14 = vadd.f32 %v7332_v6, %v9913_v18  ;;  %v10024_v57 = vpop.f32.mrf.mxu0  ;;  %v10027_v23 = vadd.f32 %v9901_v37, %v4562_v19 }
 0x2e5   : > { %v4505_v32 = vpop.f32.mrf.mxu1 }
 0x2e6   : > { %v4564_v31 = vadd.f32 %v4505_v32, %v9919_v7  ;;  %v10030_v62 = vpop.f32.mrf.mxu0  ;;  %v10033_v44 = vadd.f32 %v9905_v13, %v4565_v14 }
 0x2e7   : > { %v7335_v9 = vpop.f32.mrf.mxu1 }
 0x2e8   : > { %v4567_v24 = vadd.f32 %v7335_v9, %v9925_v4  ;;  %v10036_v27 = vpop.f32.mrf.mxu0  ;;  %v10039_v18 = vadd.f32 %v9910_v53, %v4564_v31 }
 0x2e9   : > { %v4515_v11 = vpop.f32.mrf.mxu1 }
 0x2ea   : > { %v4566_v37 = vadd.f32 %v4515_v11, %v9931_v58  ;;  %v10042_v60 = vpop.f32.mrf.mxu0  ;;  %v10045_v7 = vadd.f32 %v9916_v16, %v4567_v24 }
 0x2eb   : > { %v7338_v39 = vpop.f32.mrf.mxu1 }
 0x2ec   : > { %v4569_v13 = vadd.f32 %v7338_v39, %v9937_v12  ;;  %v10048_v49 = vpop.f32.mrf.mxu0  ;;  %v10051_v4 = vadd.f32 %v9922_v1, %v4566_v37 }
 0x2ed   : > { %10523 = vst [vmem:[#allocation14_spill] sm:$0xff] %v10048_v49  ;;  %v4525_v52 = vpop.f32.mrf.mxu1 }
 0x2ee   : > { %v4568_v53 = vadd.f32 %v4525_v52, %v9943_v25  ;;  %v10054_v26 = vpop.f32.mrf.mxu0  ;;  %v10057_v58 = vadd.f32 %v9928_v56, %v4569_v13 }
 0x2ef   : > { %10524 = vst [vmem:[#allocation13_spill] sm:$0xff] %v10054_v26  ;;  %v7341_v20 = vpop.f32.mrf.mxu1 }
 0x2f0   : > { %v4571_v16 = vadd.f32 %v7341_v20, %v9949_v61  ;;  %v10060_v63 = vpop.f32.mrf.mxu0  ;;  %v10063_v12 = vadd.f32 %v9934_v3, %v4568_v53 }
 0x2f1   : > { %10525 = vst [vmem:[#allocation18_spill] sm:$0xff] %v10060_v63  ;;  %v4535_v55 = vpop.f32.mrf.mxu1 }
 0x2f2   : > { %v4570_v1 = vadd.f32 %v4535_v55, %v9955_v45  ;;  %v10066_v29 = vpop.f32.mrf.mxu0  ;;  %v10069_v25 = vadd.f32 %v9940_v8, %v4571_v16 }
 0x2f3   : > { %10526 = vst [vmem:[#allocation20_spill] sm:$0xff] %v10066_v29  ;;  %v7344_v21 = vpop.f32.mrf.mxu1 }
 0x2f4   : > { %10527 = vst [vmem:[#allocation17_spill] sm:$0xff] %v10069_v25  ;;  %v4573_v56 = vadd.f32 %v7344_v21, %v9961_v5  ;;  %v10072_v40 = vpop.f32.mrf.mxu0  ;;  %v10075_v61 = vadd.f32 %v9946_v46, %v4570_v1 }
 0x2f5   : > { %10528 = vst [vmem:[#allocation22_spill] sm:$0xff] %v10072_v40  ;;  %v4545_v19 = vpop.f32.mrf.mxu1 }
 0x2f6   : > { %10529 = vst [vmem:[#allocation23_spill] sm:$0xff] %v10075_v61  ;;  %v4572_v3 = vadd.f32 %v4545_v19, %v9967_v36  ;;  %v10079_v6 = vadd.f32 %v9952_v33, %v4573_v56  ;;  %v10081_v14 = vpop.f32.mrf.mxu0 }
 0x2f7   : > { %v7381_v45 = vpop.f32.mrf.mxu1  ;;  %10531 = vst [vmem:[#allocation25_spill] sm:$0xff] %v10081_v14 }
 0x2f8   : > { %10530 = vst [vmem:[#allocation19_spill] sm:$0xff] %v10079_v6  ;;  %v10084_v8 = vadd.f32 %v9958_v54, %v4572_v3  ;;  %v7477_v5 = vpop.f32.mrf.mxu0 }
 0x2f9   : > { %v4993_v32 = vpop.f32.mrf.mxu1 }
 0x2fa   : > { %10532 = vst [vmem:[#allocation26_spill] sm:$0xff] %v10084_v8  ;;  %v5607_v46 = vpop.f32.mrf.mxu0  ;;  %v5093_v8 = vadd.f32 %v7381_v45, %v9973_v17  ;;  %v5092_v63 = vadd.f32 %v4993_v32, %v9979_v28  ;;  %v10133_v28 = vld [vmem:[%s10307_s6] ss:$0 sm:$0xff] }
 0x2fb   : > { %v7384_v31 = vpop.f32.mrf.mxu1 }
 0x2fc   : > { %v7480_v39 = vpop.f32.mrf.mxu0  ;;  %v5095_v49 = vadd.f32 %v7384_v31, %v9985_v48  ;;  %v5292_v61 = vadd.f32 %v9964_v34, %v5093_v8  ;;  %v5291_v45 = vadd.f32 %v9970_v59, %v5092_v63 }
 0x2fd   : > { %v5003_v9 = vpop.f32.mrf.mxu1 }
 0x2fe   : > { %v5617_v33 = vpop.f32.mrf.mxu0 }
 0x2ff   : > { %v7387_v24 = vpop.f32.mrf.mxu1 }
 0x300   : > { %v10092_v54 = vpop.f32.mrf.mxu0  ;;  %v5097_v34 = vadd.f32 %v7387_v24, %v9997_v51 }
 0x301   : > { %v5013_v11 = vpop.f32.mrf.mxu1 }
 0x302   : > { %v10098_v55 = vpop.f32.mrf.mxu0 }
 0x303   : > { %v7390_v37 = vpop.f32.mrf.mxu1 }
 0x304   : > { %v10105_v56 = vpop.f32.mrf.mxu0 }
 0x305   : > { %v5023_v36 = vpop.f32.mrf.mxu1 }
 0x306   : > { %v10111_v14 = vpop.f32.mrf.mxu0 }
 0x307   : > { %v10086_v13 = vpop.f32.mrf.mxu1 }
 0x308   : > { %v10119_v6 = vpop.f32.mrf.mxu0 }
 0x309   : > { %v10088_v52 = vpop.f32.mrf.mxu1 }
 0x30a   : > { %v10127_v25 = vpop.f32.mrf.mxu0 }
 0x30b   : > { %v10090_v53 = vpop.f32.mrf.mxu1 }
 0x30c   : > { %v10143_v63 = vpop.f32.mrf.mxu0 }
 0x30d   : > { %v10094_v20 = vpop.f32.mrf.mxu1 }
 0x30f   : > { %v10096_v16 = vpop.f32.mrf.mxu1 }
 0x311   : > { %v10100_v1 = vpop.f32.mrf.mxu1 }
 0x313   : > { %v10102_v21 = vpop.f32.mrf.mxu1 }
 0x315   : > { %v10107_v19 = vpop.f32.mrf.mxu1 }
 0x317   : > { %v10109_v3 = vpop.f32.mrf.mxu1 }
 0x318   : > { %10533 = vst [vmem:[#allocation21_spill] sm:$0xff] %v10109_v3 }
 0x319   : > { %v10113_v40 = vpop.f32.mrf.mxu1 }
 0x31a   : > { %10534 = vst [vmem:[#allocation28_spill] sm:$0xff] %v10113_v40  ;;  %v5094_v40 = vadd.f32 %v5003_v9, %v9991_v43  ;;  %v5096_v43 = vadd.f32 %v5013_v11, %v10003_v30 }
 0x31b   : > { %v10116_v29 = vpop.f32.mrf.mxu1 }
 0x31d   : > { %v10121_v26 = vpop.f32.mrf.mxu1 }
 0x31e   : > { %10535 = vst [vmem:[#allocation29_spill] sm:$0xff] %v10121_v26  ;;  %v5294_v26 = vadd.f32 %v9976_v10, %v5095_v49  ;;  %v5099_v10 = vadd.f32 %v7390_v37, %v10009_v50  ;;  %v5295_v50 = vadd.f32 %v9994_v42, %v5096_v43 }
 0x31f   : > { %v7445_v3 = vpop.f32.mrf.mxu1 }
 0x320   : > { %v5500_v17 = vadd.f32 %v7445_v3, %v5292_v61  ;;  %v10141_v61 = vld [vmem:[%s10308_s7] ss:$0 sm:$0xff]  ;;  %v5293_v3 = vadd.f32 %v9982_v0, %v5094_v40  ;;  %v10158_v40 = vpop.f32.mrf.mxu0 }
 0x321   : > { %v5400_v32 = vpop.f32.mrf.mxu1 }
 0x322   : > { %v5707_v48 = vadd.f32 %v7477_v5, %v5500_v17  ;;  %v5499_v31 = vadd.f32 %v5400_v32, %v5291_v45  ;;  %v5098_v17 = vadd.f32 %v5023_v36, %v10015_v47  ;;  %v5101_v36 = vadd.f32 %v10086_v13, %v10021_v38  ;;  %v10171_v38 = vpop.f32.mrf.mxu0 }
 0x323   : > { %v7448_v59 = vpop.f32.mrf.mxu1 }
 0x324   : > { %v5734_v8 = vmul.f32 %v10133_v28, %v5707_v48  ;;  %v5706_v9 = vadd.f32 %v5607_v46, %v5499_v31  ;;  %v5502_v5 = vadd.f32 %v7448_v59, %v5294_v26  ;;  %v5296_v26 = vadd.f32 %v9988_v2, %v5097_v34 }
 0x325   : > { %v5410_v51 = vpop.f32.mrf.mxu1  ;;  %v5298_v48 = vadd.f32 %v10000_v35, %v5099_v10  ;;  %v5297_v59 = vadd.f32 %v10006_v41, %v5098_v17  ;;  %v5300_v10 = vadd.f32 %v10012_v22, %v5101_v36 }
 0x326   : > { %v5761_v30 = vadd.f32 %v10141_v61, %v5734_v8  ;;  %v5733_v49 = vmul.f32 %v10133_v28, %v5706_v9  ;;  %v5709_v24 = vadd.f32 %v7480_v39, %v5502_v5  ;;  %v5501_v11 = vadd.f32 %v5410_v51, %v5293_v3 }
 0x327   : > { %v7451_v0 = vpop.f32.mrf.mxu1  ;;  %v5100_v5 = vadd.f32 %v10088_v52, %v10027_v23  ;;  %v5667_v52 = vpop.f32.mrf.mxu0 }
 0x328   : > { %v5781_v46 = vmax.f32 %v5761_v30, 0.0  ;;  %v5760_v37 = vadd.f32 %v10141_v61, %v5733_v49  ;;  %v5736_v39 = vmul.f32 %v10133_v28, %v5709_v24  ;;  %v5708_v47 = vadd.f32 %v5617_v33, %v5501_v11 }
 0x329   : > { %v5504_v45 = vadd.f32 %v7451_v0, %v5296_v26  ;;  %v5420_v32 = vpop.f32.mrf.mxu1  ;;  %v5102_v24 = vadd.f32 %v10094_v20, %v10039_v18  ;;  %v5299_v20 = vadd.f32 %v10018_v15, %v5100_v5 }
 0x32a   : > { %5801 = vst.msk [vmem:[%s10154_s14 + $0x8] sm:$0xff] %vm3624_vm4, %v5781_v46  ;;  %v5780_v2 = vmax.f32 %v5760_v37, 0.0  ;;  %v5763_v42 = vadd.f32 %v10141_v61, %v5736_v39  ;;  %v5735_v31 = vmul.f32 %v10133_v28, %v5708_v47  ;;  %v5503_v34 = vadd.f32 %v5420_v32, %v5295_v50  ;;  %v7498_v47 = vpop.f32.mrf.mxu0 }
 0x32b   : > { %v5711_v43 = vadd.f32 %v10092_v54, %v5504_v45  ;;  %v7454_v33 = vpop.f32.mrf.mxu1  ;;  %v5103_v54 = vadd.f32 %v10090_v53, %v10033_v44  ;;  %v5301_v15 = vadd.f32 %v10030_v62, %v5102_v24 }
 0x32c   : > { %5800 = vst.msk [vmem:[%s10154_s14] sm:$0xff] %vm3624_vm4, %v5780_v2  ;;  %v5783_v35 = vmax.f32 %v5763_v42, 0.0  ;;  %v5762_v13 = vadd.f32 %v10141_v61, %v5735_v31  ;;  %v5710_v8 = vadd.f32 %v10098_v55, %v5503_v34  ;;  %v5506_v9 = vadd.f32 %v7454_v33, %v5298_v48  ;;  %v5677_v33 = vpop.f32.mrf.mxu0 }
 0x32d   : > { %v5738_v3 = vmul.f32 %v10133_v28, %v5711_v43  ;;  %v5430_v41 = vpop.f32.mrf.mxu1  ;;  %v5302_v0 = vadd.f32 %v10024_v57, %v5103_v54  ;;  %v5107_v31 = vadd.f32 %v10102_v21, %v10057_v58  ;;  %v5106_v34 = vadd.f32 %v10107_v19, %v10063_v12 }
 0x32e   : > { %6397 = vst.msk [vmem:[%s10154_s14 + $0x14] sm:$0xff] %vm3624_vm4, %v5783_v35  ;;  %v5782_v51 = vmax.f32 %v5762_v13, 0.0  ;;  %v5737_v30 = vmul.f32 %v10133_v28, %v5710_v8  ;;  %v5713_v55 = vadd.f32 %v10105_v56, %v5506_v9  ;;  %v5505_v49 = vadd.f32 %v5430_v41, %v5297_v59  ;;  %v10536_v8 = vld [vmem:[#allocation17_spill] sm:$0xff]  ;;  %v10539_v41 = vld [vmem:[#allocation28_spill] sm:$0xff] }
 0x32f   : > { %v5765_v23 = vadd.f32 %v10141_v61, %v5738_v3  ;;  %v7457_v44 = vpop.f32.mrf.mxu1  ;;  %v5105_v56 = vadd.f32 %v10096_v16, %v10045_v7  ;;  %v10537_v9 = vld [vmem:[#allocation21_spill] sm:$0xff]  ;;  %v10538_v3 = vld [vmem:[#allocation23_spill] sm:$0xff] }
 0x330   : > { %6396 = vst.msk [vmem:[%s10154_s14 + $0xc] sm:$0xf0] %vm5803_vm7, %v5782_v51  ;;  %v5764_v22 = vadd.f32 %v10141_v61, %v5737_v30  ;;  %v5740_v53 = vmul.f32 %v10133_v28, %v5713_v55  ;;  %v5712_v11 = vadd.f32 %v10111_v14, %v5505_v49  ;;  %v5508_v17 = vadd.f32 %v7457_v44, %v5300_v10  ;;  %v10540_v51 = vld [vmem:[#allocation14_spill] sm:$0xff]  ;;  %v10541_v49 = vld [vmem:[#allocation13_spill] sm:$0xff] }
 0x331   : > { %v5785_v18 = vmax.f32 %v5765_v23, 0.0  ;;  %v5440_v26 = vpop.f32.mrf.mxu1  ;;  %v5104_v14 = vadd.f32 %v10100_v1, %v10051_v4  ;;  %v5304_v4 = vadd.f32 %v10036_v27, %v5105_v56  ;;  %v5109_v58 = vadd.f32 %v10537_v9, %v10536_v8  ;;  %v7501_v23 = vpop.f32.mrf.mxu0 }
 0x332   : > { %v5784_v50 = vmax.f32 %v5764_v22, 0.0  ;;  %v5767_v46 = vadd.f32 %v10141_v61, %v5740_v53  ;;  %v5739_v37 = vmul.f32 %v10133_v28, %v5712_v11  ;;  %v5715_v39 = vadd.f32 %v10119_v6, %v5508_v17 }
 0x333   : > { %6399 = vst.msk [vmem:[%s10154_s14 + $0x20] sm:$0xff] %vm3624_vm4, %v5785_v18  ;;  %v5507_v7 = vadd.f32 %v5440_v26, %v5299_v20  ;;  %v7460_v16 = vpop.f32.mrf.mxu1  ;;  %v5303_v27 = vadd.f32 %v10042_v60, %v5104_v14  ;;  %v5306_v30 = vadd.f32 %v10540_v51, %v5107_v31  ;;  %v5305_v24 = vadd.f32 %v10541_v49, %v5106_v34  ;;  %v10543_v20 = vld [vmem:[#allocation18_spill] sm:$0xff]  ;;  %v10544_v14 = vld [vmem:[#allocation20_spill] sm:$0xff] }
 0x334   : > { %6398 = vst.msk [vmem:[%s10154_s14 + $0x1c] sm:$0xf] %vm5806_vm8, %v5784_v50  ;;  %v5787_v57 = vmax.f32 %v5767_v46, 0.0  ;;  %v5766_v36 = vadd.f32 %v10141_v61, %v5739_v37  ;;  %v5742_v45 = vmul.f32 %v10133_v28, %v5715_v39  ;;  %v5510_v32 = vadd.f32 %v7460_v16, %v5302_v0 }
 0x335   : > { %v5714_v6 = vadd.f32 %v10127_v25, %v5507_v7  ;;  %v5450_v48 = vpop.f32.mrf.mxu1  ;;  %v5308_v26 = vadd.f32 %v10543_v20, %v5109_v58 }
 0x336   : > { %6401 = vst.msk [vmem:[%s10154_s14 + $0x2c] sm:$0xf0] %vm5803_vm7, %v5787_v57  ;;  %v5786_v1 = vmax.f32 %v5766_v36, 0.0  ;;  %v5769_v62 = vadd.f32 %v10141_v61, %v5742_v45  ;;  %v5717_v2 = vadd.f32 %v10143_v63, %v5510_v32  ;;  %v5509_v42 = vadd.f32 %v5450_v48, %v5301_v15  ;;  %v10545_v45 = vld [vmem:[#allocation26_spill] sm:$0xff]  ;;  %v10546_v32 = vld [vmem:[#allocation29_spill] sm:$0xff] }
 0x337   : > { %v5741_v25 = vmul.f32 %v10133_v28, %v5714_v6  ;;  %v7463_v43 = vpop.f32.mrf.mxu1  ;;  %v5110_v6 = vadd.f32 %v10546_v32, %v10545_v45 }
 0x338   : > { %6400 = vst.msk [vmem:[%s10154_s14 + $0x28] sm:$0xff] %vm3624_vm4, %v5786_v1  ;;  %v5789_v59 = vmax.f32 %v5769_v62, 0.0  ;;  %v5744_v35 = vmul.f32 %v10133_v28, %v5717_v2  ;;  %v5716_v63 = vadd.f32 %v10158_v40, %v5509_v42  ;;  %v5512_v13 = vadd.f32 %v7463_v43, %v5304_v4  ;;  %v10547_v1 = vld [vmem:[#allocation22_spill] sm:$0xff] }
 0x339   : > { %v5768_v21 = vadd.f32 %v10141_v61, %v5741_v25  ;;  %v5460_v12 = vpop.f32.mrf.mxu1  ;;  %v5108_v40 = vadd.f32 %v10539_v41, %v10538_v3 }
 0x33a   : > { %6403 = vst.msk [vmem:[%s10154_s14 + $0x3c] sm:$0xf] %vm5806_vm8, %v5789_v59  ;;  %v5771_v60 = vadd.f32 %v10141_v61, %v5744_v35  ;;  %v5743_v19 = vmul.f32 %v10133_v28, %v5716_v63  ;;  %v5719_v5 = vadd.f32 %v10171_v38, %v5512_v13  ;;  %v5511_v54 = vadd.f32 %v5460_v12, %v5303_v27  ;;  %v10542_v38 = vld [vmem:[#allocation19_spill] sm:$0xff]  ;;  %v10548_v13 = vld [vmem:[#allocation25_spill] sm:$0xff] }
 0x33b   : > { %v5788_v10 = vmax.f32 %v5768_v21, 0.0  ;;  %v7466_v55 = vpop.f32.mrf.mxu1  ;;  %v5111_v17 = vadd.f32 %v10116_v29, %v10542_v38  ;;  %v5307_v7 = vadd.f32 %v10544_v14, %v5108_v40  ;;  %v5687_v29 = vpop.f32.mrf.mxu0  ;;  %v5309_v8 = vadd.f32 %v10548_v13, %v5110_v6 }
 0x33c   : > { %v5791_v44 = vmax.f32 %v5771_v60, 0.0  ;;  %v5770_v22 = vadd.f32 %v10141_v61, %v5743_v19  ;;  %v5746_v53 = vmul.f32 %v10133_v28, %v5719_v5  ;;  %v5718_v11 = vadd.f32 %v5667_v52, %v5511_v54 }
 0x33d   : > { %6402 = vst.msk [vmem:[%s10154_s14 + $0x34] sm:$0xff] %vm3624_vm4, %v5788_v10  ;;  %v5514_v56 = vadd.f32 %v7466_v55, %v5306_v30  ;;  %v5470_v18 = vpop.f32.mrf.mxu1  ;;  %v7504_v43 = vpop.f32.mrf.mxu0 }
 0x33e   : > { %6405 = vst.msk [vmem:[%s10154_s14 + $0x48] sm:$0xff] %vm3624_vm4, %v5791_v44  ;;  %v5790_v0 = vmax.f32 %v5770_v22, 0.0  ;;  %v5773_v50 = vadd.f32 %v10141_v61, %v5746_v53  ;;  %v5745_v46 = vmul.f32 %v10133_v28, %v5718_v11  ;;  %v5513_v37 = vadd.f32 %v5470_v18, %v5305_v24 }
 0x33f   : > { %v5721_v39 = vadd.f32 %v7498_v47, %v5514_v56  ;;  %v7469_v52 = vpop.f32.mrf.mxu1  ;;  %v5310_v47 = vadd.f32 %v10547_v1, %v5111_v17  ;;  %v5697_v5 = vpop.f32.mrf.mxu0 }
 0x340   : > { %6404 = vst.msk [vmem:[%s10154_s14 + $0x40] sm:$0xff] %vm3624_vm4, %v5790_v0  ;;  %v5793_v16 = vmax.f32 %v5773_v50, 0.0  ;;  %v5772_v15 = vadd.f32 %v10141_v61, %v5745_v46  ;;  %v5720_v57 = vadd.f32 %v5677_v33, %v5513_v37  ;;  %v5516_v36 = vadd.f32 %v7469_v52, %v5308_v26 }
 0x341   : > { %v5748_v48 = vmul.f32 %v10133_v28, %v5721_v39  ;;  %v5480_v4 = vpop.f32.mrf.mxu1 }
 0x342   : > { %6407 = vst.msk [vmem:[%s10154_s14 + $0x54] sm:$0xff] %vm3624_vm4, %v5793_v16  ;;  %v5792_v62 = vmax.f32 %v5772_v15, 0.0  ;;  %v5747_v2 = vmul.f32 %v10133_v28, %v5720_v57  ;;  %v5723_v42 = vadd.f32 %v7501_v23, %v5516_v36  ;;  %v5515_v31 = vadd.f32 %v5480_v4, %v5307_v7 }
 0x343   : > { %v5775_v34 = vadd.f32 %v10141_v61, %v5748_v48  ;;  %v7472_v25 = vpop.f32.mrf.mxu1 }
 0x344   : > { %6406 = vst.msk [vmem:[%s10154_s14 + $0x4c] sm:$0xf0] %vm5803_vm7, %v5792_v62  ;;  %v5774_v27 = vadd.f32 %v10141_v61, %v5747_v2  ;;  %v5750_v33 = vmul.f32 %v10133_v28, %v5723_v42  ;;  %v5722_v59 = vadd.f32 %v5687_v29, %v5515_v31  ;;  %v5518_v35 = vadd.f32 %v7472_v25, %v5310_v47 }
 0x345   : > { %v5795_v63 = vmax.f32 %v5775_v34, 0.0  ;;  %v5490_v9 = vpop.f32.mrf.mxu1 }
 0x346   : > { %v5794_v58 = vmax.f32 %v5774_v27, 0.0  ;;  %v5777_v21 = vadd.f32 %v10141_v61, %v5750_v33  ;;  %v5749_v12 = vmul.f32 %v10133_v28, %v5722_v59  ;;  %v5725_v60 = vadd.f32 %v7504_v43, %v5518_v35 }
 0x347   : > { %6409 = vst.msk [vmem:[%s10154_s14 + $0x60] sm:$0xff] %vm3624_vm4, %v5795_v63  ;;  %v5517_v19 = vadd.f32 %v5490_v9, %v5309_v8 }
 0x348   : > { %6408 = vst.msk [vmem:[%s10154_s14 + $0x5c] sm:$0xf] %vm5806_vm8, %v5794_v58  ;;  %v5797_v54 = vmax.f32 %v5777_v21, 0.0  ;;  %v5776_v3 = vadd.f32 %v10141_v61, %v5749_v12  ;;  %v5752_v41 = vmul.f32 %v10133_v28, %v5725_v60 }
 0x349   : > { %v5724_v40 = vadd.f32 %v5697_v5, %v5517_v19 }
 0x34a   : > { %6411 = vst.msk [vmem:[%s10154_s14 + $0x6c] sm:$0xf0] %vm5803_vm7, %v5797_v54  ;;  %v5796_v10 = vmax.f32 %v5776_v3, 0.0  ;;  %v5779_v51 = vadd.f32 %v10141_v61, %v5752_v41 }
 0x34b   : > { %v5751_v30 = vmul.f32 %v10133_v28, %v5724_v40 }
 0x34c   : > { %6410 = vst.msk [vmem:[%s10154_s14 + $0x68] sm:$0xff] %vm3624_vm4, %v5796_v10  ;;  %v5799_v55 = vmax.f32 %v5779_v51, 0.0 }
 0x34d   : > { %v5778_v49 = vadd.f32 %v10141_v61, %v5751_v30 }
 0x34e   : > { %6413 = vst.msk [vmem:[%s10154_s14 + $0x7c] sm:$0xf] %vm5806_vm8, %v5799_v55 }
 0x34f   : > { %v5798_v24 = vmax.f32 %v5778_v49, 0.0 }
 0x351   : > { %6412 = vst.msk [vmem:[%s10154_s14 + $0x74] sm:$0xff] %vm3624_vm4, %v5798_v24 }
 0x352 PF: > { %s18_s9 = sadd.s32 1, %s7589_s9   ;;  %s10549_s27 = smov %s7581_s29 }
 0x353   : > { %p15_p8 = scmp.ge.s32.totalorder %s18_s9, 6   ;;  %s10550_s28 = smov %s7585_s30 }
 0x354   : > { %s10551_s29 = smov %s10554_s10  ;;  %s10552_s30 = smov %s10558_s11 }
 0x355   :  { %17 = sbr.rel (!%p15_p8) target bundleno = 3 (0x3), region = 108 }

</bundles_post_ra>
